<compile_context>
chip_gen: v7x
topology: tpu7x:2x2x1
jax: 0.10.0
libtpu: 0.0.40
codegen_flags: <defaults>
</compile_context>

<pallas_src>
import math
from functools import partial

import jax
import jax.numpy as jnp
from jax.experimental import pallas as pl
from jax.experimental.pallas import tpu as pltpu


LN_EPS = 1e-5


# ----------------------------- tiling helper -----------------------------

def _pick_tile(dim_size, cap, multiple):
    """Largest divisor of `dim_size` that is <= cap and a multiple of `multiple`.
    Falls back to the full dim (always a legal block extent)."""
    cap = min(cap, dim_size)
    for t in range(cap, 0, -1):
        if dim_size % t == 0 and t % multiple == 0:
            return t
    return dim_size


def _row_multiple(x):
    # bf16 packs 16 sublanes per vreg -> prefer row tiles that are multiples of 16.
    return 16 if x.dtype == jnp.bfloat16 else 8


# ----------------------------- Pallas kernels -----------------------------

def _head_linear_kernel(x_ref, w_ref, b_ref, o_ref):
    """One (batch, row-tile, head) step of a per-head projection.
    x_ref: (1, tm, C) bf16    w_ref: (1, C, hd) bf16    b_ref: (1, 1, hd)
    o_ref: (1, 1, tm, hd)     K = C fits one tile -> no accumulator scratch."""
    y = jnp.dot(x_ref[0], w_ref[0], preferred_element_type=jnp.float32)
    o_ref[0, 0] = (y + b_ref[0].astype(jnp.float32)).astype(o_ref.dtype)


def _matmul_ln_noacc_kernel(x_ref, w_ref, b_ref, g_ref, bt_ref, o_ref, *, eps):
    """y = LayerNorm(x @ w + b) * g + bt, K in a single tile (no scratch)."""
    y = jnp.dot(x_ref[...], w_ref[...], preferred_element_type=jnp.float32)
    y = y + b_ref[...].astype(jnp.float32)
    mu = jnp.mean(y, axis=-1, keepdims=True)
    var = jnp.mean((y - mu) ** 2, axis=-1, keepdims=True)
    yn = (y - mu) * jax.lax.rsqrt(var + eps)
    o_ref[...] = (yn * g_ref[...] + bt_ref[...]).astype(o_ref.dtype)


def _matmul_ln_acc_kernel(x_ref, w_ref, b_ref, g_ref, bt_ref, o_ref, acc_ref, *, eps):
    """K-tiled variant of the above (used when sr_ratio^2 * C exceeds one K tile)."""
    k = pl.program_id(1)

    @pl.when(k == 0)
    def _():
        acc_ref[...] = jnp.zeros_like(acc_ref)

    acc_ref[...] += jnp.dot(x_ref[...], w_ref[...], preferred_element_type=jnp.float32)

    @pl.when(k == pl.num_programs(1) - 1)
    def _():
        y = acc_ref[...] + b_ref[...].astype(jnp.float32)
        mu = jnp.mean(y, axis=-1, keepdims=True)
        var = jnp.mean((y - mu) ** 2, axis=-1, keepdims=True)
        yn = (y - mu) * jax.lax.rsqrt(var + eps)
        o_ref[...] = (yn * g_ref[...] + bt_ref[...]).astype(o_ref.dtype)


def _attn_head_kernel(q_ref, k_ref, v_ref, o_ref):
    """One (batch, head, query-tile) step of attention.  Scale is pre-folded into wq.
    q_ref: (1, 1, tq, hd)  k_ref/v_ref: (1, 1, Nk, hd)  o_ref: (1, 1, tq, hd)."""
    q = q_ref[0, 0]                                           # (tq, hd) bf16
    k = k_ref[0, 0]                                           # (Nk, hd) bf16
    v = v_ref[0, 0]                                           # (Nk, hd) bf16

    s = jax.lax.dot_general(q, k, (((1,), (1,)), ((), ())),
                            preferred_element_type=jnp.float32)   # (tq, Nk) f32
    s = s - jnp.max(s, axis=-1, keepdims=True)
    p = jnp.exp(s)
    inv_l = pl.reciprocal(jnp.sum(p, axis=-1, keepdims=True), approx=True)   # EUP

    o = jnp.dot(p.astype(jnp.bfloat16), v, preferred_element_type=jnp.float32)
    o_ref[0, 0] = (o * inv_l).astype(o_ref.dtype)


def _proj_head_kernel(x_ref, w_ref, b_ref, o_ref):
    """Output projection with the head axis as a reduction grid axis.
    x_ref: (1, 1, tm, hd) bf16   w_ref: (1, hd, C) bf16   b_ref: (1, C)
    o_ref: (1, tm, C) f32 -- accumulated directly in the resident output block."""
    h = pl.program_id(2)
    part = jnp.dot(x_ref[0, 0], w_ref[0], preferred_element_type=jnp.float32)

    @pl.when(h == 0)
    def _():
        o_ref[0] = part + b_ref[...].astype(jnp.float32)

    @pl.when(h > 0)
    def _():
        o_ref[0] = o_ref[0] + part


# ----------------------------- wrappers -----------------------------

def head_linear_pallas(x3, w3, b3, *, tm_cap=512):
    """x3: (B, S, C); w3: (G, C, hd); b3: (G, 1, hd) -> (B, G, S, hd) bf16.
    The G (head) axis is innermost so the x tile stays resident across heads."""
    B, S, C = x3.shape
    G, _, hd = w3.shape
    tm = _pick_tile(S, tm_cap, _row_multiple(x3))
    grid = (B, S // tm, G)
    return pl.pallas_call(
        _head_linear_kernel,
        out_shape=jax.ShapeDtypeStruct((B, G, S, hd), jnp.bfloat16),
        grid=grid,
        in_specs=[pl.BlockSpec((1, tm, C), lambda b, i, g: (b, i, 0)),
                  pl.BlockSpec((1, C, hd), lambda b, i, g: (g, 0, 0)),
                  pl.BlockSpec((1, 1, hd), lambda b, i, g: (g, 0, 0))],
        out_specs=pl.BlockSpec((1, 1, tm, hd), lambda b, i, g: (b, g, i, 0)),
        compiler_params=pltpu.CompilerParams(
            dimension_semantics=("parallel", "parallel", "parallel")),
    )(x3, w3, b3)


def linear_layernorm_pallas(x2d, w, b, gamma, beta, *, eps=LN_EPS, tm_cap=512, tk_cap=512):
    """LayerNorm(x2d @ w + b) * gamma + beta, LN fused into the matmul epilogue.
    Output width N (= embedding dim) is kept fully resident."""
    M, K = x2d.shape
    N = w.shape[1]
    tm = _pick_tile(M, tm_cap, _row_multiple(x2d))
    tk = _pick_tile(K, tk_cap, 128)
    kt = K // tk
    b2, g2, bt2 = b.reshape(1, N), gamma.reshape(1, N), beta.reshape(1, N)

    if kt == 1:   # K fits one tile -> skip the f32 accumulator scratch entirely
        return pl.pallas_call(
            partial(_matmul_ln_noacc_kernel, eps=eps),
            out_shape=jax.ShapeDtypeStruct((M, N), jnp.bfloat16),
            grid=(M // tm,),
            in_specs=[pl.BlockSpec((tm, K), lambda i: (i, 0)),
                      pl.BlockSpec((K, N), lambda i: (0, 0)),
                      pl.BlockSpec((1, N), lambda i: (0, 0)),
                      pl.BlockSpec((1, N), lambda i: (0, 0)),
                      pl.BlockSpec((1, N), lambda i: (0, 0))],
            out_specs=pl.BlockSpec((tm, N), lambda i: (i, 0)),
            compiler_params=pltpu.CompilerParams(dimension_semantics=("parallel",)),
        )(x2d, w, b2, g2, bt2)

    return pl.pallas_call(
        partial(_matmul_ln_acc_kernel, eps=eps),
        out_shape=jax.ShapeDtypeStruct((M, N), jnp.bfloat16),
        grid=(M // tm, kt),
        in_specs=[pl.BlockSpec((tm, tk), lambda i, k: (i, k)),
                  pl.BlockSpec((tk, N), lambda i, k: (k, 0)),
                  pl.BlockSpec((1, N), lambda i, k: (0, 0)),
                  pl.BlockSpec((1, N), lambda i, k: (0, 0)),
                  pl.BlockSpec((1, N), lambda i, k: (0, 0))],
        out_specs=pl.BlockSpec((tm, N), lambda i, k: (i, 0)),
        scratch_shapes=[pltpu.VMEM((tm, N), jnp.float32)],
        compiler_params=pltpu.CompilerParams(
            dimension_semantics=("parallel", "arbitrary")),
    )(x2d, w, b2, g2, bt2)


def attention_heads_pallas(q4, kv4, *, num_heads, tq_cap=512):
    """q4: (B, H, N, hd); kv4: (B, 2H, Nk, hd) with k in heads [0,H) and v in [H,2H).
    Head / k-v selection is pure index_map addressing; k,v stay resident across query tiles."""
    B, H, N, hd = q4.shape
    Nk = kv4.shape[2]
    tq = _pick_tile(N, tq_cap, 16)
    grid = (B, H, N // tq)
    return pl.pallas_call(
        _attn_head_kernel,
        out_shape=jax.ShapeDtypeStruct((B, H, N, hd), jnp.bfloat16),
        grid=grid,
        in_specs=[pl.BlockSpec((1, 1, tq, hd), lambda b, h, qi: (b, h, qi, 0)),
                  pl.BlockSpec((1, 1, Nk, hd), lambda b, h, qi: (b, h, 0, 0)),
                  pl.BlockSpec((1, 1, Nk, hd), lambda b, h, qi: (b, num_heads + h, 0, 0))],
        out_specs=pl.BlockSpec((1, 1, tq, hd), lambda b, h, qi: (b, h, qi, 0)),
        compiler_params=pltpu.CompilerParams(
            dimension_semantics=("parallel", "parallel", "parallel")),
    )(q4, kv4, kv4)


def proj_head_pallas(x4, w3, b2, *, out_dtype, tm_cap=512):
    """x4: (B, H, N, hd); w3: (H, hd, C); b2: (1, C) -> (B, N, C).
    The head axis is the (innermost) reduction grid axis; output accumulates in place (f32),
    so no transpose of the attention output is ever materialized."""
    B, H, N, hd = x4.shape
    C = w3.shape[2]
    tm = _pick_tile(N, tm_cap, 16)
    grid = (B, N // tm, H)
    return pl.pallas_call(
        _proj_head_kernel,
        out_shape=jax.ShapeDtypeStruct((B, N, C), out_dtype),
        grid=grid,
        in_specs=[pl.BlockSpec((1, 1, tm, hd), lambda b, i, h: (b, h, i, 0)),
                  pl.BlockSpec((1, hd, C), lambda b, i, h: (h, 0, 0)),
                  pl.BlockSpec((1, C), lambda b, i, h: (0, 0))],
        out_specs=pl.BlockSpec((1, tm, C), lambda b, i, h: (b, i, 0)),
        compiler_params=pltpu.CompilerParams(
            dimension_semantics=("parallel", "parallel", "arbitrary")),
    )(x4, w3, b2)


# ----------------------------- parameters -----------------------------

def init_params(key, dim, num_heads, sr_ratio, qkv_bias=False, dtype=jnp.bfloat16):
    """Weights are stored bf16, pre-reshaped into per-head slabs, with the softmax scale
    folded into the q projection.  LayerNorm affine params stay f32 (f32 LN math)."""
    hd = dim // num_heads
    scale = hd ** (-0.5)
    ks = jax.random.split(key, 6)

    def trunc_normal(k, shape, std=0.02):
        return jax.random.truncated_normal(k, -2.0, 2.0, shape) * std

    # PyTorch Linear weights are (out, in)
    Wq = trunc_normal(ks[0], (dim, dim))
    Wkv = trunc_normal(ks[1], (2 * dim, dim))
    Wp = trunc_normal(ks[2], (dim, dim))
    bq = jnp.zeros((dim,), jnp.float32)          # qkv_bias=False -> zeros
    bkv = jnp.zeros((2 * dim,), jnp.float32)
    bp = jnp.zeros((dim,), jnp.float32)

    params = {
        # per-head slabs (G, C_in, hd); softmax scale folded into the q projection
        "wq_h": (Wq.reshape(num_heads, hd, dim).transpose(0, 2, 1) * scale).astype(dtype),
        "bq_h": (bq.reshape(num_heads, 1, hd) * scale).astype(dtype),
        # kv: heads [0, H) are k, heads [H, 2H) are v (matches the PyTorch reshape/permute)
        "wkv_h": Wkv.reshape(2 * num_heads, hd, dim).transpose(0, 2, 1).astype(dtype),
        "bkv_h": bkv.reshape(2 * num_heads, 1, hd).astype(dtype),
        # output projection consumed per head: (H, hd, C_out)
        "wp_h": Wp.reshape(dim, num_heads, hd).transpose(1, 2, 0).astype(dtype),
        "bp": bp.reshape(1, dim),
    }
    if sr_ratio > 1:
        fan_out = sr_ratio * sr_ratio * dim
        # conv weight (out_ch, in_ch, kh, kw) -> patch matmul (kh*kw*C_in, C_out)
        w_conv = jax.random.normal(ks[3], (dim, dim, sr_ratio, sr_ratio)) * math.sqrt(2.0 / fan_out)
        params["w_sr"] = (w_conv.transpose(2, 3, 1, 0)
                          .reshape(sr_ratio * sr_ratio * dim, dim).astype(dtype))
        params["b_sr"] = jnp.zeros((dim,), jnp.float32)
        params["ln_g"] = jnp.ones((dim,), jnp.float32)
        params["ln_b"] = jnp.zeros((dim,), jnp.float32)
    return params


# ----------------------------- forward -----------------------------

def attention_pvtv2_forward(x, H, W, params, num_heads, sr_ratio):
    B, N, C = x.shape
    x_bf = x.astype(jnp.bfloat16)        # bf16 activations end-to-end (f32 accumulation kept)

    # q projection: head split done by the output BlockSpec (DMA-side), scale pre-folded
    q4 = head_linear_pallas(x_bf, params["wq_h"], params["bq_h"])        # (B, H, N, hd)

    # spatial reduction for k, v
    if sr_ratio > 1:
        Hs, Ws = H // sr_ratio, W // sr_ratio
        # TODO(synk): patchify still goes through an XLA reshape/transpose; folding the (ki, kj)
        #             offsets into the LN-matmul grid would save one B*N*C HBM round trip.
        patches = (x_bf.reshape(B, Hs, sr_ratio, Ws, sr_ratio, C)
                   .transpose(0, 1, 3, 2, 4, 5)
                   .reshape(B * Hs * Ws, sr_ratio * sr_ratio * C))
        x_sr = linear_layernorm_pallas(patches, params["w_sr"], params["b_sr"],
                                       params["ln_g"], params["ln_b"])
        kv_in = x_sr.reshape(B, Hs * Ws, C)
    else:
        kv_in = x_bf

    # k and v projections in one call -> (B, 2H, Nk, hd); head & k/v split via out BlockSpec
    kv4 = head_linear_pallas(kv_in, params["wkv_h"], params["bkv_h"])

    # per-head attention (f32 softmax, bf16 MXU operands)
    o4 = attention_heads_pallas(q4, kv4, num_heads=num_heads)            # (B, H, N, hd)

    # output projection: head axis is the reduction grid axis -> final (B, N, C) f32
    return proj_head_pallas(o4, params["wp_h"], params["bp"], out_dtype=x.dtype)


# ----------------------------- main -----------------------------

if __name__ == "__main__":
    B = 2
    H = W = 16
    N = H * W
    dim = 32
    num_heads = 4
    sr_ratio = 2

    key = jax.random.PRNGKey(0)
    k_params, k_x = jax.random.split(key)

    params = init_params(k_params, dim, num_heads, sr_ratio)
    x = jax.random.normal(k_x, (B, N, dim), dtype=jnp.float32)

    fwd = jax.jit(partial(attention_pvtv2_forward,
                          num_heads=num_heads, sr_ratio=sr_ratio),
                  static_argnames=("H", "W"))
    y = fwd(x, H=H, W=W, params=params)
    jax.block_until_ready(y)
    assert y.shape == (B, N, dim), y.shape
    assert jnp.all(jnp.isfinite(y))
    print("KERNEL_OK")
</pallas_src>

<mosaic_0001>
module attributes {stable_mosaic.version = 11 : i64} {
  func.func @_matmul_ln_noacc_kernel(%arg0: i32, %arg1: memref<128x128xbf16, #tpu.memory_space<vmem>>, %arg2: memref<128x32xbf16, #tpu.memory_space<vmem>>, %arg3: memref<1x32xf32, #tpu.memory_space<vmem>>, %arg4: memref<1x32xf32, #tpu.memory_space<vmem>>, %arg5: memref<1x32xf32, #tpu.memory_space<vmem>>, %arg6: memref<128x32xbf16, #tpu.memory_space<vmem>>) attributes {dimension_semantics = [#tpu.dimension_semantics<parallel>], iteration_bounds = array<i64: 1>, scalar_prefetch = 0 : i64, scratch_operands = 0 : i64, tpu.core_type = #tpu.core_type<tc>, window_params = [{transform_indices = @transform_0, window_bounds = array<i64: 128, 128>}, {pipeline_mode = #tpu.pipeline_mode<synchronous>, transform_indices = @transform_1, window_bounds = array<i64: 128, 32>}, {pipeline_mode = #tpu.pipeline_mode<synchronous>, transform_indices = @transform_2, window_bounds = array<i64: 1, 32>}, {pipeline_mode = #tpu.pipeline_mode<synchronous>, transform_indices = @transform_3, window_bounds = array<i64: 1, 32>}, {pipeline_mode = #tpu.pipeline_mode<synchronous>, transform_indices = @transform_4, window_bounds = array<i64: 1, 32>}, {transform_indices = @transform_5, window_bounds = array<i64: 128, 32>}]} {
    %c0 = arith.constant 0 : index
    %c0_0 = arith.constant 0 : index
    %0 = vector.load %arg1[%c0, %c0_0] : memref<128x128xbf16, #tpu.memory_space<vmem>>, vector<128x128xbf16>
    %c0_1 = arith.constant 0 : index
    %c0_2 = arith.constant 0 : index
    %1 = vector.load %arg2[%c0_1, %c0_2] : memref<128x32xbf16, #tpu.memory_space<vmem>>, vector<128x32xbf16>
    %cst = arith.constant dense<0.000000e+00> : vector<128x32xf32>
    %2 = tpu.matmul %0, %1, %cst {dimension_numbers = #tpu.dot_dimension_numbers<[1], [0], [0], [1], [0, 0, 1, 1], [], []>} : vector<128x128xbf16>, vector<128x32xbf16>, vector<128x32xf32> -> vector<128x32xf32>
    %c0_3 = arith.constant 0 : index
    %c0_4 = arith.constant 0 : index
    %3 = vector.load %arg3[%c0_3, %c0_4] : memref<1x32xf32, #tpu.memory_space<vmem>>, vector<1x32xf32>
    %4 = vector.broadcast %3 : vector<1x32xf32> to vector<128x32xf32>
    %5 = arith.addf %2, %4 : vector<128x32xf32>
    %cst_5 = arith.constant dense<0.000000e+00> : vector<128xf32>
    %6 = vector.multi_reduction <add>, %5, %cst_5 [1] : vector<128x32xf32> to vector<128xf32>
    %7 = vector.shape_cast %6 : vector<128xf32> to vector<128x1xf32>
    %cst_6 = arith.constant 3.200000e+01 : f32
    %8 = vector.broadcast %cst_6 : f32 to vector<128x1xf32>
    %9 = arith.divf %7, %8 : vector<128x1xf32>
    %10 = vector.broadcast %9 : vector<128x1xf32> to vector<128x32xf32>
    %11 = arith.subf %5, %10 : vector<128x32xf32>
    %12 = arith.mulf %11, %11 : vector<128x32xf32>
    %cst_7 = arith.constant dense<0.000000e+00> : vector<128xf32>
    %13 = vector.multi_reduction <add>, %12, %cst_7 [1] : vector<128x32xf32> to vector<128xf32>
    %14 = vector.shape_cast %13 : vector<128xf32> to vector<128x1xf32>
    %cst_8 = arith.constant 3.200000e+01 : f32
    %15 = vector.broadcast %cst_8 : f32 to vector<128x1xf32>
    %16 = arith.divf %14, %15 : vector<128x1xf32>
    %17 = vector.broadcast %9 : vector<128x1xf32> to vector<128x32xf32>
    %18 = arith.subf %5, %17 : vector<128x32xf32>
    %cst_9 = arith.constant 9.99999974E-6 : f32
    %19 = vector.broadcast %cst_9 : f32 to vector<128x1xf32>
    %20 = arith.addf %16, %19 : vector<128x1xf32>
    %21 = math.rsqrt %20 : vector<128x1xf32>
    %22 = vector.broadcast %21 : vector<128x1xf32> to vector<128x32xf32>
    %23 = arith.mulf %18, %22 : vector<128x32xf32>
    %c0_10 = arith.constant 0 : index
    %c0_11 = arith.constant 0 : index
    %24 = vector.load %arg4[%c0_10, %c0_11] : memref<1x32xf32, #tpu.memory_space<vmem>>, vector<1x32xf32>
    %25 = vector.broadcast %24 : vector<1x32xf32> to vector<128x32xf32>
    %26 = arith.mulf %23, %25 : vector<128x32xf32>
    %c0_12 = arith.constant 0 : index
    %c0_13 = arith.constant 0 : index
    %27 = vector.load %arg5[%c0_12, %c0_13] : memref<1x32xf32, #tpu.memory_space<vmem>>, vector<1x32xf32>
    %28 = vector.broadcast %27 : vector<1x32xf32> to vector<128x32xf32>
    %29 = arith.addf %26, %28 : vector<128x32xf32>
    %30 = arith.truncf %29 : vector<128x32xf32> to vector<128x32xbf16>
    %c0_14 = arith.constant 0 : index
    %c0_15 = arith.constant 0 : index
    %31 = vector.load %arg6[%c0_14, %c0_15] : memref<128x32xbf16, #tpu.memory_space<vmem>>, vector<128x32xbf16>
    tpu.vector_store %arg6[%c0_14, %c0_15], %30 {strides = array<i32>} : memref<128x32xbf16, #tpu.memory_space<vmem>>, vector<128x32xbf16>,
    return
  }
  func.func @transform_0(%arg0: i32) -> (i32, i32) {
    %c0_i32 = arith.constant 0 : i32
    %c0_i32_0 = arith.constant 0 : i32
    return %arg0, %c0_i32 : i32, i32
  }
  func.func @transform_1(%arg0: i32) -> (i32, i32) {
    %c0_i32 = arith.constant 0 : i32
    %c0_i32_0 = arith.constant 0 : i32
    %c0_i32_1 = arith.constant 0 : i32
    return %c0_i32, %c0_i32_0 : i32, i32
  }
  func.func @transform_2(%arg0: i32) -> (i32, i32) {
    %c0_i32 = arith.constant 0 : i32
    %c0_i32_0 = arith.constant 0 : i32
    %c0_i32_1 = arith.constant 0 : i32
    return %c0_i32, %c0_i32_0 : i32, i32
  }
  func.func @transform_3(%arg0: i32) -> (i32, i32) {
    %c0_i32 = arith.constant 0 : i32
    %c0_i32_0 = arith.constant 0 : i32
    %c0_i32_1 = arith.constant 0 : i32
    return %c0_i32, %c0_i32_0 : i32, i32
  }
  func.func @transform_4(%arg0: i32) -> (i32, i32) {
    %c0_i32 = arith.constant 0 : i32
    %c0_i32_0 = arith.constant 0 : i32
    %c0_i32_1 = arith.constant 0 : i32
    return %c0_i32, %c0_i32_0 : i32, i32
  }
  func.func @transform_5(%arg0: i32) -> (i32, i32) {
    %c0_i32 = arith.constant 0 : i32
    %c0_i32_0 = arith.constant 0 : i32
    return %arg0, %c0_i32 : i32, i32
  }
}

module attributes {stable_mosaic.version = 11 : i64} {
  func.func @_head_linear_kernel(%arg0: i32, %arg1: i32, %arg2: i32, %arg3: memref<1x64x32xbf16, #tpu.memory_space<vmem>>, %arg4: memref<1x32x8xbf16, #tpu.memory_space<vmem>>, %arg5: memref<1x1x8xbf16, #tpu.memory_space<vmem>>, %arg6: memref<1x1x64x8xbf16, #tpu.memory_space<vmem>>) attributes {dimension_semantics = [#tpu.dimension_semantics<parallel>, #tpu.dimension_semantics<parallel>, #tpu.dimension_semantics<parallel>], iteration_bounds = array<i64: 2, 1, 8>, scalar_prefetch = 0 : i64, scratch_operands = 0 : i64, tpu.core_type = #tpu.core_type<tc>, window_params = [{transform_indices = @transform_0, window_bounds = array<i64: 1, 64, 32>}, {transform_indices = @transform_1, window_bounds = array<i64: 1, 32, 8>}, {transform_indices = @transform_2, window_bounds = array<i64: 1, 1, 8>}, {transform_indices = @transform_3, window_bounds = array<i64: 1, 1, 64, 8>}]} {
    %c0 = arith.constant 0 : index
    %c0_0 = arith.constant 0 : index
    %c0_1 = arith.constant 0 : index
    %0 = vector.load %arg3[%c0, %c0_0, %c0_1] : memref<1x64x32xbf16, #tpu.memory_space<vmem>>, vector<1x64x32xbf16>
    %1 = vector.shape_cast %0 : vector<1x64x32xbf16> to vector<64x32xbf16>
    %c0_2 = arith.constant 0 : index
    %c0_3 = arith.constant 0 : index
    %c0_4 = arith.constant 0 : index
    %2 = vector.load %arg4[%c0_2, %c0_3, %c0_4] : memref<1x32x8xbf16, #tpu.memory_space<vmem>>, vector<1x32x8xbf16>
    %3 = vector.shape_cast %2 : vector<1x32x8xbf16> to vector<32x8xbf16>
    %cst = arith.constant dense<0.000000e+00> : vector<64x8xf32>
    %4 = tpu.matmul %1, %3, %cst {dimension_numbers = #tpu.dot_dimension_numbers<[1], [0], [0], [1], [0, 0, 1, 1], [], []>} : vector<64x32xbf16>, vector<32x8xbf16>, vector<64x8xf32> -> vector<64x8xf32>
    %c0_5 = arith.constant 0 : index
    %c0_6 = arith.constant 0 : index
    %c0_7 = arith.constant 0 : index
    %5 = vector.load %arg5[%c0_5, %c0_6, %c0_7] : memref<1x1x8xbf16, #tpu.memory_space<vmem>>, vector<1x1x8xbf16>
    %6 = vector.shape_cast %5 : vector<1x1x8xbf16> to vector<1x8xbf16>
    %7 = arith.extf %6 : vector<1x8xbf16> to vector<1x8xf32>
    %8 = vector.broadcast %7 : vector<1x8xf32> to vector<64x8xf32>
    %9 = arith.addf %4, %8 : vector<64x8xf32>
    %10 = arith.truncf %9 : vector<64x8xf32> to vector<64x8xbf16>
    %c0_8 = arith.constant 0 : index
    %c0_9 = arith.constant 0 : index
    %c0_10 = arith.constant 0 : index
    %c0_11 = arith.constant 0 : index
    %11 = vector.load %arg6[%c0_8, %c0_9, %c0_10, %c0_11] : memref<1x1x64x8xbf16, #tpu.memory_space<vmem>>, vector<1x1x64x8xbf16>
    %12 = vector.shape_cast %11 : vector<1x1x64x8xbf16> to vector<64x8xbf16>
    %13 = vector.shape_cast %10 : vector<64x8xbf16> to vector<1x1x64x8xbf16>
    tpu.vector_store %arg6[%c0_8, %c0_9, %c0_10, %c0_11], %13 {strides = array<i32>} : memref<1x1x64x8xbf16, #tpu.memory_space<vmem>>, vector<1x1x64x8xbf16>,
    return
  }
  func.func @transform_0(%arg0: i32, %arg1: i32, %arg2: i32) -> (i32, i32, i32) {
    %c0_i32 = arith.constant 0 : i32
    %c0_i32_0 = arith.constant 0 : i32
    return %arg0, %arg1, %c0_i32 : i32, i32, i32
  }
  func.func @transform_1(%arg0: i32, %arg1: i32, %arg2: i32) -> (i32, i32, i32) {
    %c0_i32 = arith.constant 0 : i32
    %c0_i32_0 = arith.constant 0 : i32
    %c0_i32_1 = arith.constant 0 : i32
    return %arg2, %c0_i32, %c0_i32_0 : i32, i32, i32
  }
  func.func @transform_2(%arg0: i32, %arg1: i32, %arg2: i32) -> (i32, i32, i32) {
    %c0_i32 = arith.constant 0 : i32
    %c0_i32_0 = arith.constant 0 : i32
    %c0_i32_1 = arith.constant 0 : i32
    return %arg2, %c0_i32, %c0_i32_0 : i32, i32, i32
  }
  func.func @transform_3(%arg0: i32, %arg1: i32, %arg2: i32) -> (i32, i32, i32, i32) {
    %c0_i32 = arith.constant 0 : i32
    %c0_i32_0 = arith.constant 0 : i32
    return %arg0, %arg2, %arg1, %c0_i32 : i32, i32, i32, i32
  }
}

module attributes {stable_mosaic.version = 11 : i64} {
  func.func @_head_linear_kernel(%arg0: i32, %arg1: i32, %arg2: i32, %arg3: memref<1x256x32xbf16, #tpu.memory_space<vmem>>, %arg4: memref<1x32x8xbf16, #tpu.memory_space<vmem>>, %arg5: memref<1x1x8xbf16, #tpu.memory_space<vmem>>, %arg6: memref<1x1x256x8xbf16, #tpu.memory_space<vmem>>) attributes {dimension_semantics = [#tpu.dimension_semantics<parallel>, #tpu.dimension_semantics<parallel>, #tpu.dimension_semantics<parallel>], iteration_bounds = array<i64: 2, 1, 4>, scalar_prefetch = 0 : i64, scratch_operands = 0 : i64, tpu.core_type = #tpu.core_type<tc>, window_params = [{transform_indices = @transform_0, window_bounds = array<i64: 1, 256, 32>}, {transform_indices = @transform_1, window_bounds = array<i64: 1, 32, 8>}, {transform_indices = @transform_2, window_bounds = array<i64: 1, 1, 8>}, {transform_indices = @transform_3, window_bounds = array<i64: 1, 1, 256, 8>}]} {
    %c0 = arith.constant 0 : index
    %c0_0 = arith.constant 0 : index
    %c0_1 = arith.constant 0 : index
    %0 = vector.load %arg3[%c0, %c0_0, %c0_1] : memref<1x256x32xbf16, #tpu.memory_space<vmem>>, vector<1x256x32xbf16>
    %1 = vector.shape_cast %0 : vector<1x256x32xbf16> to vector<256x32xbf16>
    %c0_2 = arith.constant 0 : index
    %c0_3 = arith.constant 0 : index
    %c0_4 = arith.constant 0 : index
    %2 = vector.load %arg4[%c0_2, %c0_3, %c0_4] : memref<1x32x8xbf16, #tpu.memory_space<vmem>>, vector<1x32x8xbf16>
    %3 = vector.shape_cast %2 : vector<1x32x8xbf16> to vector<32x8xbf16>
    %cst = arith.constant dense<0.000000e+00> : vector<256x8xf32>
    %4 = tpu.matmul %1, %3, %cst {dimension_numbers = #tpu.dot_dimension_numbers<[1], [0], [0], [1], [0, 0, 1, 1], [], []>} : vector<256x32xbf16>, vector<32x8xbf16>, vector<256x8xf32> -> vector<256x8xf32>
    %c0_5 = arith.constant 0 : index
    %c0_6 = arith.constant 0 : index
    %c0_7 = arith.constant 0 : index
    %5 = vector.load %arg5[%c0_5, %c0_6, %c0_7] : memref<1x1x8xbf16, #tpu.memory_space<vmem>>, vector<1x1x8xbf16>
    %6 = vector.shape_cast %5 : vector<1x1x8xbf16> to vector<1x8xbf16>
    %7 = arith.extf %6 : vector<1x8xbf16> to vector<1x8xf32>
    %8 = vector.broadcast %7 : vector<1x8xf32> to vector<256x8xf32>
    %9 = arith.addf %4, %8 : vector<256x8xf32>
    %10 = arith.truncf %9 : vector<256x8xf32> to vector<256x8xbf16>
    %c0_8 = arith.constant 0 : index
    %c0_9 = arith.constant 0 : index
    %c0_10 = arith.constant 0 : index
    %c0_11 = arith.constant 0 : index
    %11 = vector.load %arg6[%c0_8, %c0_9, %c0_10, %c0_11] : memref<1x1x256x8xbf16, #tpu.memory_space<vmem>>, vector<1x1x256x8xbf16>
    %12 = vector.shape_cast %11 : vector<1x1x256x8xbf16> to vector<256x8xbf16>
    %13 = vector.shape_cast %10 : vector<256x8xbf16> to vector<1x1x256x8xbf16>
    tpu.vector_store %arg6[%c0_8, %c0_9, %c0_10, %c0_11], %13 {strides = array<i32>} : memref<1x1x256x8xbf16, #tpu.memory_space<vmem>>, vector<1x1x256x8xbf16>,
    return
  }
  func.func @transform_0(%arg0: i32, %arg1: i32, %arg2: i32) -> (i32, i32, i32) {
    %c0_i32 = arith.constant 0 : i32
    %c0_i32_0 = arith.constant 0 : i32
    return %arg0, %arg1, %c0_i32 : i32, i32, i32
  }
  func.func @transform_1(%arg0: i32, %arg1: i32, %arg2: i32) -> (i32, i32, i32) {
    %c0_i32 = arith.constant 0 : i32
    %c0_i32_0 = arith.constant 0 : i32
    %c0_i32_1 = arith.constant 0 : i32
    return %arg2, %c0_i32, %c0_i32_0 : i32, i32, i32
  }
  func.func @transform_2(%arg0: i32, %arg1: i32, %arg2: i32) -> (i32, i32, i32) {
    %c0_i32 = arith.constant 0 : i32
    %c0_i32_0 = arith.constant 0 : i32
    %c0_i32_1 = arith.constant 0 : i32
    return %arg2, %c0_i32, %c0_i32_0 : i32, i32, i32
  }
  func.func @transform_3(%arg0: i32, %arg1: i32, %arg2: i32) -> (i32, i32, i32, i32) {
    %c0_i32 = arith.constant 0 : i32
    %c0_i32_0 = arith.constant 0 : i32
    return %arg0, %arg2, %arg1, %c0_i32 : i32, i32, i32, i32
  }
}

module attributes {stable_mosaic.version = 11 : i64} {
  func.func @_attn_head_kernel(%arg0: i32, %arg1: i32, %arg2: i32, %arg3: memref<1x1x256x8xbf16, #tpu.memory_space<vmem>>, %arg4: memref<1x1x64x8xbf16, #tpu.memory_space<vmem>>, %arg5: memref<1x1x64x8xbf16, #tpu.memory_space<vmem>>, %arg6: memref<1x1x256x8xbf16, #tpu.memory_space<vmem>>) attributes {dimension_semantics = [#tpu.dimension_semantics<parallel>, #tpu.dimension_semantics<parallel>, #tpu.dimension_semantics<parallel>], iteration_bounds = array<i64: 2, 4, 1>, scalar_prefetch = 0 : i64, scratch_operands = 0 : i64, tpu.core_type = #tpu.core_type<tc>, window_params = [{transform_indices = @transform_0, window_bounds = array<i64: 1, 1, 256, 8>}, {transform_indices = @transform_1, window_bounds = array<i64: 1, 1, 64, 8>}, {transform_indices = @transform_2, window_bounds = array<i64: 1, 1, 64, 8>}, {transform_indices = @transform_3, window_bounds = array<i64: 1, 1, 256, 8>}]} {
    %c0 = arith.constant 0 : index
    %c0_0 = arith.constant 0 : index
    %c0_1 = arith.constant 0 : index
    %c0_2 = arith.constant 0 : index
    %0 = vector.load %arg3[%c0, %c0_0, %c0_1, %c0_2] : memref<1x1x256x8xbf16, #tpu.memory_space<vmem>>, vector<1x1x256x8xbf16>
    %1 = vector.shape_cast %0 : vector<1x1x256x8xbf16> to vector<256x8xbf16>
    %c0_3 = arith.constant 0 : index
    %c0_4 = arith.constant 0 : index
    %c0_5 = arith.constant 0 : index
    %c0_6 = arith.constant 0 : index
    %2 = vector.load %arg4[%c0_3, %c0_4, %c0_5, %c0_6] : memref<1x1x64x8xbf16, #tpu.memory_space<vmem>>, vector<1x1x64x8xbf16>
    %3 = vector.shape_cast %2 : vector<1x1x64x8xbf16> to vector<64x8xbf16>
    %c0_7 = arith.constant 0 : index
    %c0_8 = arith.constant 0 : index
    %c0_9 = arith.constant 0 : index
    %c0_10 = arith.constant 0 : index
    %4 = vector.load %arg5[%c0_7, %c0_8, %c0_9, %c0_10] : memref<1x1x64x8xbf16, #tpu.memory_space<vmem>>, vector<1x1x64x8xbf16>
    %5 = vector.shape_cast %4 : vector<1x1x64x8xbf16> to vector<64x8xbf16>
    %cst = arith.constant dense<0.000000e+00> : vector<256x64xf32>
    %6 = tpu.matmul %1, %3, %cst {dimension_numbers = #tpu.dot_dimension_numbers<[1], [1], [0], [0], [0, 0, 1, 0], [], []>} : vector<256x8xbf16>, vector<64x8xbf16>, vector<256x64xf32> -> vector<256x64xf32>
    %cst_11 = arith.constant dense<0xFF800000> : vector<256xf32>
    %7 = vector.multi_reduction <maximumf>, %6, %cst_11 [1] : vector<256x64xf32> to vector<256xf32>
    %8 = vector.shape_cast %7 : vector<256xf32> to vector<256x1xf32>
    %9 = vector.broadcast %8 : vector<256x1xf32> to vector<256x64xf32>
    %10 = arith.subf %6, %9 : vector<256x64xf32>
    %11 = math.exp %10 : vector<256x64xf32>
    %cst_12 = arith.constant dense<0.000000e+00> : vector<256xf32>
    %12 = vector.multi_reduction <add>, %11, %cst_12 [1] : vector<256x64xf32> to vector<256xf32>
    %13 = vector.shape_cast %12 : vector<256xf32> to vector<256x1xf32>
    %14 = tpu.reciprocal %13 {approx = true} : vector<256x1xf32> -> vector<256x1xf32>
    %15 = arith.truncf %11 : vector<256x64xf32> to vector<256x64xbf16>
    %cst_13 = arith.constant dense<0.000000e+00> : vector<256x8xf32>
    %16 = tpu.matmul %15, %5, %cst_13 {dimension_numbers = #tpu.dot_dimension_numbers<[1], [0], [0], [1], [0, 0, 1, 1], [], []>} : vector<256x64xbf16>, vector<64x8xbf16>, vector<256x8xf32> -> vector<256x8xf32>
    %17 = vector.broadcast %14 : vector<256x1xf32> to vector<256x8xf32>
    %18 = arith.mulf %16, %17 : vector<256x8xf32>
    %19 = arith.truncf %18 : vector<256x8xf32> to vector<256x8xbf16>
    %c0_14 = arith.constant 0 : index
    %c0_15 = arith.constant 0 : index
    %c0_16 = arith.constant 0 : index
    %c0_17 = arith.constant 0 : index
    %20 = vector.load %arg6[%c0_14, %c0_15, %c0_16, %c0_17] : memref<1x1x256x8xbf16, #tpu.memory_space<vmem>>, vector<1x1x256x8xbf16>
    %21 = vector.shape_cast %20 : vector<1x1x256x8xbf16> to vector<256x8xbf16>
    %22 = vector.shape_cast %19 : vector<256x8xbf16> to vector<1x1x256x8xbf16>
    tpu.vector_store %arg6[%c0_14, %c0_15, %c0_16, %c0_17], %22 {strides = array<i32>} : memref<1x1x256x8xbf16, #tpu.memory_space<vmem>>, vector<1x1x256x8xbf16>,
    return
  }
  func.func @transform_0(%arg0: i32, %arg1: i32, %arg2: i32) -> (i32, i32, i32, i32) {
    %c0_i32 = arith.constant 0 : i32
    %c0_i32_0 = arith.constant 0 : i32
    return %arg0, %arg1, %arg2, %c0_i32 : i32, i32, i32, i32
  }
  func.func @transform_1(%arg0: i32, %arg1: i32, %arg2: i32) -> (i32, i32, i32, i32) {
    %c0_i32 = arith.constant 0 : i32
    %c0_i32_0 = arith.constant 0 : i32
    %c0_i32_1 = arith.constant 0 : i32
    return %arg0, %arg1, %c0_i32, %c0_i32_0 : i32, i32, i32, i32
  }
  func.func @transform_2(%arg0: i32, %arg1: i32, %arg2: i32) -> (i32, i32, i32, i32) {
    %c4_i32 = arith.constant 4 : i32
    %0 = arith.addi %c4_i32, %arg1 : i32
    %c0_i32 = arith.constant 0 : i32
    %c0_i32_0 = arith.constant 0 : i32
    %c0_i32_1 = arith.constant 0 : i32
    return %arg0, %0, %c0_i32, %c0_i32_0 : i32, i32, i32, i32
  }
  func.func @transform_3(%arg0: i32, %arg1: i32, %arg2: i32) -> (i32, i32, i32, i32) {
    %c0_i32 = arith.constant 0 : i32
    %c0_i32_0 = arith.constant 0 : i32
    return %arg0, %arg1, %arg2, %c0_i32 : i32, i32, i32, i32
  }
}

module attributes {stable_mosaic.version = 11 : i64} {
  func.func @_proj_head_kernel(%arg0: i32, %arg1: i32, %arg2: i32, %arg3: memref<1x1x256x8xbf16, #tpu.memory_space<vmem>>, %arg4: memref<1x8x32xbf16, #tpu.memory_space<vmem>>, %arg5: memref<1x32xf32, #tpu.memory_space<vmem>>, %arg6: memref<1x256x32xf32, #tpu.memory_space<vmem>>) attributes {dimension_semantics = [#tpu.dimension_semantics<parallel>, #tpu.dimension_semantics<parallel>, #tpu.dimension_semantics<arbitrary>], iteration_bounds = array<i64: 2, 1, 4>, scalar_prefetch = 0 : i64, scratch_operands = 0 : i64, tpu.core_type = #tpu.core_type<tc>, window_params = [{transform_indices = @transform_0, window_bounds = array<i64: 1, 1, 256, 8>}, {transform_indices = @transform_1, window_bounds = array<i64: 1, 8, 32>}, {pipeline_mode = #tpu.pipeline_mode<synchronous>, transform_indices = @transform_2, window_bounds = array<i64: 1, 32>}, {transform_indices = @transform_3, window_bounds = array<i64: 1, 256, 32>}]} {
    %c0 = arith.constant 0 : index
    %c0_0 = arith.constant 0 : index
    %c0_1 = arith.constant 0 : index
    %c0_2 = arith.constant 0 : index
    %0 = vector.load %arg3[%c0, %c0_0, %c0_1, %c0_2] : memref<1x1x256x8xbf16, #tpu.memory_space<vmem>>, vector<1x1x256x8xbf16>
    %1 = vector.shape_cast %0 : vector<1x1x256x8xbf16> to vector<256x8xbf16>
    %c0_3 = arith.constant 0 : index
    %c0_4 = arith.constant 0 : index
    %c0_5 = arith.constant 0 : index
    %2 = vector.load %arg4[%c0_3, %c0_4, %c0_5] : memref<1x8x32xbf16, #tpu.memory_space<vmem>>, vector<1x8x32xbf16>
    %3 = vector.shape_cast %2 : vector<1x8x32xbf16> to vector<8x32xbf16>
    %cst = arith.constant dense<0.000000e+00> : vector<256x32xf32>
    %4 = tpu.matmul %1, %3, %cst {dimension_numbers = #tpu.dot_dimension_numbers<[1], [0], [0], [1], [0, 0, 1, 1], [], []>} : vector<256x8xbf16>, vector<8x32xbf16>, vector<256x32xf32> -> vector<256x32xf32>
    %c0_i32 = arith.constant 0 : i32
    %5 = arith.cmpi eq, %arg2, %c0_i32 : i32
    %6 = arith.extui %5 : i1 to i32
    %c0_i32_6 = arith.constant 0 : i32
    %7 = arith.cmpi ne, %6, %c0_i32_6 : i32
    scf.if %7 {
      %c0_9 = arith.constant 0 : index
      %c0_10 = arith.constant 0 : index
      %11 = vector.load %arg5[%c0_9, %c0_10] : memref<1x32xf32, #tpu.memory_space<vmem>>, vector<1x32xf32>
      %12 = vector.broadcast %11 : vector<1x32xf32> to vector<256x32xf32>
      %13 = arith.addf %4, %12 : vector<256x32xf32>
      %c0_11 = arith.constant 0 : index
      %c0_12 = arith.constant 0 : index
      %c0_13 = arith.constant 0 : index
      %14 = vector.load %arg6[%c0_11, %c0_12, %c0_13] : memref<1x256x32xf32, #tpu.memory_space<vmem>>, vector<1x256x32xf32>
      %15 = vector.shape_cast %14 : vector<1x256x32xf32> to vector<256x32xf32>
      %16 = vector.shape_cast %13 : vector<256x32xf32> to vector<1x256x32xf32>
      tpu.vector_store %arg6[%c0_11, %c0_12, %c0_13], %16 {strides = array<i32>} : memref<1x256x32xf32, #tpu.memory_space<vmem>>, vector<1x256x32xf32>,
    } else {
    }
    %c0_i32_7 = arith.constant 0 : i32
    %8 = arith.cmpi sgt, %arg2, %c0_i32_7 : i32
    %9 = arith.extui %8 : i1 to i32
    %c0_i32_8 = arith.constant 0 : i32
    %10 = arith.cmpi ne, %9, %c0_i32_8 : i32
    scf.if %10 {
      %c0_9 = arith.constant 0 : index
      %c0_10 = arith.constant 0 : index
      %c0_11 = arith.constant 0 : index
      %11 = vector.load %arg6[%c0_9, %c0_10, %c0_11] : memref<1x256x32xf32, #tpu.memory_space<vmem>>, vector<1x256x32xf32>
      %12 = vector.shape_cast %11 : vector<1x256x32xf32> to vector<256x32xf32>
      %13 = arith.addf %12, %4 : vector<256x32xf32>
      %c0_12 = arith.constant 0 : index
      %c0_13 = arith.constant 0 : index
      %c0_14 = arith.constant 0 : index
      %14 = vector.load %arg6[%c0_12, %c0_13, %c0_14] : memref<1x256x32xf32, #tpu.memory_space<vmem>>, vector<1x256x32xf32>
      %15 = vector.shape_cast %14 : vector<1x256x32xf32> to vector<256x32xf32>
      %16 = vector.shape_cast %13 : vector<256x32xf32> to vector<1x256x32xf32>
      tpu.vector_store %arg6[%c0_12, %c0_13, %c0_14], %16 {strides = array<i32>} : memref<1x256x32xf32, #tpu.memory_space<vmem>>, vector<1x256x32xf32>,
    } else {
    }
    return
  }
  func.func @transform_0(%arg0: i32, %arg1: i32, %arg2: i32) -> (i32, i32, i32, i32) {
    %c0_i32 = arith.constant 0 : i32
    %c0_i32_0 = arith.constant 0 : i32
    return %arg0, %arg2, %arg1, %c0_i32 : i32, i32, i32, i32
  }
  func.func @transform_1(%arg0: i32, %arg1: i32, %arg2: i32) -> (i32, i32, i32) {
    %c0_i32 = arith.constant 0 : i32
    %c0_i32_0 = arith.constant 0 : i32
    %c0_i32_1 = arith.constant 0 : i32
    return %arg2, %c0_i32, %c0_i32_0 : i32, i32, i32
  }
  func.func @transform_2(%arg0: i32, %arg1: i32, %arg2: i32) -> (i32, i32) {
    %c0_i32 = arith.constant 0 : i32
    %c0_i32_0 = arith.constant 0 : i32
    %c0_i32_1 = arith.constant 0 : i32
    return %c0_i32, %c0_i32_0 : i32, i32
  }
  func.func @transform_3(%arg0: i32, %arg1: i32, %arg2: i32) -> (i32, i32, i32) {
    %c0_i32 = arith.constant 0 : i32
    %c0_i32_0 = arith.constant 0 : i32
    return %arg0, %arg1, %c0_i32 : i32, i32, i32
  }
}

</mosaic_0001>

<bundles_post_ra>
// kernel: attention_pvtv2_forward.7
= control target key start
LH: loop header
LB: loop body
LE: loop exit
PB: predicated region body
PF: predicated region fallthrough
CT: control target
= control target key end

     0   :  { %s731_s12 = smov 0   ;;  %s733_s13 = smov 0   ;;  %s804_s0 = inlined_call_operand.vmem [shape: bf16[2,64,32], index: 0, kind: input, shape index: {}]   ;;  %s805_s1 = inlined_call_operand.vmem [shape: bf16[8,32,8], index: 1, kind: input, shape index: {}]   ;;  %s806_s2 = inlined_call_operand.vmem [shape: bf16[8,1,8], index: 2, kind: input, shape index: {}]   ;;  %s807_s3 = inlined_call_operand.vmem [shape: bf16[2,8,64,8], index: 3, kind: output, shape index: {}]  }
   0x1   :  { %s735_s14 = smov 0   ;;  %s737_s15 = smov 0  }
   0x2   :  { %s739_s16 = smov 0  }
   0x3 LB: > { %s25_s17 = sadd.s32 1, %s701_s14  ;;  %s32_s18 = sadd.s32 1, %s705_s15  ;;  %s709_s16 = sphi %s739_s16, %s13_s16   ;;  %s705_s15 = sphi %s737_s15, %s811_s15   ;;  %s701_s14 = sphi %s735_s14, %s810_s14   ;;  %s697_s13 = sphi %s733_s13, %s809_s13   ;;  %s693_s12 = sphi %s731_s12, %s808_s12  }
   0x4   : > { %p26_p0 = scmp.ge.s32.totalorder %s25_s17, 8  ;;  %p565_p1 = scmp.ge.s32.totalorder %s709_s16, 1 }
   0x5   : > { %p185_p2 = scmp.lt.s32.totalorder %s709_s16, 17 }
   0x6   : > { %s813_s17 = smov (%p26_p0, %s25_s17), 0  ;;  %s815_s18 = smov (!%p26_p0, %s32_s18), %s705_s15 }
   0x7   : > { %p186_p3 = pnand %p565_p1, %p185_p2  ;;  %p34_p4 = scmp.ge.s32.totalorder %s815_s18, 2 }
   0x8   : > { %p239_p5 = scmp.lt.s32.totalorder (!%p186_p3), %s693_s12, 7  ;;  %p230_p6 = scmp.lt.s32.totalorder (!%p186_p3), %s697_s13, 1  ;;  %vm312_vm0 = vcmask (!%p186_p3), 261120   ;;  %v276_v6 = vlaneseq (!%p186_p3)  ;;  %vm422_vm1 = vcmask (!%p186_p3), 60416  }
   0x9   : > { %s817_s18 = smov (%p34_p4, %s815_s18), 0  ;;  %189 = sbr.rel (%p186_p3) target bundleno = 248 (0xf8), region = 32 }
   0xa   : > { %v277_v7 = vshrl.u32 (!%p186_p3), %v276_v6, 7 }
   0xc   : > { %v278_v10 = vsub.s32 (!%p186_p3), 0, %v277_v7 }
  0x10   : > { %s819_s12 = smov (!%p239_p5, %s693_s12), 7  ;;  %s821_s13 = smov (!%p230_p6, %s697_s13), 1 }
  0x11   : > { %s594_s19 = sshll.u32 %s819_s12, 4  ;;  %s570_s23 = sshll.u32 %s819_s12, 3 }
  0x12   : > { %s243_s22 = scalar_lea.vmem %s805_s1, %s594_s19  ;;  %s593_s24 = sshll.u32 %s821_s13, 5 }
  0x13   : > { %v665_v0 = vld [vmem:[%s243_s22] sm:$0xff]   ;;  %v666_v1 = vld [vmem:[%s243_s22 + $0x8] sm:$0xff]   ;;  %s237_s27 = scalar_lea.vmem %s804_s0, %s593_s24  ;;  %s571_s28 = sshll.u32 %s821_s13, 6 }
  0x14   : > { %609 = vmatprep.subr.bf16.mxu0 %v665_v0  ;;  %621 = vmatprep.subr.bf16.mxu1 %v665_v0  ;;  %v667_v2 = vld [vmem:[%s237_s27] sm:$0xff]   ;;  %s771_s29 = sadd.s32 %s571_s28, %s570_s23  ;;  %v668_v3 = vld [vmem:[%s237_s27 + $0x10] sm:$0xff]   ;;  %v669_v4 = vld [vmem:[%s237_s27 + $0x8] sm:$0xff]   ;;  %s246_s5 = scalar_lea.vmem %s806_s2, %s819_s12 }
  0x15   : > { %610 = vmatpush3.bf16.msra.mxu0 %v665_v0  ;;  %623 = vmatpush3.bf16.msra.mxu1 %v665_v0  ;;  %v670_v5 = vld [vmem:[%s237_s27 + $0x18] sm:$0xff]   ;;  %v274_v8 = vld [vmem:[%s246_s5] sm:$0x1]  ;;  %s572_s6 = sshll.u32 %s771_s29, 2 }
  0x16   : > { %611 = vmatprep.subr.bf16.mxu0 %v666_v1  ;;  %622 = vmatprep.subr.bf16.mxu1 %v666_v1  ;;  %v275_v9 = vunpack.c.l.bf16 %v274_v8  ;;  %s259_s9 = scalar_lea.vmem %s807_s3, %s572_s6 }
  0x17   : > { %613 = vmatprep.mubr.msk.bf16.mxu0 %vm312_vm0, %v667_v2  ;;  %617 = vmatprep.mubr.msk.bf16.mxu1 %vm312_vm0, %v668_v3 }
  0x18   : > { %v279_v11 = vrot.slane %v275_v9, %v278_v10 }
  0x19   : > { %612 = vmatpush3.bf16.msra.mxu0 %v666_v1  ;;  %624 = vmatpush3.bf16.msra.mxu1 %v666_v1 }
  0x1c   : > { %614 = vmatmul.mubr.msk.bf16.vlgmr.msra.gmra.mrb[0].mxu0 %vm312_vm0, %v669_v4  ;;  %618 = vmatmul.mubr.msk.bf16.vlgmr.msra.gmra.mrb[0].mxu1 %vm312_vm0, %v670_v5 }
  0xef   : > { %v615_v12 = vpop.f32.mrb[0].mxu0  ;;  %v619_v13 = vpop.f32.mrb[0].mxu1 }
  0xf0   : > { %v368_v14 = vadd.f32 %v615_v12, %v279_v11  ;;  %v384_v15 = vadd.f32 %v619_v13, %v279_v11  ;;  %v359_v16 = vpop.f32.mrb[1].mxu0  ;;  %v375_v17 = vpop.f32.mrb[1].mxu1 }
  0xf1   : > { %v360_v18 = vadd.f32 %v359_v16, %v279_v11  ;;  %v376_v19 = vadd.f32 %v375_v17, %v279_v11  ;;  %v616_v20 = vpop.f32.mrb[2].mxu0  ;;  %v620_v21 = vpop.f32.mrb[2].mxu1 }
  0xf2   : > { %v597_v22 = vpack.c.bf16 %v368_v14, %v368_v14  ;;  %v601_v23 = vpack.c.bf16 %v384_v15, %v384_v15  ;;  %v371_v24 = vadd.f32 %v616_v20, %v279_v11  ;;  %v387_v25 = vadd.f32 %v620_v21, %v279_v11  ;;  %v362_v26 = vpop.f32.mrb[3].mxu0  ;;  %v378_v27 = vpop.f32.mrb[3].mxu1 }
  0xf3   : > { %v595_v28 = vpack.c.bf16 %v360_v18, %v360_v18  ;;  %v599_v29 = vpack.c.bf16 %v376_v19, %v376_v19  ;;  %v363_v30 = vadd.f32 %v362_v26, %v279_v11  ;;  %v379_v31 = vadd.f32 %v378_v27, %v279_v11 }
  0xf4   : > { %425 = vst.msk [vmem:[%s259_s9 + $0x8] sm:$0xf] %vm422_vm1, %v597_v22  ;;  %429 = vst.msk [vmem:[%s259_s9 + $0x18] sm:$0xf] %vm422_vm1, %v601_v23  ;;  %v598_v32 = vpack.c.bf16 %v371_v24, %v371_v24  ;;  %v602_v33 = vpack.c.bf16 %v387_v25, %v387_v25 }
  0xf5   : > { %423 = vst.msk [vmem:[%s259_s9] sm:$0xf] %vm422_vm1, %v595_v28  ;;  %427 = vst.msk [vmem:[%s259_s9 + $0x10] sm:$0xf] %vm422_vm1, %v599_v29  ;;  %v596_v34 = vpack.c.bf16 %v363_v30, %v363_v30  ;;  %v600_v35 = vpack.c.bf16 %v379_v31, %v379_v31 }
  0xf6   : > { %426 = vst.msk [vmem:[%s259_s9 + $0xc] sm:$0xf] %vm422_vm1, %v598_v32  ;;  %430 = vst.msk [vmem:[%s259_s9 + $0x1c] sm:$0xf] %vm422_vm1, %v602_v33 }
  0xf7   : > { %424 = vst.msk [vmem:[%s259_s9 + $0x4] sm:$0xf] %vm422_vm1, %v596_v34  ;;  %428 = vst.msk [vmem:[%s259_s9 + $0x14] sm:$0xf] %vm422_vm1, %v600_v35 }
  0xf8 PF: > { %s13_s16 = sadd.s32 1, %s709_s16   ;;  %s808_s12 = smov %s701_s14 }
  0xf9   : > { %p10_p7 = scmp.ge.s32.totalorder %s13_s16, 18   ;;  %s809_s13 = smov %s705_s15 }
  0xfa   : > { %s810_s14 = smov %s813_s17  ;;  %s811_s15 = smov %s817_s18 }
  0xfb   :  { %12 = sbr.rel (!%p10_p7) target bundleno = 3 (0x3), region = 68 }

// kernel: attention_pvtv2_forward.6
= control target key start
LH: loop header
LB: loop body
LE: loop exit
PB: predicated region body
PF: predicated region fallthrough
CT: control target
= control target key end

     0   :  { %vm253_vm0 = vcmask 261120   ;;  %vm573_vm1 = vcmask 257024   ;;  %s1120_s1 = inlined_call_operand.vmem [shape: bf16[128,32], index: 1, kind: input, shape index: {}]   ;;  %s1121_s0 = inlined_call_operand.vmem [shape: bf16[128,128], index: 0, kind: input, shape index: {}]   ;;  %s1122_s2 = inlined_call_operand.vmem [shape: f32[1,32], index: 2, kind: input, shape index: {}]   ;;  %s1123_s3 = inlined_call_operand.vmem [shape: f32[1,32], index: 3, kind: input, shape index: {}]   ;;  %s1124_s4 = inlined_call_operand.vmem [shape: f32[1,32], index: 4, kind: input, shape index: {}]   ;;  %s1125_s5 = inlined_call_operand.vmem [shape: bf16[128,32], index: 5, kind: output, shape index: {}]  }
   0x1   :  { %v709_v0 = vld [vmem:[%s1120_s1] sm:$0xff]   ;;  %v710_v1 = vld [vmem:[%s1120_s1 + $0x8] sm:$0xff]   ;;  %v711_v2 = vld [vmem:[%s1120_s1 + $0x10] sm:$0xff]  }
   0x2   :  { %661 = vmatprep.subr.bf16.mxu0 %v709_v0  ;;  %693 = vmatprep.subr.bf16.mxu1 %v709_v0  ;;  %v712_v3 = vld [vmem:[%s1120_s1 + $0x18] sm:$0xff]   ;;  %v717_v4 = vld [vmem:[%s1121_s0] sm:$0xff]   ;;  %v714_v7 = vld [vmem:[%s1120_s1 + $0x28] sm:$0xff]  }
   0x3   :  { %662 = vmatpush3.bf16.msra.mxu0 %v709_v0  ;;  %701 = vmatpush3.bf16.msra.mxu1 %v709_v0  ;;  %v718_v5 = vld [vmem:[%s1121_s0 + $0x20] sm:$0xff]   ;;  %v715_v8 = vld [vmem:[%s1120_s1 + $0x30] sm:$0xff]   ;;  %v716_v9 = vld [vmem:[%s1120_s1 + $0x38] sm:$0xff]  }
   0x4   :  { %663 = vmatprep.subr.bf16.mxu0 %v710_v1  ;;  %694 = vmatprep.subr.bf16.mxu1 %v710_v1  ;;  %v713_v6 = vld [vmem:[%s1120_s1 + $0x20] sm:$0xff]   ;;  %v719_v10 = vld [vmem:[%s1121_s0 + $0x8] sm:$0xff]   ;;  %v721_v12 = vld [vmem:[%s1121_s0 + $0x10] sm:$0xff]  }
   0x5   :  { %677 = vmatprep.mubr.bf16.mxu0 %v717_v4  ;;  %685 = vmatprep.mubr.bf16.mxu1 %v718_v5  ;;  %v720_v11 = vld [vmem:[%s1121_s0 + $0x28] sm:$0xff]   ;;  %v723_v13 = vld [vmem:[%s1121_s0 + $0x30] sm:$0xff]   ;;  %v722_v14 = vld [vmem:[%s1121_s0 + $0x18] sm:$0xff]  }
   0x6   :  { %v724_v15 = vld [vmem:[%s1121_s0 + $0x38] sm:$0xff]   ;;  %v594_v16 = vld [vmem:[%s1122_s2] ss:$0 sm:$0xff] }
   0x7   :  { %664 = vmatpush3.bf16.msra.mxu0 %v710_v1  ;;  %702 = vmatpush3.bf16.msra.mxu1 %v710_v1 }
   0x8   :  { %665 = vmatprep.subr.bf16.mxu0 %v711_v2  ;;  %695 = vmatprep.subr.bf16.mxu1 %v711_v2 }
   0xb   :  { %666 = vmatpush3.bf16.msra.mxu0 %v711_v2  ;;  %703 = vmatpush3.bf16.msra.mxu1 %v711_v2 }
   0xc   :  { %667 = vmatprep.subr.bf16.mxu0 %v712_v3  ;;  %696 = vmatprep.subr.bf16.mxu1 %v712_v3 }
   0xf   :  { %668 = vmatpush3.bf16.msra.mxu0 %v712_v3  ;;  %704 = vmatpush3.bf16.msra.mxu1 %v712_v3 }
  0x10   :  { %669 = vmatprep.subr.bf16.mxu0 %v713_v6  ;;  %697 = vmatprep.subr.bf16.mxu1 %v713_v6 }
  0x13   :  { %670 = vmatpush3.bf16.msra.mxu0 %v713_v6  ;;  %705 = vmatpush3.bf16.msra.mxu1 %v713_v6 }
  0x14   :  { %671 = vmatprep.subr.bf16.mxu0 %v714_v7  ;;  %698 = vmatprep.subr.bf16.mxu1 %v714_v7 }
  0x17   :  { %672 = vmatpush3.bf16.msra.mxu0 %v714_v7  ;;  %706 = vmatpush3.bf16.msra.mxu1 %v714_v7 }
  0x18   :  { %673 = vmatprep.subr.bf16.mxu0 %v715_v8  ;;  %699 = vmatprep.subr.bf16.mxu1 %v715_v8 }
  0x1b   :  { %674 = vmatpush3.bf16.msra.mxu0 %v715_v8  ;;  %707 = vmatpush3.bf16.msra.mxu1 %v715_v8 }
  0x1c   :  { %675 = vmatprep.subr.bf16.mxu0 %v716_v9  ;;  %700 = vmatprep.subr.bf16.mxu1 %v716_v9 }
  0x1f   :  { %676 = vmatpush3.bf16.msra.mxu0 %v716_v9  ;;  %708 = vmatpush3.bf16.msra.mxu1 %v716_v9 }
  0x22   :  { %678 = vmatmul.mubr.bf16.vlgmr.msra.gmra.mrb[0].mxu0 %v719_v10  ;;  %686 = vmatmul.mubr.bf16.vlgmr.msra.gmra.mrb[0].mxu1 %v720_v11 }
  0x23   :  { %681 = vmatprep.mubr.bf16.mxu0 %v721_v12  ;;  %689 = vmatprep.mubr.bf16.mxu1 %v723_v13 }
  0x2a   :  { %682 = vmatmul.mubr.bf16.gmra.mrb[4].mxu0 %v722_v14  ;;  %690 = vmatmul.mubr.bf16.gmra.mrb[4].mxu1 %v724_v15 }
  0xf5   :  { %v679_v17 = vpop.f32.mrb[0].mxu0  ;;  %v687_v18 = vpop.f32.mrb[0].mxu1 }
  0xf6   :  { %v838_v19 = vadd.f32 %v679_v17, %v594_v16  ;;  %v840_v20 = vadd.f32 %v687_v18, %v594_v16  ;;  %v190_v21 = vpop.f32.mrb[1].mxu0  ;;  %v222_v22 = vpop.f32.mrb[1].mxu1 }
  0xf7   :  { %v680_v23 = vpop.f32.mrb[2].mxu0  ;;  %v688_v24 = vpop.f32.mrb[2].mxu1  ;;  %v842_v25 = vadd.f32 %v594_v16, %v190_v21  ;;  %v850_v31 = vadd.f32 %v594_v16, %v222_v22 }
  0xf8   :  { %v844_v26 = vadd.f32 %v680_v23, %v594_v16  ;;  %v193_v27 = vpop.f32.mrb[3].mxu0  ;;  %v225_v28 = vpop.f32.mrb[3].mxu1  ;;  %v284_v29 = vsel %vm253_vm0, %v840_v20, 0.0  ;;  %v260_v30 = vsel %vm253_vm0, %v838_v19, 0.0  ;;  %v852_v32 = vadd.f32 %v688_v24, %v594_v16 }
  0xf9   :  { %285 = vadd.xlane.f32.xlu0 %v284_v29  ;;  %261 = vadd.xlane.f32.xlu1 %v260_v30  ;;  %v254_v34 = vsel %vm253_vm0, %v842_v25, 0.0  ;;  %v858_v41 = vadd.f32 %v594_v16, %v193_v27  ;;  %v860_v42 = vadd.f32 %v594_v16, %v225_v28  ;;  %v278_v44 = vsel %vm253_vm0, %v850_v31, 0.0 }
  0xfa   :  { %v263_v33 = vsel %vm253_vm0, %v844_v26, 0.0  ;;  %v287_v43 = vsel %vm253_vm0, %v852_v32, 0.0 }
  0xfb   :  { %v281_v49 = vsel %vm253_vm0, %v860_v42, 0.0  ;;  %v257_v50 = vsel %vm253_vm0, %v858_v41, 0.0 }
  0xfd   :  { %264 = vadd.xlane.f32.xlu1 %v263_v33  ;;  %255 = vadd.xlane.f32.xlu0 %v254_v34  ;;  %v683_v35 = vpop.f32.mrb[4].mxu0  ;;  %v691_v36 = vpop.f32.mrb[4].mxu1 }
  0xfe   :  { %v206_v37 = vpop.f32.mrb[5].mxu0  ;;  %v238_v38 = vpop.f32.mrb[5].mxu1  ;;  %v866_v47 = vadd.f32 %v683_v35, %v594_v16  ;;  %v894_v61 = vadd.f32 %v691_v36, %v594_v16 }
  0xff   :  { %v684_v39 = vpop.f32.mrb[6].mxu0  ;;  %v692_v40 = vpop.f32.mrb[6].mxu1  ;;  %v878_v53 = vadd.f32 %v594_v16, %v206_v37  ;;  %v882_v55 = vadd.f32 %v594_v16, %v238_v38 }
 0x100   :  { %v209_v45 = vpop.f32.mrb[7].mxu0  ;;  %v241_v46 = vpop.f32.mrb[7].mxu1  ;;  %v868_v48 = vadd.f32 %v684_v39, %v594_v16  ;;  %v272_v52 = vsel %vm253_vm0, %v866_v47, 0.0  ;;  %v896_v62 = vadd.f32 %v692_v40, %v594_v16  ;;  %v296_v0 = vsel %vm253_vm0, %v894_v61, 0.0 }
 0x101   :  { %288 = vadd.xlane.f32.xlu1 %v287_v43  ;;  %279 = vadd.xlane.f32.xlu0 %v278_v44  ;;  %v880_v54 = vadd.f32 %v594_v16, %v209_v45  ;;  %v884_v56 = vadd.f32 %v594_v16, %v241_v46  ;;  %v266_v58 = vsel %vm253_vm0, %v878_v53, 0.0  ;;  %v290_v60 = vsel %vm253_vm0, %v882_v55, 0.0 }
 0x102   :  { %v275_v51 = vsel %vm253_vm0, %v868_v48, 0.0  ;;  %v299_v63 = vsel %vm253_vm0, %v896_v62, 0.0 }
 0x103   :  { %v269_v57 = vsel %vm253_vm0, %v880_v54, 0.0  ;;  %v293_v59 = vsel %vm253_vm0, %v884_v56, 0.0 }
 0x105   :  { %282 = vadd.xlane.f32.xlu1 %v281_v49  ;;  %258 = vadd.xlane.f32.xlu0 %v257_v50 }
 0x109   :  { %276 = vadd.xlane.f32.xlu1 %v275_v51  ;;  %273 = vadd.xlane.f32.xlu0 %v272_v52 }
 0x10d   :  { %270 = vadd.xlane.f32.xlu1 %v269_v57  ;;  %267 = vadd.xlane.f32.xlu0 %v266_v58 }
 0x111   :  { %294 = vadd.xlane.f32.xlu1 %v293_v59  ;;  %291 = vadd.xlane.f32.xlu0 %v290_v60 }
 0x115   :  { %300 = vadd.xlane.f32.xlu1 %v299_v63  ;;  %297 = vadd.xlane.f32.xlu0 %v296_v0 }
 0x186   :  { %v286_v1 = vpop.xlane.xlu0 %285  ;;  %v262_v2 = vpop.xlane.xlu1 %261 }
 0x187   :  { %v313_v3 = vmul.f32 0.03125, %v286_v1  ;;  %v305_v4 = vmul.f32 0.03125, %v262_v2 }
 0x189   :  { %v903_v5 = vsub.f32 %v840_v20, %v313_v3  ;;  %v906_v6 = vsub.f32 %v838_v19, %v305_v4 }
 0x18a   :  { %v265_v7 = vpop.xlane.xlu1 %264  ;;  %v256_v8 = vpop.xlane.xlu0 %255 }
 0x18b   :  { %v306_v9 = vmul.f32 0.03125, %v265_v7  ;;  %v303_v10 = vmul.f32 0.03125, %v256_v8  ;;  %v337_v11 = vmul.f32 %v906_v6, %v906_v6  ;;  %v345_v15 = vmul.f32 %v903_v5, %v903_v5 }
 0x18d   :  { %v911_v12 = vsub.f32 %v844_v26, %v306_v9  ;;  %v914_v13 = vsub.f32 %v842_v25, %v303_v10  ;;  %v357_v14 = vsel %vm253_vm0, %v337_v11, 0.0  ;;  %v381_v25 = vsel %vm253_vm0, %v345_v15, 0.0 }
 0x18e   :  { %v289_v16 = vpop.xlane.xlu1 %288  ;;  %358 = vadd.xlane.f32.xlu0 %v357_v14  ;;  %v280_v17 = vpop.xlane.xlu0 %279 }
 0x18f   :  { %v314_v18 = vmul.f32 0.03125, %v289_v16  ;;  %v311_v19 = vmul.f32 0.03125, %v280_v17  ;;  %v338_v20 = vmul.f32 %v911_v12, %v911_v12  ;;  %v335_v21 = vmul.f32 %v914_v13, %v914_v13 }
 0x191   :  { %v924_v22 = vsub.f32 %v852_v32, %v314_v18  ;;  %v927_v23 = vsub.f32 %v850_v31, %v311_v19  ;;  %v360_v24 = vsel %vm253_vm0, %v338_v20, 0.0  ;;  %v351_v33 = vsel %vm253_vm0, %v335_v21, 0.0 }
 0x192   :  { %v283_v26 = vpop.xlane.xlu1 %282  ;;  %361 = vadd.xlane.f32.xlu1 %v360_v24  ;;  %382 = vadd.xlane.f32.xlu0 %v381_v25  ;;  %v259_v27 = vpop.xlane.xlu0 %258 }
 0x193   :  { %v312_v28 = vmul.f32 0.03125, %v283_v26  ;;  %v304_v29 = vmul.f32 0.03125, %v259_v27  ;;  %v346_v30 = vmul.f32 %v924_v22, %v924_v22  ;;  %v343_v35 = vmul.f32 %v927_v23, %v927_v23 }
 0x195   :  { %v935_v32 = vsub.f32 %v860_v42, %v312_v28  ;;  %v938_v31 = vsub.f32 %v858_v41, %v304_v29  ;;  %v384_v34 = vsel %vm253_vm0, %v346_v30, 0.0  ;;  %v375_v44 = vsel %vm253_vm0, %v343_v35, 0.0 }
 0x196   :  { %v277_v36 = vpop.xlane.xlu1 %276  ;;  %385 = vadd.xlane.f32.xlu1 %v384_v34  ;;  %352 = vadd.xlane.f32.xlu0 %v351_v33  ;;  %v274_v37 = vpop.xlane.xlu0 %273 }
 0x197   :  { %v310_v38 = vmul.f32 0.03125, %v277_v36  ;;  %v309_v39 = vmul.f32 0.03125, %v274_v37  ;;  %v336_v40 = vmul.f32 %v938_v31, %v938_v31  ;;  %v344_v42 = vmul.f32 %v935_v32, %v935_v32 }
 0x199   :  { %v948_v41 = vsub.f32 %v868_v48, %v310_v38  ;;  %v951_v43 = vsub.f32 %v866_v47, %v309_v39  ;;  %v354_v45 = vsel %vm253_vm0, %v336_v40, 0.0  ;;  %v378_v57 = vsel %vm253_vm0, %v344_v42, 0.0 }
 0x19a   :  { %v271_v46 = vpop.xlane.xlu1 %270  ;;  %376 = vadd.xlane.f32.xlu0 %v375_v44  ;;  %355 = vadd.xlane.f32.xlu1 %v354_v45  ;;  %v268_v49 = vpop.xlane.xlu0 %267 }
 0x19b   :  { %v308_v50 = vmul.f32 0.03125, %v271_v46  ;;  %v307_v51 = vmul.f32 0.03125, %v268_v49  ;;  %v341_v52 = vmul.f32 %v951_v43, %v951_v43  ;;  %v342_v59 = vmul.f32 %v948_v41, %v948_v41  ;;  %v1001_v49 = vld [vmem:[%s1123_s3] ss:$0 sm:$0xff] }
 0x19d   :  { %v959_v48 = vsub.f32 %v880_v54, %v308_v50  ;;  %v962_v47 = vsub.f32 %v878_v53, %v307_v51  ;;  %v369_v58 = vsel %vm253_vm0, %v341_v52, 0.0  ;;  %v372_v4 = vsel %vm253_vm0, %v342_v59, 0.0  ;;  %v1007_v59 = vld [vmem:[%s1124_s4] ss:$0 sm:$0xff] }
 0x19e   :  { %v295_v60 = vpop.xlane.xlu1 %294  ;;  %379 = vadd.xlane.f32.xlu1 %v378_v57  ;;  %370 = vadd.xlane.f32.xlu0 %v369_v58  ;;  %v292_v63 = vpop.xlane.xlu0 %291 }
 0x19f   :  { %v316_v0 = vmul.f32 0.03125, %v295_v60  ;;  %v315_v1 = vmul.f32 0.03125, %v292_v63  ;;  %v339_v2 = vmul.f32 %v962_v47, %v962_v47  ;;  %v340_v54 = vmul.f32 %v959_v48, %v959_v48 }
 0x1a1   :  { %v972_v53 = vsub.f32 %v884_v56, %v316_v0  ;;  %v975_v3 = vsub.f32 %v882_v55, %v315_v1  ;;  %v363_v7 = vsel %vm253_vm0, %v339_v2, 0.0  ;;  %v366_v15 = vsel %vm253_vm0, %v340_v54, 0.0 }
 0x1a2   :  { %v301_v8 = vpop.xlane.xlu1 %300  ;;  %373 = vadd.xlane.f32.xlu1 %v372_v4  ;;  %364 = vadd.xlane.f32.xlu0 %v363_v7  ;;  %v298_v9 = vpop.xlane.xlu0 %297 }
 0x1a3   :  { %v318_v10 = vmul.f32 0.03125, %v301_v8  ;;  %v317_v11 = vmul.f32 0.03125, %v298_v9  ;;  %v347_v14 = vmul.f32 %v975_v3, %v975_v3  ;;  %v348_v17 = vmul.f32 %v972_v53, %v972_v53 }
 0x1a5   :  { %v983_v56 = vsub.f32 %v896_v62, %v318_v10  ;;  %v986_v55 = vsub.f32 %v894_v61, %v317_v11  ;;  %v387_v16 = vsel %vm253_vm0, %v347_v14, 0.0  ;;  %v390_v19 = vsel %vm253_vm0, %v348_v17, 0.0 }
 0x1a6   :  { %367 = vadd.xlane.f32.xlu1 %v366_v15  ;;  %388 = vadd.xlane.f32.xlu0 %v387_v16 }
 0x1a7   :  { %v349_v18 = vmul.f32 %v986_v55, %v986_v55  ;;  %v350_v62 = vmul.f32 %v983_v56, %v983_v56 }
 0x1a9   :  { %v393_v20 = vsel %vm253_vm0, %v349_v18, 0.0  ;;  %v396_v61 = vsel %vm253_vm0, %v350_v62, 0.0 }
 0x1aa   :  { %391 = vadd.xlane.f32.xlu1 %v390_v19  ;;  %394 = vadd.xlane.f32.xlu0 %v393_v20 }
 0x1ae   :  { %397 = vadd.xlane.f32.xlu1 %v396_v61 }
 0x21b   :  { %v359_v21 = vpop.xlane.xlu0 %358 }
 0x21c   :  { %v401_v24 = vmul.f32 0.03125, %v359_v21 }
 0x21e   :  { %v417_v25 = vadd.f32 1e-05, %v401_v24 }
 0x21f   :  { %v362_v26 = vpop.xlane.xlu1 %361  ;;  %v383_v27 = vpop.xlane.xlu0 %382 }
 0x220   :  { %725 = vrsqrt.f32 %v417_v25  ;;  %v402_v28 = vmul.f32 0.03125, %v362_v26  ;;  %v409_v29 = vmul.f32 0.03125, %v383_v27 }
 0x222   :  { %v418_v30 = vadd.f32 1e-05, %v402_v28  ;;  %v425_v33 = vadd.f32 1e-05, %v409_v29 }
 0x223   :  { %v386_v34 = vpop.xlane.xlu1 %385  ;;  %v353_v35 = vpop.xlane.xlu0 %352 }
 0x224   :  { %727 = vrsqrt.f32 %v418_v30  ;;  %v410_v36 = vmul.f32 0.03125, %v386_v34  ;;  %v399_v37 = vmul.f32 0.03125, %v353_v35 }
 0x225   :  { %729 = vrsqrt.f32 %v425_v33 }
 0x226   :  { %v426_v38 = vadd.f32 1e-05, %v410_v36  ;;  %v415_v39 = vadd.f32 1e-05, %v399_v37 }
 0x227   :  { %v356_v40 = vpop.xlane.xlu1 %355  ;;  %v377_v42 = vpop.xlane.xlu0 %376 }
 0x228   :  { %731 = vrsqrt.f32 %v426_v38  ;;  %v400_v44 = vmul.f32 0.03125, %v356_v40  ;;  %v407_v45 = vmul.f32 0.03125, %v377_v42 }
 0x229   :  { %733 = vrsqrt.f32 %v415_v39 }
 0x22a   :  { %v726_v46 = vpop.eup %725  ;;  %v416_v50 = vadd.f32 1e-05, %v400_v44  ;;  %v423_v51 = vadd.f32 1e-05, %v407_v45 }
 0x22b   :  { %v449_v52 = vmul.f32 %v726_v46, %v906_v6  ;;  %v380_v57 = vpop.xlane.xlu1 %379  ;;  %v371_v58 = vpop.xlane.xlu0 %370 }
 0x22c   :  { %735 = vrsqrt.f32 %v416_v50  ;;  %v408_v60 = vmul.f32 0.03125, %v380_v57  ;;  %v405_v63 = vmul.f32 0.03125, %v371_v58 }
 0x22d   :  { %v472_v0 = vmul.f32 %v1001_v49, %v449_v52  ;;  %737 = vrsqrt.f32 %v423_v51 }
 0x22e   :  { %v728_v1 = vpop.eup %727  ;;  %v424_v2 = vadd.f32 1e-05, %v408_v60  ;;  %v421_v54 = vadd.f32 1e-05, %v405_v63 }
 0x22f   :  { %v730_v4 = vpop.eup %729  ;;  %v495_v6 = vadd.f32 %v1007_v59, %v472_v0  ;;  %v450_v7 = vmul.f32 %v728_v1, %v911_v12  ;;  %v374_v8 = vpop.xlane.xlu1 %373 }
 0x230   :  { %v365_v9 = vpop.xlane.xlu0 %364  ;;  %v457_v10 = vmul.f32 %v730_v4, %v903_v5  ;;  %739 = vrsqrt.f32 %v424_v2  ;;  %v406_v11 = vmul.f32 0.03125, %v374_v8 }
 0x231   :  { %v403_v14 = vmul.f32 0.03125, %v365_v9  ;;  %v631_v15 = vpack.c.bf16 %v495_v6, %v495_v6  ;;  %v473_v16 = vmul.f32 %v1001_v49, %v450_v7  ;;  %741 = vrsqrt.f32 %v421_v54 }
 0x232   :  { %v732_v17 = vpop.eup %731  ;;  %v480_v18 = vmul.f32 %v1001_v49, %v457_v10  ;;  %v422_v19 = vadd.f32 1e-05, %v406_v11 }
 0x233   :  { %v419_v20 = vadd.f32 1e-05, %v403_v14  ;;  %v734_v62 = vpop.eup %733  ;;  %576 = vst.msk [vmem:[%s1125_s5 + $0x8] sm:$0xf] %vm573_vm1, %v631_v15  ;;  %v496_v5 = vadd.f32 %v1007_v59, %v473_v16  ;;  %v458_v12 = vmul.f32 %v732_v17, %v924_v22  ;;  %v368_v61 = vpop.xlane.xlu1 %367 }
 0x234   :  { %v389_v21 = vpop.xlane.xlu0 %388  ;;  %v503_v24 = vadd.f32 %v1007_v59, %v480_v18  ;;  %v447_v25 = vmul.f32 %v734_v62, %v914_v13  ;;  %743 = vrsqrt.f32 %v422_v19  ;;  %v404_v26 = vmul.f32 0.03125, %v368_v61 }
 0x235   :  { %v632_v27 = vpack.c.bf16 %v496_v5, %v496_v5  ;;  %v481_v28 = vmul.f32 %v1001_v49, %v458_v12  ;;  %745 = vrsqrt.f32 %v419_v20  ;;  %v411_v29 = vmul.f32 0.03125, %v389_v21 }
 0x236   :  { %v736_v30 = vpop.eup %735  ;;  %v639_v33 = vpack.c.bf16 %v503_v24, %v503_v24  ;;  %v470_v34 = vmul.f32 %v1001_v49, %v447_v25  ;;  %v420_v35 = vadd.f32 1e-05, %v404_v26 }
 0x237   :  { %v738_v36 = vpop.eup %737  ;;  %577 = vst.msk [vmem:[%s1125_s5 + $0xc] sm:$0xf] %vm573_vm1, %v632_v27  ;;  %v504_v13 = vadd.f32 %v1007_v59, %v481_v28  ;;  %v448_v22 = vmul.f32 %v736_v30, %v938_v31  ;;  %v427_v37 = vadd.f32 1e-05, %v411_v29  ;;  %v392_v38 = vpop.xlane.xlu1 %391 }
 0x238   :  { %v395_v39 = vpop.xlane.xlu0 %394  ;;  %584 = vst.msk [vmem:[%s1125_s5 + $0x28] sm:$0xf] %vm573_vm1, %v639_v33  ;;  %v493_v40 = vadd.f32 %v1007_v59, %v470_v34  ;;  %v455_v42 = vmul.f32 %v738_v36, %v927_v23  ;;  %747 = vrsqrt.f32 %v420_v35  ;;  %v412_v44 = vmul.f32 0.03125, %v392_v38 }
 0x239   :  { %v640_v45 = vpack.c.bf16 %v504_v13, %v504_v13  ;;  %v471_v46 = vmul.f32 %v1001_v49, %v448_v22  ;;  %749 = vrsqrt.f32 %v427_v37  ;;  %v413_v50 = vmul.f32 0.03125, %v395_v39 }
 0x23a   :  { %v740_v31 = vpop.eup %739  ;;  %v629_v51 = vpack.c.bf16 %v493_v40, %v493_v40  ;;  %v478_v52 = vmul.f32 %v1001_v49, %v455_v42  ;;  %v428_v57 = vadd.f32 1e-05, %v412_v44 }
 0x23b   :  { %v742_v58 = vpop.eup %741  ;;  %585 = vst.msk [vmem:[%s1125_s5 + $0x2c] sm:$0xf] %vm573_vm1, %v640_v45  ;;  %v494_v23 = vadd.f32 %v1007_v59, %v471_v46  ;;  %v456_v60 = vmul.f32 %v740_v31, %v935_v32  ;;  %v429_v63 = vadd.f32 1e-05, %v413_v50  ;;  %v398_v0 = vpop.xlane.xlu1 %397 }
 0x23c   :  { %574 = vst.msk [vmem:[%s1125_s5] sm:$0xf] %vm573_vm1, %v629_v51  ;;  %v501_v1 = vadd.f32 %v1007_v59, %v478_v52  ;;  %v453_v2 = vmul.f32 %v742_v58, %v951_v43  ;;  %751 = vrsqrt.f32 %v428_v57  ;;  %v414_v54 = vmul.f32 0.03125, %v398_v0 }
 0x23d   :  { %v630_v4 = vpack.c.bf16 %v494_v23, %v494_v23  ;;  %v479_v6 = vmul.f32 %v1001_v49, %v456_v60  ;;  %753 = vrsqrt.f32 %v429_v63 }
 0x23e   :  { %v744_v7 = vpop.eup %743  ;;  %v637_v8 = vpack.c.bf16 %v501_v1, %v501_v1  ;;  %v476_v32 = vmul.f32 %v1001_v49, %v453_v2  ;;  %v430_v9 = vadd.f32 1e-05, %v414_v54 }
 0x23f   :  { %v746_v10 = vpop.eup %745  ;;  %575 = vst.msk [vmem:[%s1125_s5 + $0x4] sm:$0xf] %vm573_vm1, %v630_v4  ;;  %v502_v11 = vadd.f32 %v1007_v59, %v479_v6  ;;  %v454_v43 = vmul.f32 %v744_v7, %v948_v41 }
 0x240   :  { %582 = vst.msk [vmem:[%s1125_s5 + $0x20] sm:$0xf] %vm573_vm1, %v637_v8  ;;  %v499_v14 = vadd.f32 %v1007_v59, %v476_v32  ;;  %v451_v15 = vmul.f32 %v746_v10, %v962_v47  ;;  %755 = vrsqrt.f32 %v430_v9 }
 0x241   :  { %v638_v16 = vpack.c.bf16 %v502_v11, %v502_v11  ;;  %v477_v17 = vmul.f32 %v1001_v49, %v454_v43 }
 0x242   :  { %v748_v18 = vpop.eup %747  ;;  %v635_v19 = vpack.c.bf16 %v499_v14, %v499_v14  ;;  %v474_v20 = vmul.f32 %v1001_v49, %v451_v15 }
 0x243   :  { %v750_v62 = vpop.eup %749  ;;  %583 = vst.msk [vmem:[%s1125_s5 + $0x24] sm:$0xf] %vm573_vm1, %v638_v16  ;;  %v500_v41 = vadd.f32 %v1007_v59, %v477_v17  ;;  %v452_v5 = vmul.f32 %v748_v18, %v959_v48 }
 0x244   :  { %580 = vst.msk [vmem:[%s1125_s5 + $0x18] sm:$0xf] %vm573_vm1, %v635_v19  ;;  %v497_v47 = vadd.f32 %v1007_v59, %v474_v20  ;;  %v459_v12 = vmul.f32 %v750_v62, %v975_v3 }
 0x245   :  { %v636_v61 = vpack.c.bf16 %v500_v41, %v500_v41  ;;  %v475_v21 = vmul.f32 %v1001_v49, %v452_v5 }
 0x246   :  { %v752_v24 = vpop.eup %751  ;;  %v633_v25 = vpack.c.bf16 %v497_v47, %v497_v47  ;;  %v482_v26 = vmul.f32 %v1001_v49, %v459_v12 }
 0x247   :  { %v754_v27 = vpop.eup %753  ;;  %581 = vst.msk [vmem:[%s1125_s5 + $0x1c] sm:$0xf] %vm573_vm1, %v636_v61  ;;  %v498_v48 = vadd.f32 %v1007_v59, %v475_v21  ;;  %v460_v28 = vmul.f32 %v752_v24, %v972_v53 }
 0x248   :  { %578 = vst.msk [vmem:[%s1125_s5 + $0x10] sm:$0xf] %vm573_vm1, %v633_v25  ;;  %v505_v3 = vadd.f32 %v1007_v59, %v482_v26  ;;  %v461_v29 = vmul.f32 %v754_v27, %v986_v55 }
 0x249   :  { %v634_v30 = vpack.c.bf16 %v498_v48, %v498_v48  ;;  %v483_v33 = vmul.f32 %v1001_v49, %v460_v28 }
 0x24a   :  { %v756_v34 = vpop.eup %755  ;;  %v641_v35 = vpack.c.bf16 %v505_v3, %v505_v3  ;;  %v484_v36 = vmul.f32 %v1001_v49, %v461_v29 }
 0x24b   :  { %579 = vst.msk [vmem:[%s1125_s5 + $0x14] sm:$0xf] %vm573_vm1, %v634_v30  ;;  %v506_v53 = vadd.f32 %v1007_v59, %v483_v33  ;;  %v462_v13 = vmul.f32 %v756_v34, %v983_v56 }
 0x24c   :  { %586 = vst.msk [vmem:[%s1125_s5 + $0x30] sm:$0xf] %vm573_vm1, %v641_v35  ;;  %v507_v55 = vadd.f32 %v1007_v59, %v484_v36 }
 0x24d   :  { %v642_v22 = vpack.c.bf16 %v506_v53, %v506_v53  ;;  %v485_v37 = vmul.f32 %v1001_v49, %v462_v13 }
 0x24e   :  { %v643_v38 = vpack.c.bf16 %v507_v55, %v507_v55 }
 0x24f   :  { %587 = vst.msk [vmem:[%s1125_s5 + $0x34] sm:$0xf] %vm573_vm1, %v642_v22  ;;  %v508_v39 = vadd.f32 %v1007_v59, %v485_v37 }
 0x250   :  { %588 = vst.msk [vmem:[%s1125_s5 + $0x38] sm:$0xf] %vm573_vm1, %v643_v38 }
 0x251   :  { %v644_v56 = vpack.c.bf16 %v508_v39, %v508_v39 }
 0x253   :  { %589 = vst.msk [vmem:[%s1125_s5 + $0x3c] sm:$0xf] %vm573_vm1, %v644_v56 }

// kernel: attention_pvtv2_forward.5
= control target key start
LH: loop header
LB: loop body
LE: loop exit
PB: predicated region body
PF: predicated region fallthrough
CT: control target
= control target key end

     0   :  { %s1187_s12 = smov 0   ;;  %s1189_s13 = smov 0   ;;  %s1386_s0 = inlined_call_operand.vmem [shape: bf16[2,256,32], index: 0, kind: input, shape index: {}]   ;;  %s1387_s1 = inlined_call_operand.vmem [shape: bf16[4,32,8], index: 1, kind: input, shape index: {}]   ;;  %s1388_s2 = inlined_call_operand.vmem [shape: bf16[4,1,8], index: 2, kind: input, shape index: {}]   ;;  %s1389_s3 = inlined_call_operand.vmem [shape: bf16[2,4,256,8], index: 3, kind: output, shape index: {}]  }
   0x1   :  { %s1191_s14 = smov 0   ;;  %s1193_s15 = smov 0  }
   0x2   :  { %s1195_s16 = smov 0  }
   0x3 LB: > { %s25_s17 = sadd.s32 1, %s1157_s14  ;;  %s32_s18 = sadd.s32 1, %s1161_s15  ;;  %s1165_s16 = sphi %s1195_s16, %s13_s16   ;;  %s1161_s15 = sphi %s1193_s15, %s1393_s15   ;;  %s1157_s14 = sphi %s1191_s14, %s1392_s14   ;;  %s1153_s13 = sphi %s1189_s13, %s1391_s13   ;;  %s1149_s12 = sphi %s1187_s12, %s1390_s12  }
   0x4   : > { %p26_p0 = scmp.ge.s32.totalorder %s25_s17, 4  ;;  %p901_p1 = scmp.ge.s32.totalorder %s1165_s16, 1 }
   0x5   : > { %p185_p2 = scmp.lt.s32.totalorder %s1165_s16, 9 }
   0x6   : > { %s1395_s17 = smov (%p26_p0, %s25_s17), 0  ;;  %s1397_s18 = smov (!%p26_p0, %s32_s18), %s1161_s15 }
   0x7   : > { %p186_p3 = pnand %p901_p1, %p185_p2  ;;  %p34_p4 = scmp.ge.s32.totalorder %s1397_s18, 2 }
   0x8   : > { %p230_p5 = scmp.lt.s32.totalorder (!%p186_p3), %s1153_s13, 1  ;;  %p239_p6 = scmp.lt.s32.totalorder (!%p186_p3), %s1149_s12, 3  ;;  %vm396_vm0 = vcmask (!%p186_p3), 261120   ;;  %v300_v18 = vlaneseq (!%p186_p3)  ;;  %vm734_vm1 = vcmask (!%p186_p3), 60416  }
   0x9   : > { %s1399_s18 = smov (%p34_p4, %s1397_s18), 0  ;;  %189 = sbr.rel (%p186_p3) target bundleno = 273 (0x111), region = 32 }
   0xa   : > { %v301_v19 = vshrl.u32 (!%p186_p3), %v300_v18, 7 }
   0xc   : > { %v302_v22 = vsub.s32 (!%p186_p3), 0, %v301_v19 }
  0x10   : > { %s1401_s13 = smov (!%p230_p5, %s1153_s13), 1  ;;  %s1403_s12 = smov (!%p239_p6, %s1149_s12), 3 }
  0x11   : > { %s977_s19 = sshll.u32 %s1401_s13, 7  ;;  %s978_s23 = sshll.u32 %s1403_s12, 4 }
  0x12   : > { %s1222_s22 = scalar_lea.vmem %s1386_s0, %s977_s19  ;;  %s243_s26 = scalar_lea.vmem %s1387_s1, %s978_s23 }
  0x13   : > { %v1111_v0 = vld [vmem:[%s1222_s22] sm:$0xff]   ;;  %s906_s27 = sshll.u32 %s1403_s12, 5  ;;  %v1110_v2 = vld [vmem:[%s243_s26 + $0x8] sm:$0xff]   ;;  %v1115_v6 = vld [vmem:[%s1222_s22 + $0x10] sm:$0xff]   ;;  %s246_s4 = scalar_lea.vmem %s1388_s2, %s1403_s12 }
  0x14   : > { %v1109_v1 = vld [vmem:[%s243_s26] sm:$0xff]   ;;  %s1230_s28 = sadd.s32 %s977_s19, %s906_s27  ;;  %1033 = vmatprep.mubr.msk.bf16.mxu0 %vm396_vm0, %v1111_v0  ;;  %v1113_v4 = vld [vmem:[%s1222_s22 + $0x8] sm:$0xff]   ;;  %v1116_v7 = vld [vmem:[%s1222_s22 + $0x50] sm:$0xff]  }
  0x15   : > { %1029 = vmatprep.subr.bf16.mxu0 %v1109_v1  ;;  %1065 = vmatprep.subr.bf16.mxu1 %v1109_v1  ;;  %v1112_v3 = vld [vmem:[%s1222_s22 + $0x40] sm:$0xff]   ;;  %v1114_v5 = vld [vmem:[%s1222_s22 + $0x48] sm:$0xff]   ;;  %v1117_v8 = vld [vmem:[%s1222_s22 + $0x18] sm:$0xff]   ;;  %s908_s5 = sshll.u32 %s1230_s28, 2 }
  0x16   : > { %1030 = vmatpush3.bf16.msra.mxu0 %v1109_v1  ;;  %1067 = vmatpush3.bf16.msra.mxu1 %v1109_v1  ;;  %v1118_v9 = vld [vmem:[%s1222_s22 + $0x58] sm:$0xff]   ;;  %v1119_v10 = vld [vmem:[%s1222_s22 + $0x20] sm:$0xff]   ;;  %v1121_v12 = vld [vmem:[%s1222_s22 + $0x28] sm:$0xff]   ;;  %s1275_s8 = scalar_lea.vmem %s1389_s3, %s908_s5 }
  0x17   : > { %1031 = vmatprep.subr.bf16.mxu0 %v1110_v2  ;;  %1066 = vmatprep.subr.bf16.mxu1 %v1110_v2  ;;  %v1120_v11 = vld [vmem:[%s1222_s22 + $0x60] sm:$0xff]   ;;  %v1122_v13 = vld [vmem:[%s1222_s22 + $0x68] sm:$0xff]   ;;  %v1123_v14 = vld [vmem:[%s1222_s22 + $0x30] sm:$0xff]  }
  0x18   : > { %1049 = vmatprep.mubr.msk.bf16.mxu1 %vm396_vm0, %v1112_v3  ;;  %v1124_v15 = vld [vmem:[%s1222_s22 + $0x70] sm:$0xff]   ;;  %v1125_v16 = vld [vmem:[%s1222_s22 + $0x38] sm:$0xff]   ;;  %v298_v20 = vld [vmem:[%s246_s4] sm:$0x1] }
  0x19   : > { %v1126_v17 = vld [vmem:[%s1222_s22 + $0x78] sm:$0xff]   ;;  %v299_v21 = vunpack.c.l.bf16 %v298_v20 }
  0x1a   : > { %1032 = vmatpush3.bf16.msra.mxu0 %v1110_v2  ;;  %1068 = vmatpush3.bf16.msra.mxu1 %v1110_v2 }
  0x1b   : > { %v1267_v23 = vrot.slane %v299_v21, %v302_v22 }
  0x1d   : > { %1034 = vmatmul.mubr.msk.bf16.vlgmr.msra.gmra.mrb[0].mxu0 %vm396_vm0, %v1113_v4  ;;  %1050 = vmatmul.mubr.msk.bf16.vlgmr.msra.gmra.mrb[0].mxu1 %vm396_vm0, %v1114_v5 }
  0x1e   : > { %1037 = vmatprep.mubr.msk.bf16.mxu0 %vm396_vm0, %v1115_v6  ;;  %1053 = vmatprep.mubr.msk.bf16.mxu1 %vm396_vm0, %v1116_v7 }
  0x25   : > { %1038 = vmatmul.mubr.msk.bf16.gmra.mrb[4].mxu0 %vm396_vm0, %v1117_v8  ;;  %1054 = vmatmul.mubr.msk.bf16.gmra.mrb[4].mxu1 %vm396_vm0, %v1118_v9 }
  0x26   : > { %1041 = vmatprep.mubr.msk.bf16.mxu0 %vm396_vm0, %v1119_v10  ;;  %1057 = vmatprep.mubr.msk.bf16.mxu1 %vm396_vm0, %v1120_v11 }
  0x2d   : > { %1042 = vmatmul.mubr.msk.bf16.gmra.mrb[8].mxu0 %vm396_vm0, %v1121_v12  ;;  %1058 = vmatmul.mubr.msk.bf16.gmra.mrb[8].mxu1 %vm396_vm0, %v1122_v13 }
  0x2e   : > { %1045 = vmatprep.mubr.msk.bf16.mxu0 %vm396_vm0, %v1123_v14  ;;  %1061 = vmatprep.mubr.msk.bf16.mxu1 %vm396_vm0, %v1124_v15 }
  0x35   : > { %1046 = vmatmul.mubr.msk.bf16.gmra.mrb[12].mxu0 %vm396_vm0, %v1125_v16  ;;  %1062 = vmatmul.mubr.msk.bf16.gmra.mrb[12].mxu1 %vm396_vm0, %v1126_v17 }
  0xf0   : > { %v1035_v24 = vpop.f32.mrb[0].mxu0  ;;  %v1051_v25 = vpop.f32.mrb[0].mxu1 }
  0xf1   : > { %v488_v26 = vadd.f32 %v1035_v24, %v1267_v23  ;;  %v552_v27 = vadd.f32 %v1051_v25, %v1267_v23  ;;  %v479_v28 = vpop.f32.mrb[1].mxu0  ;;  %v543_v29 = vpop.f32.mrb[1].mxu1 }
  0xf2   : > { %v480_v30 = vadd.f32 %v479_v28, %v1267_v23  ;;  %v544_v31 = vadd.f32 %v543_v29, %v1267_v23  ;;  %v1036_v32 = vpop.f32.mrb[2].mxu0  ;;  %v1052_v33 = vpop.f32.mrb[2].mxu1 }
  0xf3   : > { %v981_v34 = vpack.c.bf16 %v488_v26, %v488_v26  ;;  %v997_v35 = vpack.c.bf16 %v552_v27, %v552_v27  ;;  %v491_v36 = vadd.f32 %v1036_v32, %v1267_v23  ;;  %v555_v37 = vadd.f32 %v1052_v33, %v1267_v23  ;;  %v482_v38 = vpop.f32.mrb[3].mxu0  ;;  %v546_v39 = vpop.f32.mrb[3].mxu1 }
  0xf4   : > { %v979_v40 = vpack.c.bf16 %v480_v30, %v480_v30  ;;  %v995_v41 = vpack.c.bf16 %v544_v31, %v544_v31  ;;  %v483_v42 = vadd.f32 %v482_v38, %v1267_v23  ;;  %v547_v43 = vadd.f32 %v546_v39, %v1267_v23 }
  0xf5   : > { %737 = vst.msk [vmem:[%s1275_s8 + $0x8] sm:$0xf] %vm734_vm1, %v981_v34  ;;  %753 = vst.msk [vmem:[%s1275_s8 + $0x48] sm:$0xf] %vm734_vm1, %v997_v35  ;;  %v982_v44 = vpack.c.bf16 %v491_v36, %v491_v36  ;;  %v998_v45 = vpack.c.bf16 %v555_v37, %v555_v37 }
  0xf6   : > { %735 = vst.msk [vmem:[%s1275_s8] sm:$0xf] %vm734_vm1, %v979_v40  ;;  %751 = vst.msk [vmem:[%s1275_s8 + $0x40] sm:$0xf] %vm734_vm1, %v995_v41  ;;  %v980_v46 = vpack.c.bf16 %v483_v42, %v483_v42  ;;  %v996_v47 = vpack.c.bf16 %v547_v43, %v547_v43 }
  0xf7   : > { %738 = vst.msk [vmem:[%s1275_s8 + $0xc] sm:$0xf] %vm734_vm1, %v982_v44  ;;  %754 = vst.msk [vmem:[%s1275_s8 + $0x4c] sm:$0xf] %vm734_vm1, %v998_v45 }
  0xf8   : > { %736 = vst.msk [vmem:[%s1275_s8 + $0x4] sm:$0xf] %vm734_vm1, %v980_v46  ;;  %752 = vst.msk [vmem:[%s1275_s8 + $0x44] sm:$0xf] %vm734_vm1, %v996_v47  ;;  %v1039_v48 = vpop.f32.mrb[4].mxu0  ;;  %v1055_v49 = vpop.f32.mrb[4].mxu1 }
  0xf9   : > { %v504_v50 = vadd.f32 %v1039_v48, %v1267_v23  ;;  %v568_v51 = vadd.f32 %v1055_v49, %v1267_v23  ;;  %v495_v52 = vpop.f32.mrb[5].mxu0  ;;  %v559_v53 = vpop.f32.mrb[5].mxu1 }
  0xfa   : > { %v496_v54 = vadd.f32 %v495_v52, %v1267_v23  ;;  %v560_v55 = vadd.f32 %v559_v53, %v1267_v23  ;;  %v1040_v56 = vpop.f32.mrb[6].mxu0  ;;  %v1056_v57 = vpop.f32.mrb[6].mxu1 }
  0xfb   : > { %v985_v58 = vpack.c.bf16 %v504_v50, %v504_v50  ;;  %v1001_v59 = vpack.c.bf16 %v568_v51, %v568_v51  ;;  %v507_v60 = vadd.f32 %v1040_v56, %v1267_v23  ;;  %v571_v61 = vadd.f32 %v1056_v57, %v1267_v23  ;;  %v498_v62 = vpop.f32.mrb[7].mxu0  ;;  %v562_v63 = vpop.f32.mrb[7].mxu1 }
  0xfc   : > { %v983_v0 = vpack.c.bf16 %v496_v54, %v496_v54  ;;  %v999_v1 = vpack.c.bf16 %v560_v55, %v560_v55  ;;  %v499_v2 = vadd.f32 %v498_v62, %v1267_v23  ;;  %v563_v3 = vadd.f32 %v562_v63, %v1267_v23 }
  0xfd   : > { %741 = vst.msk [vmem:[%s1275_s8 + $0x18] sm:$0xf] %vm734_vm1, %v985_v58  ;;  %757 = vst.msk [vmem:[%s1275_s8 + $0x58] sm:$0xf] %vm734_vm1, %v1001_v59  ;;  %v986_v4 = vpack.c.bf16 %v507_v60, %v507_v60  ;;  %v1002_v5 = vpack.c.bf16 %v571_v61, %v571_v61 }
  0xfe   : > { %739 = vst.msk [vmem:[%s1275_s8 + $0x10] sm:$0xf] %vm734_vm1, %v983_v0  ;;  %755 = vst.msk [vmem:[%s1275_s8 + $0x50] sm:$0xf] %vm734_vm1, %v999_v1  ;;  %v984_v6 = vpack.c.bf16 %v499_v2, %v499_v2  ;;  %v1000_v7 = vpack.c.bf16 %v563_v3, %v563_v3 }
  0xff   : > { %742 = vst.msk [vmem:[%s1275_s8 + $0x1c] sm:$0xf] %vm734_vm1, %v986_v4  ;;  %758 = vst.msk [vmem:[%s1275_s8 + $0x5c] sm:$0xf] %vm734_vm1, %v1002_v5 }
 0x100   : > { %740 = vst.msk [vmem:[%s1275_s8 + $0x14] sm:$0xf] %vm734_vm1, %v984_v6  ;;  %756 = vst.msk [vmem:[%s1275_s8 + $0x54] sm:$0xf] %vm734_vm1, %v1000_v7  ;;  %v1043_v8 = vpop.f32.mrb[8].mxu0  ;;  %v1059_v9 = vpop.f32.mrb[8].mxu1 }
 0x101   : > { %v520_v10 = vadd.f32 %v1043_v8, %v1267_v23  ;;  %v584_v11 = vadd.f32 %v1059_v9, %v1267_v23  ;;  %v511_v12 = vpop.f32.mrb[9].mxu0  ;;  %v575_v13 = vpop.f32.mrb[9].mxu1 }
 0x102   : > { %v512_v14 = vadd.f32 %v511_v12, %v1267_v23  ;;  %v576_v15 = vadd.f32 %v575_v13, %v1267_v23  ;;  %v1044_v16 = vpop.f32.mrb[10].mxu0  ;;  %v1060_v17 = vpop.f32.mrb[10].mxu1 }
 0x103   : > { %v989_v18 = vpack.c.bf16 %v520_v10, %v520_v10  ;;  %v1005_v19 = vpack.c.bf16 %v584_v11, %v584_v11  ;;  %v523_v20 = vadd.f32 %v1044_v16, %v1267_v23  ;;  %v587_v21 = vadd.f32 %v1060_v17, %v1267_v23  ;;  %v514_v22 = vpop.f32.mrb[11].mxu0  ;;  %v578_v24 = vpop.f32.mrb[11].mxu1 }
 0x104   : > { %v987_v25 = vpack.c.bf16 %v512_v14, %v512_v14  ;;  %v1003_v26 = vpack.c.bf16 %v576_v15, %v576_v15  ;;  %v515_v27 = vadd.f32 %v514_v22, %v1267_v23  ;;  %v579_v28 = vadd.f32 %v578_v24, %v1267_v23 }
 0x105   : > { %745 = vst.msk [vmem:[%s1275_s8 + $0x28] sm:$0xf] %vm734_vm1, %v989_v18  ;;  %761 = vst.msk [vmem:[%s1275_s8 + $0x68] sm:$0xf] %vm734_vm1, %v1005_v19  ;;  %v990_v29 = vpack.c.bf16 %v523_v20, %v523_v20  ;;  %v1006_v30 = vpack.c.bf16 %v587_v21, %v587_v21 }
 0x106   : > { %743 = vst.msk [vmem:[%s1275_s8 + $0x20] sm:$0xf] %vm734_vm1, %v987_v25  ;;  %759 = vst.msk [vmem:[%s1275_s8 + $0x60] sm:$0xf] %vm734_vm1, %v1003_v26  ;;  %v988_v31 = vpack.c.bf16 %v515_v27, %v515_v27  ;;  %v1004_v32 = vpack.c.bf16 %v579_v28, %v579_v28 }
 0x107   : > { %746 = vst.msk [vmem:[%s1275_s8 + $0x2c] sm:$0xf] %vm734_vm1, %v990_v29  ;;  %762 = vst.msk [vmem:[%s1275_s8 + $0x6c] sm:$0xf] %vm734_vm1, %v1006_v30 }
 0x108   : > { %744 = vst.msk [vmem:[%s1275_s8 + $0x24] sm:$0xf] %vm734_vm1, %v988_v31  ;;  %760 = vst.msk [vmem:[%s1275_s8 + $0x64] sm:$0xf] %vm734_vm1, %v1004_v32  ;;  %v1047_v33 = vpop.f32.mrb[12].mxu0  ;;  %v1063_v34 = vpop.f32.mrb[12].mxu1 }
 0x109   : > { %v536_v35 = vadd.f32 %v1047_v33, %v1267_v23  ;;  %v600_v36 = vadd.f32 %v1063_v34, %v1267_v23  ;;  %v527_v37 = vpop.f32.mrb[13].mxu0  ;;  %v591_v38 = vpop.f32.mrb[13].mxu1 }
 0x10a   : > { %v528_v39 = vadd.f32 %v527_v37, %v1267_v23  ;;  %v592_v40 = vadd.f32 %v591_v38, %v1267_v23  ;;  %v1048_v41 = vpop.f32.mrb[14].mxu0  ;;  %v1064_v42 = vpop.f32.mrb[14].mxu1 }
 0x10b   : > { %v993_v43 = vpack.c.bf16 %v536_v35, %v536_v35  ;;  %v1009_v44 = vpack.c.bf16 %v600_v36, %v600_v36  ;;  %v539_v45 = vadd.f32 %v1048_v41, %v1267_v23  ;;  %v603_v46 = vadd.f32 %v1064_v42, %v1267_v23  ;;  %v530_v47 = vpop.f32.mrb[15].mxu0  ;;  %v594_v48 = vpop.f32.mrb[15].mxu1 }
 0x10c   : > { %v991_v49 = vpack.c.bf16 %v528_v39, %v528_v39  ;;  %v1007_v50 = vpack.c.bf16 %v592_v40, %v592_v40  ;;  %v531_v51 = vadd.f32 %v530_v47, %v1267_v23  ;;  %v595_v52 = vadd.f32 %v594_v48, %v1267_v23 }
 0x10d   : > { %749 = vst.msk [vmem:[%s1275_s8 + $0x38] sm:$0xf] %vm734_vm1, %v993_v43  ;;  %765 = vst.msk [vmem:[%s1275_s8 + $0x78] sm:$0xf] %vm734_vm1, %v1009_v44  ;;  %v994_v53 = vpack.c.bf16 %v539_v45, %v539_v45  ;;  %v1010_v54 = vpack.c.bf16 %v603_v46, %v603_v46 }
 0x10e   : > { %747 = vst.msk [vmem:[%s1275_s8 + $0x30] sm:$0xf] %vm734_vm1, %v991_v49  ;;  %763 = vst.msk [vmem:[%s1275_s8 + $0x70] sm:$0xf] %vm734_vm1, %v1007_v50  ;;  %v992_v55 = vpack.c.bf16 %v531_v51, %v531_v51  ;;  %v1008_v56 = vpack.c.bf16 %v595_v52, %v595_v52 }
 0x10f   : > { %750 = vst.msk [vmem:[%s1275_s8 + $0x3c] sm:$0xf] %vm734_vm1, %v994_v53  ;;  %766 = vst.msk [vmem:[%s1275_s8 + $0x7c] sm:$0xf] %vm734_vm1, %v1010_v54 }
 0x110   : > { %748 = vst.msk [vmem:[%s1275_s8 + $0x34] sm:$0xf] %vm734_vm1, %v992_v55  ;;  %764 = vst.msk [vmem:[%s1275_s8 + $0x74] sm:$0xf] %vm734_vm1, %v1008_v56 }
 0x111 PF: > { %s13_s16 = sadd.s32 1, %s1165_s16   ;;  %s1390_s12 = smov %s1157_s14 }
 0x112   : > { %p10_p7 = scmp.ge.s32.totalorder %s13_s16, 10   ;;  %s1391_s13 = smov %s1161_s15 }
 0x113   : > { %s1392_s14 = smov %s1395_s17  ;;  %s1393_s15 = smov %s1399_s18 }
 0x114   :  { %12 = sbr.rel (!%p10_p7) target bundleno = 3 (0x3), region = 68 }

// kernel: attention_pvtv2_forward.9
= control target key start
LH: loop header
LB: loop body
LE: loop exit
PB: predicated region body
PF: predicated region fallthrough
CT: control target
= control target key end

     0   :  { %s1084_s12 = smov 0   ;;  %s1086_s13 = smov 0   ;;  %s1471_s0 = inlined_call_operand.vmem [shape: bf16[2,4,256,8], index: 0, kind: input, shape index: {}]   ;;  %s1472_s1 = inlined_call_operand.vmem [shape: bf16[4,8,32], index: 1, kind: input, shape index: {}]   ;;  %s1473_s2 = inlined_call_operand.vmem [shape: f32[1,32], index: 2, kind: input, shape index: {}]   ;;  %s1474_s3 = inlined_call_operand.vmem [shape: f32[2,256,32], index: 3, kind: output, shape index: {}]  }
   0x1   :  { %s1088_s14 = smov 0   ;;  %s1090_s15 = smov 0  }
   0x2   :  { %s1092_s16 = smov 0  }
   0x3 LB: > { %s25_s17 = sadd.s32 1, %s1054_s14  ;;  %s32_s18 = sadd.s32 1, %s1058_s15  ;;  %s1062_s16 = sphi %s1092_s16, %s13_s16   ;;  %s1058_s15 = sphi %s1090_s15, %s1478_s15   ;;  %s1054_s14 = sphi %s1088_s14, %s1477_s14   ;;  %s1050_s13 = sphi %s1086_s13, %s1476_s13   ;;  %s1046_s12 = sphi %s1084_s12, %s1475_s12  }
   0x4   : > { %p26_p0 = scmp.ge.s32.totalorder %s25_s17, 4  ;;  %p868_p1 = scmp.ge.s32.totalorder %s1062_s16, 1 }
   0x5   : > { %p180_p2 = scmp.lt.s32.totalorder %s1062_s16, 9 }
   0x6   : > { %s1480_s17 = smov (%p26_p0, %s25_s17), 0  ;;  %s1482_s18 = smov (!%p26_p0, %s32_s18), %s1058_s15 }
   0x7   : > { %p181_p3 = pnand %p868_p1, %p180_p2  ;;  %p34_p4 = scmp.ge.s32.totalorder %s1482_s18, 2 }
   0x8   : > { %p221_p5 = scmp.lt.s32.totalorder (!%p181_p3), %s1050_s13, 1  ;;  %p223_p6 = scmp.lt.s32.totalorder (!%p181_p3), %s1046_s12, 3  ;;  %vm411_vm0 = vcmask (!%p181_p3), 1043456   ;;  %vm362_vm1 = vcmask (!%p181_p3), 64512  }
   0x9   : > { %s1484_s18 = smov (%p34_p4, %s1482_s18), 0  ;;  %184 = sbr.rel (%p181_p3) target bundleno = 288 (0x120), region = 32 }
   0xa   : > { %p907_p7 = scmp.ne.s32.totalorder (!%p181_p3), %s1046_s12, 0 }
  0x10   : > { %s1486_s13 = smov (!%p221_p5, %s1050_s13), 1  ;;  %v908_v50 = vld [vmem:[%s1473_s2] ss:$0 sm:$0xff] (!%p907_p7)  ;;  %vm619_vm2 = vcmask (!%p907_p7), 261120  }
  0x11   : > { %s224_s19 = scalar_select %p223_p6, %s1046_s12, 3 }
  0x12   : > { %s870_s20 = sshll.u32 %s1486_s13, 7  ;;  %s912_s21 = sshll.u32 %s1486_s13, 8 }
  0x13   : > { %s869_s22 = sshll.u32 %s224_s19, 5  ;;  %s872_s23 = sshll.u32 %s224_s19, 2 }
  0x14   : > { %s230_s24 = sadd.s32 %s870_s20, %s869_s22  ;;  %s237_s27 = scalar_lea.vmem %s1472_s1, %s872_s23 }
  0x15   : > { %s871_s28 = sshll.u32 %s230_s24, 2  ;;  %s1124_s4 = scalar_lea.vmem %s1474_s3, %s912_s21  ;;  %v281_v0 = vld [vmem:[%s237_s27] sm:$0xf] }
  0x16   : > { %s1129_s7 = scalar_lea.vmem %s1471_s0, %s871_s28  ;;  %966 = vmatprep.subr.msk.bf16.mxu0 %vm411_vm0, %v281_v0  ;;  %967 = vmatprep.subr.msk.bf16.mxu1 %vm411_vm0, %v281_v0  ;;  %v413_v1 = vsel %vm411_vm0, %v281_v0, 0 }
  0x17   : > { %931 = vmatpush3.bf16.msra.mxu0 %v413_v1  ;;  %965 = vmatpush3.bf16.msra.mxu1 %v413_v1  ;;  %v1008_v2 = vld [vmem:[%s1129_s7] sm:$0xff]   ;;  %v1010_v4 = vld [vmem:[%s1129_s7 + $0x8] sm:$0xff]   ;;  %v1012_v6 = vld [vmem:[%s1129_s7 + $0x10] sm:$0xff]  }
  0x18   : > { %v1009_v3 = vld [vmem:[%s1129_s7 + $0x40] sm:$0xff]   ;;  %932 = vmatprep.mubr.msk.bf16.mxu0 %vm362_vm1, %v1008_v2  ;;  %v1011_v5 = vld [vmem:[%s1129_s7 + $0x48] sm:$0xff]   ;;  %v1013_v7 = vld [vmem:[%s1129_s7 + $0x50] sm:$0xff]  }
  0x19   : > { %948 = vmatprep.mubr.msk.bf16.mxu1 %vm362_vm1, %v1009_v3  ;;  %v1014_v8 = vld [vmem:[%s1129_s7 + $0x18] sm:$0xff]   ;;  %v1016_v10 = vld [vmem:[%s1129_s7 + $0x20] sm:$0xff]   ;;  %v1018_v12 = vld [vmem:[%s1129_s7 + $0x28] sm:$0xff]  }
  0x1a   : > { %933 = vmatmul.mubr.msk.bf16.vlgmr.msra.gmra.mrb[0].mxu0 %vm362_vm1, %v1010_v4  ;;  %949 = vmatmul.mubr.msk.bf16.vlgmr.msra.gmra.mrb[0].mxu1 %vm362_vm1, %v1011_v5  ;;  %v1015_v9 = vld [vmem:[%s1129_s7 + $0x58] sm:$0xff]   ;;  %v1017_v11 = vld [vmem:[%s1129_s7 + $0x60] sm:$0xff]   ;;  %v1019_v13 = vld [vmem:[%s1129_s7 + $0x68] sm:$0xff]  }
  0x1b   : > { %936 = vmatprep.mubr.msk.bf16.mxu0 %vm362_vm1, %v1012_v6  ;;  %952 = vmatprep.mubr.msk.bf16.mxu1 %vm362_vm1, %v1013_v7  ;;  %v1020_v14 = vld [vmem:[%s1129_s7 + $0x30] sm:$0xff]   ;;  %v1022_v16 = vld [vmem:[%s1129_s7 + $0x38] sm:$0xff]  }
  0x1c   : > { %v1021_v15 = vld [vmem:[%s1129_s7 + $0x70] sm:$0xff]   ;;  %v1023_v17 = vld [vmem:[%s1129_s7 + $0x78] sm:$0xff]  }
  0x22   : > { %937 = vmatmul.mubr.msk.bf16.gmra.mrb[4].mxu0 %vm362_vm1, %v1014_v8  ;;  %953 = vmatmul.mubr.msk.bf16.gmra.mrb[4].mxu1 %vm362_vm1, %v1015_v9 }
  0x23   : > { %940 = vmatprep.mubr.msk.bf16.mxu0 %vm362_vm1, %v1016_v10  ;;  %956 = vmatprep.mubr.msk.bf16.mxu1 %vm362_vm1, %v1017_v11 }
  0x2a   : > { %941 = vmatmul.mubr.msk.bf16.gmra.mrb[8].mxu0 %vm362_vm1, %v1018_v12  ;;  %957 = vmatmul.mubr.msk.bf16.gmra.mrb[8].mxu1 %vm362_vm1, %v1019_v13 }
  0x2b   : > { %944 = vmatprep.mubr.msk.bf16.mxu0 %vm362_vm1, %v1020_v14  ;;  %960 = vmatprep.mubr.msk.bf16.mxu1 %vm362_vm1, %v1021_v15 }
  0x32   : > { %945 = vmatmul.mubr.msk.bf16.gmra.mrb[12].mxu0 %vm362_vm1, %v1022_v16  ;;  %961 = vmatmul.mubr.msk.bf16.gmra.mrb[12].mxu1 %vm362_vm1, %v1023_v17 }
  0xed   : > { %v1163_v18 = vpop.f32.mrb[0].mxu0  ;;  %v1165_v19 = vpop.f32.mrb[0].mxu1 }
  0xee   : > { %v1167_v20 = vpop.f32.mrb[1].mxu0  ;;  %v1169_v21 = vpop.f32.mrb[1].mxu1  ;;  %v589_v53 = vadd.f32 (!%p907_p7), %v1163_v18, %v908_v50  ;;  %v605_v5 = vadd.f32 (!%p907_p7), %v1165_v19, %v908_v50 }
  0xef   : > { %v1171_v22 = vpop.f32.mrb[2].mxu0  ;;  %v1173_v23 = vpop.f32.mrb[2].mxu1  ;;  %v587_v51 = vadd.f32 (!%p907_p7), %v908_v50, %v1167_v20  ;;  %v603_v3 = vadd.f32 (!%p907_p7), %v908_v50, %v1169_v21 }
  0xf0   : > { %v1175_v24 = vpop.f32.mrb[3].mxu0  ;;  %v1177_v25 = vpop.f32.mrb[3].mxu1  ;;  %v590_v54 = vadd.f32 (!%p907_p7), %v1171_v22, %v908_v50  ;;  %622 = vst.msk [vmem:[%s1124_s4 + $0x10] sm:$0xff] (!%p907_p7), %vm619_vm2, %v589_v53  ;;  %v606_v6 = vadd.f32 (!%p907_p7), %v1173_v23, %v908_v50  ;;  %638 = vst.msk [vmem:[%s1124_s4 + $0x90] sm:$0xff] (!%p907_p7), %vm619_vm2, %v605_v5 }
  0xf1   : > { %v588_v52 = vadd.f32 (!%p907_p7), %v908_v50, %v1175_v24  ;;  %620 = vst.msk [vmem:[%s1124_s4] sm:$0xff] (!%p907_p7), %vm619_vm2, %v587_v51  ;;  %v604_v4 = vadd.f32 (!%p907_p7), %v908_v50, %v1177_v25  ;;  %636 = vst.msk [vmem:[%s1124_s4 + $0x80] sm:$0xff] (!%p907_p7), %vm619_vm2, %v603_v3 }
  0xf2   : > { %623 = vst.msk [vmem:[%s1124_s4 + $0x18] sm:$0xff] (!%p907_p7), %vm619_vm2, %v590_v54  ;;  %639 = vst.msk [vmem:[%s1124_s4 + $0x98] sm:$0xff] (!%p907_p7), %vm619_vm2, %v606_v6 }
  0xf3   : > { %621 = vst.msk [vmem:[%s1124_s4 + $0x8] sm:$0xff] (!%p907_p7), %vm619_vm2, %v588_v52  ;;  %637 = vst.msk [vmem:[%s1124_s4 + $0x88] sm:$0xff] (!%p907_p7), %vm619_vm2, %v604_v4 }
  0xf5   : > { %v1179_v26 = vpop.f32.mrb[4].mxu0  ;;  %v1181_v27 = vpop.f32.mrb[4].mxu1 }
  0xf6   : > { %v1183_v28 = vpop.f32.mrb[5].mxu0  ;;  %v1185_v29 = vpop.f32.mrb[5].mxu1  ;;  %v593_v57 = vadd.f32 (!%p907_p7), %v1179_v26, %v908_v50  ;;  %v609_v9 = vadd.f32 (!%p907_p7), %v1181_v27, %v908_v50 }
  0xf7   : > { %v1187_v30 = vpop.f32.mrb[6].mxu0  ;;  %v1189_v31 = vpop.f32.mrb[6].mxu1  ;;  %v591_v55 = vadd.f32 (!%p907_p7), %v908_v50, %v1183_v28  ;;  %v607_v7 = vadd.f32 (!%p907_p7), %v908_v50, %v1185_v29 }
  0xf8   : > { %v1191_v32 = vpop.f32.mrb[7].mxu0  ;;  %v1193_v33 = vpop.f32.mrb[7].mxu1  ;;  %v594_v58 = vadd.f32 (!%p907_p7), %v1187_v30, %v908_v50  ;;  %626 = vst.msk [vmem:[%s1124_s4 + $0x30] sm:$0xff] (!%p907_p7), %vm619_vm2, %v593_v57  ;;  %v610_v10 = vadd.f32 (!%p907_p7), %v1189_v31, %v908_v50  ;;  %642 = vst.msk [vmem:[%s1124_s4 + $0xb0] sm:$0xff] (!%p907_p7), %vm619_vm2, %v609_v9 }
  0xf9   : > { %v592_v56 = vadd.f32 (!%p907_p7), %v908_v50, %v1191_v32  ;;  %624 = vst.msk [vmem:[%s1124_s4 + $0x20] sm:$0xff] (!%p907_p7), %vm619_vm2, %v591_v55  ;;  %v608_v8 = vadd.f32 (!%p907_p7), %v908_v50, %v1193_v33  ;;  %640 = vst.msk [vmem:[%s1124_s4 + $0xa0] sm:$0xff] (!%p907_p7), %vm619_vm2, %v607_v7 }
  0xfa   : > { %627 = vst.msk [vmem:[%s1124_s4 + $0x38] sm:$0xff] (!%p907_p7), %vm619_vm2, %v594_v58  ;;  %643 = vst.msk [vmem:[%s1124_s4 + $0xb8] sm:$0xff] (!%p907_p7), %vm619_vm2, %v610_v10 }
  0xfb   : > { %625 = vst.msk [vmem:[%s1124_s4 + $0x28] sm:$0xff] (!%p907_p7), %vm619_vm2, %v592_v56  ;;  %641 = vst.msk [vmem:[%s1124_s4 + $0xa8] sm:$0xff] (!%p907_p7), %vm619_vm2, %v608_v8 }
  0xfd   : > { %v1195_v34 = vpop.f32.mrb[8].mxu0  ;;  %v1197_v35 = vpop.f32.mrb[8].mxu1 }
  0xfe   : > { %v1199_v36 = vpop.f32.mrb[9].mxu0  ;;  %v1201_v37 = vpop.f32.mrb[9].mxu1  ;;  %v597_v61 = vadd.f32 (!%p907_p7), %v1195_v34, %v908_v50  ;;  %v613_v13 = vadd.f32 (!%p907_p7), %v1197_v35, %v908_v50 }
  0xff   : > { %v1203_v38 = vpop.f32.mrb[10].mxu0  ;;  %v1205_v39 = vpop.f32.mrb[10].mxu1  ;;  %v595_v59 = vadd.f32 (!%p907_p7), %v908_v50, %v1199_v36  ;;  %v611_v11 = vadd.f32 (!%p907_p7), %v908_v50, %v1201_v37 }
 0x100   : > { %v1207_v40 = vpop.f32.mrb[11].mxu0  ;;  %v1209_v41 = vpop.f32.mrb[11].mxu1  ;;  %v598_v62 = vadd.f32 (!%p907_p7), %v1203_v38, %v908_v50  ;;  %630 = vst.msk [vmem:[%s1124_s4 + $0x50] sm:$0xff] (!%p907_p7), %vm619_vm2, %v597_v61  ;;  %v614_v14 = vadd.f32 (!%p907_p7), %v1205_v39, %v908_v50  ;;  %646 = vst.msk [vmem:[%s1124_s4 + $0xd0] sm:$0xff] (!%p907_p7), %vm619_vm2, %v613_v13 }
 0x101   : > { %v596_v60 = vadd.f32 (!%p907_p7), %v908_v50, %v1207_v40  ;;  %628 = vst.msk [vmem:[%s1124_s4 + $0x40] sm:$0xff] (!%p907_p7), %vm619_vm2, %v595_v59  ;;  %v612_v12 = vadd.f32 (!%p907_p7), %v908_v50, %v1209_v41  ;;  %644 = vst.msk [vmem:[%s1124_s4 + $0xc0] sm:$0xff] (!%p907_p7), %vm619_vm2, %v611_v11 }
 0x102   : > { %579 = sbr.rel (%p907_p7) target bundleno = 268 (0x10c), region = 36  ;;  %631 = vst.msk [vmem:[%s1124_s4 + $0x58] sm:$0xff] (!%p907_p7), %vm619_vm2, %v598_v62  ;;  %647 = vst.msk [vmem:[%s1124_s4 + $0xd8] sm:$0xff] (!%p907_p7), %vm619_vm2, %v614_v14 }
 0x103   : > { %629 = vst.msk [vmem:[%s1124_s4 + $0x48] sm:$0xff] (!%p907_p7), %vm619_vm2, %v596_v60  ;;  %645 = vst.msk [vmem:[%s1124_s4 + $0xc8] sm:$0xff] (!%p907_p7), %vm619_vm2, %v612_v12 }
 0x105   : > { %v1211_v42 = vpop.f32.mrb[12].mxu0  ;;  %v1213_v43 = vpop.f32.mrb[12].mxu1 }
 0x106   : > { %v1215_v44 = vpop.f32.mrb[13].mxu0  ;;  %v1217_v45 = vpop.f32.mrb[13].mxu1  ;;  %v601_v1 = vadd.f32 (!%p907_p7), %v1211_v42, %v908_v50  ;;  %v617_v17 = vadd.f32 (!%p907_p7), %v1213_v43, %v908_v50 }
 0x107   : > { %v1219_v46 = vpop.f32.mrb[14].mxu0  ;;  %v1221_v47 = vpop.f32.mrb[14].mxu1  ;;  %v599_v63 = vadd.f32 (!%p907_p7), %v908_v50, %v1215_v44  ;;  %v615_v15 = vadd.f32 (!%p907_p7), %v908_v50, %v1217_v45 }
 0x108   : > { %v1223_v48 = vpop.f32.mrb[15].mxu0  ;;  %v1225_v49 = vpop.f32.mrb[15].mxu1  ;;  %v602_v2 = vadd.f32 (!%p907_p7), %v1219_v46, %v908_v50  ;;  %634 = vst.msk [vmem:[%s1124_s4 + $0x70] sm:$0xff] (!%p907_p7), %vm619_vm2, %v601_v1  ;;  %v618_v51 = vadd.f32 (!%p907_p7), %v1221_v47, %v908_v50  ;;  %650 = vst.msk [vmem:[%s1124_s4 + $0xf0] sm:$0xff] (!%p907_p7), %vm619_vm2, %v617_v17 }
 0x109   : > { %v600_v0 = vadd.f32 %v908_v50, %v1223_v48  ;;  %632 = vst.msk [vmem:[%s1124_s4 + $0x60] sm:$0xff] %vm619_vm2, %v599_v63  ;;  %v616_v16 = vadd.f32 %v908_v50, %v1225_v49  ;;  %648 = vst.msk [vmem:[%s1124_s4 + $0xe0] sm:$0xff] %vm619_vm2, %v615_v15 }
 0x10a   : > { %635 = vst.msk [vmem:[%s1124_s4 + $0x78] sm:$0xff] %vm619_vm2, %v602_v2  ;;  %651 = vst.msk [vmem:[%s1124_s4 + $0xf8] sm:$0xff] %vm619_vm2, %v618_v51 }
 0x10b   : > { %633 = vst.msk [vmem:[%s1124_s4 + $0x68] sm:$0xff] %vm619_vm2, %v600_v0  ;;  %649 = vst.msk [vmem:[%s1124_s4 + $0xe8] sm:$0xff] %vm619_vm2, %v616_v16 }
 0x10c PF: > { %p909_p8 = scmp.le.s32.totalorder %s1046_s12, 0 }
 0x10d   : > { %v656_v50 = vld [vmem:[%s1124_s4] sm:$0xff] (!%p909_p8)  ;;  %vm720_vm3 = vcmask (!%p909_p8), 261120   ;;  %v657_v52 = vld [vmem:[%s1124_s4 + $0x8] sm:$0xff] (!%p909_p8)  ;;  %v658_v53 = vld [vmem:[%s1124_s4 + $0x10] sm:$0xff] (!%p909_p8) }
 0x10e   : > { %655 = sbr.rel (%p909_p8) target bundleno = 288 (0x120), region = 40  ;;  %v688_v54 = vadd.f32 (!%p909_p8), %v656_v50, %v1167_v20  ;;  %v689_v55 = vadd.f32 (!%p909_p8), %v657_v52, %v1175_v24  ;;  %v690_v56 = vadd.f32 (!%p909_p8), %v1163_v18, %v658_v53  ;;  %v659_v57 = vld [vmem:[%s1124_s4 + $0x18] sm:$0xff] (!%p909_p8)  ;;  %v660_v58 = vld [vmem:[%s1124_s4 + $0x20] sm:$0xff] (!%p909_p8)  ;;  %v661_v59 = vld [vmem:[%s1124_s4 + $0x28] sm:$0xff] (!%p909_p8) }
 0x10f   : > { %v691_v60 = vadd.f32 (!%p909_p8), %v1171_v22, %v659_v57  ;;  %v692_v61 = vadd.f32 (!%p909_p8), %v660_v58, %v1183_v28  ;;  %v693_v62 = vadd.f32 (!%p909_p8), %v661_v59, %v1191_v32  ;;  %v662_v20 = vld [vmem:[%s1124_s4 + $0x30] sm:$0xff] (!%p909_p8)  ;;  %v663_v63 = vld [vmem:[%s1124_s4 + $0x38] sm:$0xff] (!%p909_p8)  ;;  %v664_v24 = vld [vmem:[%s1124_s4 + $0x40] sm:$0xff] (!%p909_p8) }
 0x110   : > { %721 = vst.msk [vmem:[%s1124_s4] sm:$0xff] (!%p909_p8), %vm720_vm3, %v688_v54  ;;  %722 = vst.msk [vmem:[%s1124_s4 + $0x8] sm:$0xff] (!%p909_p8), %vm720_vm3, %v689_v55  ;;  %v694_v18 = vadd.f32 (!%p909_p8), %v1179_v26, %v662_v20  ;;  %v695_v22 = vadd.f32 (!%p909_p8), %v1187_v30, %v663_v63  ;;  %v696_v28 = vadd.f32 (!%p909_p8), %v664_v24, %v1199_v36  ;;  %v665_v32 = vld [vmem:[%s1124_s4 + $0x48] sm:$0xff] (!%p909_p8)  ;;  %v666_v0 = vld [vmem:[%s1124_s4 + $0x50] sm:$0xff] (!%p909_p8) }
 0x111   : > { %723 = vst.msk [vmem:[%s1124_s4 + $0x10] sm:$0xff] (!%p909_p8), %vm720_vm3, %v690_v56  ;;  %v667_v1 = vld [vmem:[%s1124_s4 + $0x58] sm:$0xff] (!%p909_p8)  ;;  %724 = vst.msk [vmem:[%s1124_s4 + $0x18] sm:$0xff] (!%p909_p8), %vm720_vm3, %v691_v60  ;;  %v697_v26 = vadd.f32 (!%p909_p8), %v665_v32, %v1207_v40  ;;  %v698_v30 = vadd.f32 (!%p909_p8), %v1195_v34, %v666_v0  ;;  %v672_v6 = vld [vmem:[%s1124_s4 + $0x80] sm:$0xff] (!%p909_p8) }
 0x112   : > { %725 = vst.msk [vmem:[%s1124_s4 + $0x20] sm:$0xff] (!%p909_p8), %vm720_vm3, %v692_v61  ;;  %726 = vst.msk [vmem:[%s1124_s4 + $0x28] sm:$0xff] (!%p909_p8), %vm720_vm3, %v693_v62  ;;  %v699_v36 = vadd.f32 (!%p909_p8), %v1203_v38, %v667_v1  ;;  %v669_v3 = vld [vmem:[%s1124_s4 + $0x68] sm:$0xff] (!%p909_p8)  ;;  %v670_v4 = vld [vmem:[%s1124_s4 + $0x70] sm:$0xff] (!%p909_p8) }
 0x113   : > { %v668_v2 = vld [vmem:[%s1124_s4 + $0x60] sm:$0xff] (!%p909_p8)  ;;  %727 = vst.msk [vmem:[%s1124_s4 + $0x30] sm:$0xff] (!%p909_p8), %vm720_vm3, %v694_v18  ;;  %728 = vst.msk [vmem:[%s1124_s4 + $0x38] sm:$0xff] (!%p909_p8), %vm720_vm3, %v695_v22  ;;  %v701_v34 = vadd.f32 (!%p909_p8), %v669_v3, %v1223_v48  ;;  %v702_v38 = vadd.f32 (!%p909_p8), %v1211_v42, %v670_v4  ;;  %v671_v5 = vld [vmem:[%s1124_s4 + $0x78] sm:$0xff] (!%p909_p8)  ;;  %v704_v48 = vadd.f32 (!%p909_p8), %v672_v6, %v1169_v21 }
 0x114   : > { %729 = vst.msk [vmem:[%s1124_s4 + $0x40] sm:$0xff] (!%p909_p8), %vm720_vm3, %v696_v28  ;;  %v700_v40 = vadd.f32 (!%p909_p8), %v668_v2, %v1215_v44  ;;  %v673_v7 = vld [vmem:[%s1124_s4 + $0x88] sm:$0xff] (!%p909_p8)  ;;  %730 = vst.msk [vmem:[%s1124_s4 + $0x48] sm:$0xff] (!%p909_p8), %vm720_vm3, %v697_v26  ;;  %v703_v44 = vadd.f32 (!%p909_p8), %v1219_v46, %v671_v5  ;;  %v674_v8 = vld [vmem:[%s1124_s4 + $0x90] sm:$0xff] (!%p909_p8) }
 0x115   : > { %731 = vst.msk [vmem:[%s1124_s4 + $0x50] sm:$0xff] %vm720_vm3, %v698_v30  ;;  %732 = vst.msk [vmem:[%s1124_s4 + $0x58] sm:$0xff] %vm720_vm3, %v699_v36  ;;  %v705_v42 = vadd.f32 %v673_v7, %v1177_v25  ;;  %v675_v9 = vld [vmem:[%s1124_s4 + $0x98] sm:$0xff]  ;;  %v676_v10 = vld [vmem:[%s1124_s4 + $0xa0] sm:$0xff]  ;;  %v706_v46 = vadd.f32 %v1165_v19, %v674_v8 }
 0x116   : > { %733 = vst.msk [vmem:[%s1124_s4 + $0x60] sm:$0xff] %vm720_vm3, %v700_v40  ;;  %734 = vst.msk [vmem:[%s1124_s4 + $0x68] sm:$0xff] %vm720_vm3, %v701_v34  ;;  %v707_v21 = vadd.f32 %v1173_v23, %v675_v9  ;;  %v708_v25 = vadd.f32 %v676_v10, %v1185_v29  ;;  %v677_v11 = vld [vmem:[%s1124_s4 + $0xa8] sm:$0xff]  ;;  %v678_v12 = vld [vmem:[%s1124_s4 + $0xb0] sm:$0xff] }
 0x117   : > { %735 = vst.msk [vmem:[%s1124_s4 + $0x70] sm:$0xff] %vm720_vm3, %v702_v38  ;;  %v679_v13 = vld [vmem:[%s1124_s4 + $0xb8] sm:$0xff]  ;;  %736 = vst.msk [vmem:[%s1124_s4 + $0x78] sm:$0xff] %vm720_vm3, %v703_v44  ;;  %v709_v19 = vadd.f32 %v677_v11, %v1193_v33  ;;  %v710_v23 = vadd.f32 %v1181_v27, %v678_v12  ;;  %v680_v14 = vld [vmem:[%s1124_s4 + $0xc0] sm:$0xff] }
 0x118   : > { %737 = vst.msk [vmem:[%s1124_s4 + $0x80] sm:$0xff] %vm720_vm3, %v704_v48  ;;  %738 = vst.msk [vmem:[%s1124_s4 + $0x88] sm:$0xff] %vm720_vm3, %v705_v42  ;;  %v711_v29 = vadd.f32 %v1189_v31, %v679_v13  ;;  %v681_v15 = vld [vmem:[%s1124_s4 + $0xc8] sm:$0xff]  ;;  %v682_v16 = vld [vmem:[%s1124_s4 + $0xd0] sm:$0xff]  ;;  %v712_v33 = vadd.f32 %v680_v14, %v1201_v37 }
 0x119   : > { %739 = vst.msk [vmem:[%s1124_s4 + $0x90] sm:$0xff] %vm720_vm3, %v706_v46  ;;  %740 = vst.msk [vmem:[%s1124_s4 + $0x98] sm:$0xff] %vm720_vm3, %v707_v21  ;;  %v713_v27 = vadd.f32 %v681_v15, %v1209_v41  ;;  %v714_v31 = vadd.f32 %v1197_v35, %v682_v16  ;;  %v683_v17 = vld [vmem:[%s1124_s4 + $0xd8] sm:$0xff]  ;;  %v684_v51 = vld [vmem:[%s1124_s4 + $0xe0] sm:$0xff] }
 0x11a   : > { %741 = vst.msk [vmem:[%s1124_s4 + $0xa0] sm:$0xff] %vm720_vm3, %v708_v25  ;;  %v685_v50 = vld [vmem:[%s1124_s4 + $0xe8] sm:$0xff]  ;;  %742 = vst.msk [vmem:[%s1124_s4 + $0xa8] sm:$0xff] %vm720_vm3, %v709_v19  ;;  %v715_v37 = vadd.f32 %v1205_v39, %v683_v17  ;;  %v716_v41 = vadd.f32 %v684_v51, %v1217_v45  ;;  %v686_v52 = vld [vmem:[%s1124_s4 + $0xf0] sm:$0xff] }
 0x11b   : > { %743 = vst.msk [vmem:[%s1124_s4 + $0xb0] sm:$0xff] %vm720_vm3, %v710_v23  ;;  %744 = vst.msk [vmem:[%s1124_s4 + $0xb8] sm:$0xff] %vm720_vm3, %v711_v29  ;;  %v717_v35 = vadd.f32 %v685_v50, %v1225_v49  ;;  %v687_v53 = vld [vmem:[%s1124_s4 + $0xf8] sm:$0xff]  ;;  %v718_v54 = vadd.f32 %v1213_v43, %v686_v52 }
 0x11c   : > { %745 = vst.msk [vmem:[%s1124_s4 + $0xc0] sm:$0xff] %vm720_vm3, %v712_v33  ;;  %746 = vst.msk [vmem:[%s1124_s4 + $0xc8] sm:$0xff] %vm720_vm3, %v713_v27  ;;  %v719_v55 = vadd.f32 %v1221_v47, %v687_v53 }
 0x11d   : > { %747 = vst.msk [vmem:[%s1124_s4 + $0xd0] sm:$0xff] %vm720_vm3, %v714_v31  ;;  %748 = vst.msk [vmem:[%s1124_s4 + $0xd8] sm:$0xff] %vm720_vm3, %v715_v37 }
 0x11e   : > { %749 = vst.msk [vmem:[%s1124_s4 + $0xe0] sm:$0xff] %vm720_vm3, %v716_v41  ;;  %750 = vst.msk [vmem:[%s1124_s4 + $0xe8] sm:$0xff] %vm720_vm3, %v717_v35 }
 0x11f   : > { %751 = vst.msk [vmem:[%s1124_s4 + $0xf0] sm:$0xff] %vm720_vm3, %v718_v54  ;;  %752 = vst.msk [vmem:[%s1124_s4 + $0xf8] sm:$0xff] %vm720_vm3, %v719_v55 }
 0x120 PF: > { %s13_s16 = sadd.s32 1, %s1062_s16   ;;  %s1475_s12 = smov %s1054_s14 }
 0x121   : > { %p10_p9 = scmp.ge.s32.totalorder %s13_s16, 10   ;;  %s1476_s13 = smov %s1058_s15 }
 0x122   : > { %s1477_s14 = smov %s1480_s17  ;;  %s1478_s15 = smov %s1484_s18 }
 0x123   :  { %12 = sbr.rel (!%p10_p9) target bundleno = 3 (0x3), region = 73 }

// kernel: attention_pvtv2_forward.8
= control target key start
LH: loop header
LB: loop body
LE: loop exit
PB: predicated region body
PF: predicated region fallthrough
CT: control target
= control target key end

     0   :  { %s2122_s12 = smov 0   ;;  %s2124_s13 = smov 0   ;;  %s2523_s0 = inlined_call_operand.vmem [shape: bf16[2,4,256,8], index: 0, kind: input, shape index: {}]   ;;  %s2524_s1 = inlined_call_operand.vmem [shape: bf16[2,8,64,8], index: 1, kind: input, shape index: {}, may-alias: {1,2}]   ;;  %s2525_s2 = inlined_call_operand.vmem [shape: bf16[2,8,64,8], index: 2, kind: input, shape index: {}, may-alias: {1,2}]   ;;  %s2526_s3 = inlined_call_operand.vmem [shape: bf16[2,4,256,8], index: 3, kind: output, shape index: {}]  }
   0x1   :  { %s2126_s14 = smov 0   ;;  %s2128_s15 = smov 0  }
   0x2   :  { %s2130_s16 = smov 0  }
   0x3 LB: > { %s28_s17 = sadd.s32 1, %s2092_s14  ;;  %s32_s18 = sadd.s32 1, %s2096_s15  ;;  %s2100_s16 = sphi %s2130_s16, %s13_s16   ;;  %s2096_s15 = sphi %s2128_s15, %s2530_s15   ;;  %s2092_s14 = sphi %s2126_s14, %s2529_s14   ;;  %s2088_s13 = sphi %s2124_s13, %s2528_s13   ;;  %s2084_s12 = sphi %s2122_s12, %s2527_s12  }
   0x4   : > { %p30_p0 = scmp.ge.s32.totalorder %s28_s17, 4  ;;  %p1611_p1 = scmp.ge.s32.totalorder %s2100_s16, 1 }
   0x5   : > { %p209_p2 = scmp.lt.s32.totalorder %s2100_s16, 9 }
   0x6   : > { %s2532_s17 = smov (%p30_p0, %s28_s17), 0  ;;  %s2534_s18 = smov (!%p30_p0, %s32_s18), %s2096_s15 }
   0x7   : > { %p210_p3 = pnand %p1611_p1, %p209_p2  ;;  %p34_p4 = scmp.ge.s32.totalorder %s2534_s18, 2 }
   0x8   : > { %p269_p5 = scmp.lt.s32.totalorder (!%p210_p3), %s2088_s13, 1  ;;  %p271_p6 = scmp.lt.s32.totalorder (!%p210_p3), %s2084_s12, 3  ;;  %vm465_vm0 = vcmask (!%p210_p3), 64512   ;;  %vm687_vm1 = vcmask (!%p210_p3), 523264   ;;  %vm1417_vm2 = vcmask (!%p210_p3), 60416  }
   0x9   : > { %s2536_s18 = smov (%p34_p4, %s2534_s18), 0  ;;  %213 = sbr.rel (%p210_p3) target bundleno = 717 (0x2cd), region = 32 }
   0xa   : > { %p284_p7 = scmp.lt.s32.totalorder (!%p210_p3), %s2084_s12, 7  ;;  %s291_s8 = sadd.s32 (!%p210_p3), 4, %s2084_s12 }
   0xb   : > { %p294_p8 = scmp.lt.s32.totalorder (!%p210_p3), %s291_s8, 7 }
  0x10   : > { %s2538_s13 = smov (!%p269_p5, %s2088_s13), 1  ;;  %s2540_s8 = smov (!%p294_p8, %s291_s8), 7 }
  0x11   : > { %s272_s19 = scalar_select %p271_p6, %s2084_s12, 3 }
  0x12   : > { %s1613_s20 = sshll.u32 %s2538_s13, 7  ;;  %s1616_s27 = sshll.u32 %s2538_s13, 6 }
  0x13   : > { %s1612_s21 = sshll.u32 %s272_s19, 5  ;;  %s1618_s9 = sshll.u32 %s2540_s8, 3 }
  0x14   : > { %s2160_s22 = sadd.s32 %s1613_s20, %s1612_s21  ;;  %s298_s10 = sadd.s32 %s1618_s9, %s1616_s27 }
  0x15   : > { %s1614_s23 = sshll.u32 %s2160_s22, 2  ;;  %s1620_s11 = sshll.u32 %s298_s10, 2 }
  0x16   : > { %s2168_s26 = scalar_lea.vmem %s2523_s0, %s1614_s23  ;;  %s300_s20 = scalar_lea.vmem %s2525_s2, %s1620_s11 }
  0x17   : > { %s285_s28 = scalar_select %p284_p7, %s2084_s12, 7  ;;  %v1914_v0 = vld [vmem:[%s2168_s26] sm:$0xff]   ;;  %v1915_v9 = vld [vmem:[%s2168_s26 + $0x8] sm:$0xff]   ;;  %v1916_v10 = vld [vmem:[%s2168_s26 + $0x10] sm:$0xff]  }
  0x18   : > { %1794 = vmatprep.mubr.msk.bf16.mxu0 %vm465_vm0, %v1914_v0  ;;  %v1917_v11 = vld [vmem:[%s2168_s26 + $0x18] sm:$0xff]   ;;  %v1918_v12 = vld [vmem:[%s2168_s26 + $0x20] sm:$0xff]   ;;  %v1919_v13 = vld [vmem:[%s2168_s26 + $0x28] sm:$0xff]   ;;  %s2436_s24 = scalar_lea.vmem %s2526_s3, %s1614_s23 }
  0x19   : > { %s1615_s29 = sshll.u32 %s285_s28, 3  ;;  %v1920_v14 = vld [vmem:[%s2168_s26 + $0x30] sm:$0xff]   ;;  %v1921_v15 = vld [vmem:[%s2168_s26 + $0x38] sm:$0xff]   ;;  %v1922_v16 = vld [vmem:[%s2168_s26 + $0x40] sm:$0xff]  }
  0x1a   : > { %s288_s30 = sadd.s32 %s1616_s27, %s1615_s29  ;;  %v1923_v17 = vld [vmem:[%s2168_s26 + $0x48] sm:$0xff]   ;;  %v1924_v18 = vld [vmem:[%s2168_s26 + $0x50] sm:$0xff]   ;;  %v1925_v19 = vld [vmem:[%s2168_s26 + $0x58] sm:$0xff]  }
  0x1b   : > { %s1617_s4 = sshll.u32 %s288_s30, 2  ;;  %v1926_v20 = vld [vmem:[%s2168_s26 + $0x60] sm:$0xff]   ;;  %v1927_v21 = vld [vmem:[%s2168_s26 + $0x68] sm:$0xff]   ;;  %v1928_v22 = vld [vmem:[%s2168_s26 + $0x70] sm:$0xff]  }
  0x1c   : > { %s290_s7 = scalar_lea.vmem %s2524_s1, %s1617_s4  ;;  %v1929_v23 = vld [vmem:[%s2168_s26 + $0x78] sm:$0xff]   ;;  %v1930_v47 = vld [vmem:[%s300_s20] sm:$0xff]   ;;  %v1931_v51 = vld [vmem:[%s300_s20 + $0x8] sm:$0xff]  }
  0x1d   : > { %v1910_v1 = vld [vmem:[%s290_s7] sm:$0xff]   ;;  %v1911_v2 = vld [vmem:[%s290_s7 + $0x8] sm:$0xff]   ;;  %v1912_v5 = vld [vmem:[%s290_s7 + $0x10] sm:$0xff]   ;;  %1826 = vmatprep.subr.bf16.mxu1 %v1930_v47 }
  0x1e   : > { %1866 = vmatprep.subr.msk.bf16.mxu0 %vm465_vm0, %v1910_v1  ;;  %v515_v3 = vsel %vm465_vm0, %v1910_v1, 0  ;;  %v518_v4 = vsel %vm465_vm0, %v1911_v2, 0  ;;  %v521_v6 = vsel %vm465_vm0, %v1912_v5, 0  ;;  %v1913_v7 = vld [vmem:[%s290_s7 + $0x18] sm:$0xff]   ;;  %1827 = vmatpush3.bf16.msra.mxu1 %v1930_v47  ;;  %v1932_v56 = vld [vmem:[%s300_s20 + $0x10] sm:$0xff]  }
  0x1f   : > { %1787 = vmatpush3.bf16.xpose.msra.mxu0 %v515_v3  ;;  %v524_v8 = vsel %vm465_vm0, %v1913_v7, 0  ;;  %1828 = vmatprep.subr.bf16.mxu1 %v1931_v51  ;;  %v1933_v61 = vld [vmem:[%s300_s20 + $0x18] sm:$0xff]  }
  0x20   : > { %1867 = vmatprep.subr.msk.bf16.mxu0 %vm465_vm0, %v1911_v2 }
  0x22   : > { %1829 = vmatpush3.bf16.msra.mxu1 %v1931_v51 }
  0x23   : > { %1830 = vmatprep.subr.bf16.mxu1 %v1932_v56 }
  0x26   : > { %1831 = vmatpush3.bf16.msra.mxu1 %v1932_v56 }
  0x27   : > { %1789 = vmatpush3.bf16.xpose.msra.mxu0 %v518_v4  ;;  %1832 = vmatprep.subr.bf16.mxu1 %v1933_v61 }
  0x28   : > { %1868 = vmatprep.subr.msk.bf16.mxu0 %vm465_vm0, %v1912_v5 }
  0x2a   : > { %1833 = vmatpush3.bf16.msra.mxu1 %v1933_v61 }
  0x2f   : > { %1791 = vmatpush3.bf16.xpose.msra.mxu0 %v521_v6 }
  0x30   : > { %1869 = vmatprep.subr.msk.bf16.mxu0 %vm465_vm0, %v1913_v7 }
  0x37   : > { %1793 = vmatpush3.bf16.xpose.msra.mxu0 %v524_v8 }
  0x3e   : > { %1795 = vmatmul.mubr.msk.bf16.vlgmr.msra.gmra.mrb[0].mxu0 %vm465_vm0, %v1915_v9 }
  0x3f   : > { %1798 = vmatprep.mubr.msk.bf16.mxu0 %vm465_vm0, %v1916_v10 }
  0x46   : > { %1799 = vmatmul.mubr.msk.bf16.gmra.mrb[4].mxu0 %vm465_vm0, %v1917_v11 }
  0x47   : > { %1802 = vmatprep.mubr.msk.bf16.mxu0 %vm465_vm0, %v1918_v12 }
  0x4e   : > { %1803 = vmatmul.mubr.msk.bf16.gmra.mrb[8].mxu0 %vm465_vm0, %v1919_v13 }
  0x4f   : > { %1806 = vmatprep.mubr.msk.bf16.mxu0 %vm465_vm0, %v1920_v14 }
  0x56   : > { %1807 = vmatmul.mubr.msk.bf16.gmra.mrb[12].mxu0 %vm465_vm0, %v1921_v15 }
  0x57   : > { %1810 = vmatprep.mubr.msk.bf16.mxu0 %vm465_vm0, %v1922_v16 }
  0x5e   : > { %1811 = vmatmul.mubr.msk.bf16.gmra.mrb[16].mxu0 %vm465_vm0, %v1923_v17 }
  0x5f   : > { %1814 = vmatprep.mubr.msk.bf16.mxu0 %vm465_vm0, %v1924_v18 }
  0x66   : > { %1815 = vmatmul.mubr.msk.bf16.gmra.mrb[20].mxu0 %vm465_vm0, %v1925_v19 }
  0x67   : > { %1818 = vmatprep.mubr.msk.bf16.mxu0 %vm465_vm0, %v1926_v20 }
  0x6e   : > { %1819 = vmatmul.mubr.msk.bf16.gmra.mrb[24].mxu0 %vm465_vm0, %v1927_v21 }
  0x6f   : > { %1822 = vmatprep.mubr.msk.bf16.mxu0 %vm465_vm0, %v1928_v22 }
  0x76   : > { %1823 = vmatmul.mubr.msk.bf16.gmra.mrb[28].mxu0 %vm465_vm0, %v1929_v23 }
 0x111   : > { %v2217_v24 = vpop.f32.mrb[0].mxu0 }
 0x112   : > { %v2219_v25 = vpop.f32.mrb[1].mxu0  ;;  %v694_v26 = vsel %vm687_vm1, %v2217_v24, -inf }
 0x113   : > { %695 = vmax.xlane.f32.xlu1 %v694_v26  ;;  %v2223_v27 = vpop.f32.mrb[2].mxu0  ;;  %v688_v28 = vsel %vm687_vm1, %v2219_v25, -inf }
 0x114   : > { %689 = vmax.xlane.f32.xlu0 %v688_v28  ;;  %v2227_v29 = vpop.f32.mrb[3].mxu0  ;;  %v697_v30 = vsel %vm687_vm1, %v2223_v27, -inf }
 0x115   : > { %v691_v31 = vsel %vm687_vm1, %v2227_v29, -inf }
 0x117   : > { %698 = vmax.xlane.f32.xlu1 %v697_v30 }
 0x118   : > { %692 = vmax.xlane.f32.xlu0 %v691_v31 }
 0x119   : > { %v2233_v32 = vpop.f32.mrb[4].mxu0 }
 0x11a   : > { %v2235_v33 = vpop.f32.mrb[5].mxu0  ;;  %v706_v38 = vsel %vm687_vm1, %v2233_v32, -inf }
 0x11b   : > { %v2237_v34 = vpop.f32.mrb[6].mxu0  ;;  %v700_v35 = vsel %vm687_vm1, %v2235_v33, -inf }
 0x11c   : > { %701 = vmax.xlane.f32.xlu0 %v700_v35  ;;  %v2241_v36 = vpop.f32.mrb[7].mxu0  ;;  %v709_v40 = vsel %vm687_vm1, %v2237_v34, -inf }
 0x11d   : > { %v703_v37 = vsel %vm687_vm1, %v2241_v36, -inf }
 0x11e   : > { %704 = vmax.xlane.f32.xlu1 %v703_v37 }
 0x120   : > { %707 = vmax.xlane.f32.xlu0 %v706_v38 }
 0x121   : > { %v2248_v39 = vpop.f32.mrb[8].mxu0 }
 0x122   : > { %710 = vmax.xlane.f32.xlu1 %v709_v40  ;;  %v2252_v41 = vpop.f32.mrb[9].mxu0  ;;  %v718_v46 = vsel %vm687_vm1, %v2248_v39, -inf }
 0x123   : > { %v2254_v42 = vpop.f32.mrb[10].mxu0  ;;  %v712_v43 = vsel %vm687_vm1, %v2252_v41, -inf }
 0x124   : > { %713 = vmax.xlane.f32.xlu0 %v712_v43  ;;  %v2260_v44 = vpop.f32.mrb[11].mxu0  ;;  %v721_v49 = vsel %vm687_vm1, %v2254_v42, -inf }
 0x125   : > { %v715_v45 = vsel %vm687_vm1, %v2260_v44, -inf }
 0x126   : > { %716 = vmax.xlane.f32.xlu1 %v715_v45 }
 0x128   : > { %719 = vmax.xlane.f32.xlu0 %v718_v46 }
 0x129   : > { %v2269_v48 = vpop.f32.mrb[12].mxu0 }
 0x12a   : > { %722 = vmax.xlane.f32.xlu1 %v721_v49  ;;  %v2273_v50 = vpop.f32.mrb[13].mxu0  ;;  %v730_v57 = vsel %vm687_vm1, %v2269_v48, -inf }
 0x12b   : > { %v2275_v52 = vpop.f32.mrb[14].mxu0  ;;  %v724_v53 = vsel %vm687_vm1, %v2273_v50, -inf }
 0x12c   : > { %725 = vmax.xlane.f32.xlu0 %v724_v53  ;;  %v2279_v54 = vpop.f32.mrb[15].mxu0  ;;  %v733_v59 = vsel %vm687_vm1, %v2275_v52, -inf }
 0x12d   : > { %v727_v55 = vsel %vm687_vm1, %v2279_v54, -inf }
 0x12e   : > { %728 = vmax.xlane.f32.xlu1 %v727_v55 }
 0x130   : > { %731 = vmax.xlane.f32.xlu0 %v730_v57 }
 0x131   : > { %v2285_v58 = vpop.f32.mrb[16].mxu0 }
 0x132   : > { %734 = vmax.xlane.f32.xlu1 %v733_v59  ;;  %v2289_v60 = vpop.f32.mrb[17].mxu0  ;;  %v742_v2 = vsel %vm687_vm1, %v2285_v58, -inf }
 0x133   : > { %v2291_v62 = vpop.f32.mrb[18].mxu0  ;;  %v736_v63 = vsel %vm687_vm1, %v2289_v60, -inf }
 0x134   : > { %737 = vmax.xlane.f32.xlu0 %v736_v63  ;;  %v2295_v0 = vpop.f32.mrb[19].mxu0  ;;  %v745_v4 = vsel %vm687_vm1, %v2291_v62, -inf }
 0x135   : > { %v739_v1 = vsel %vm687_vm1, %v2295_v0, -inf }
 0x136   : > { %740 = vmax.xlane.f32.xlu1 %v739_v1 }
 0x138   : > { %743 = vmax.xlane.f32.xlu0 %v742_v2 }
 0x139   : > { %v2301_v3 = vpop.f32.mrb[20].mxu0 }
 0x13a   : > { %746 = vmax.xlane.f32.xlu1 %v745_v4  ;;  %v2305_v5 = vpop.f32.mrb[21].mxu0  ;;  %v754_v10 = vsel %vm687_vm1, %v2301_v3, -inf }
 0x13b   : > { %v2307_v6 = vpop.f32.mrb[22].mxu0  ;;  %v748_v7 = vsel %vm687_vm1, %v2305_v5, -inf }
 0x13c   : > { %749 = vmax.xlane.f32.xlu0 %v748_v7  ;;  %v2311_v8 = vpop.f32.mrb[23].mxu0  ;;  %v757_v12 = vsel %vm687_vm1, %v2307_v6, -inf }
 0x13d   : > { %v751_v9 = vsel %vm687_vm1, %v2311_v8, -inf }
 0x13e   : > { %752 = vmax.xlane.f32.xlu1 %v751_v9 }
 0x140   : > { %755 = vmax.xlane.f32.xlu0 %v754_v10 }
 0x141   : > { %v2317_v11 = vpop.f32.mrb[24].mxu0 }
 0x142   : > { %758 = vmax.xlane.f32.xlu1 %v757_v12  ;;  %v2321_v13 = vpop.f32.mrb[25].mxu0  ;;  %v766_v18 = vsel %vm687_vm1, %v2317_v11, -inf }
 0x143   : > { %v2323_v14 = vpop.f32.mrb[26].mxu0  ;;  %v760_v15 = vsel %vm687_vm1, %v2321_v13, -inf }
 0x144   : > { %761 = vmax.xlane.f32.xlu0 %v760_v15  ;;  %v2327_v16 = vpop.f32.mrb[27].mxu0  ;;  %v769_v20 = vsel %vm687_vm1, %v2323_v14, -inf }
 0x145   : > { %v763_v17 = vsel %vm687_vm1, %v2327_v16, -inf }
 0x146   : > { %764 = vmax.xlane.f32.xlu1 %v763_v17 }
 0x148   : > { %767 = vmax.xlane.f32.xlu0 %v766_v18 }
 0x149   : > { %v2333_v19 = vpop.f32.mrb[28].mxu0 }
 0x14a   : > { %770 = vmax.xlane.f32.xlu1 %v769_v20  ;;  %v2337_v21 = vpop.f32.mrb[29].mxu0  ;;  %v778_v30 = vsel %vm687_vm1, %v2333_v19, -inf }
 0x14b   : > { %v2339_v22 = vpop.f32.mrb[30].mxu0  ;;  %v772_v23 = vsel %vm687_vm1, %v2337_v21, -inf }
 0x14c   : > { %773 = vmax.xlane.f32.xlu0 %v772_v23  ;;  %v2343_v26 = vpop.f32.mrb[31].mxu0  ;;  %v781_v31 = vsel %vm687_vm1, %v2339_v22, -inf }
 0x14d   : > { %v775_v28 = vsel %vm687_vm1, %v2343_v26, -inf }
 0x14e   : > { %776 = vmax.xlane.f32.xlu1 %v775_v28 }
 0x150   : > { %779 = vmax.xlane.f32.xlu0 %v778_v30 }
 0x152   : > { %782 = vmax.xlane.f32.xlu1 %v781_v31 }
 0x1a0   : > { %v696_v35 = vpop.xlane.xlu1 %695 }
 0x1a1   : > { %v786_v37 = vsub.f32 %v2217_v24, %v696_v35  ;;  %v690_v38 = vpop.xlane.xlu0 %689 }
 0x1a2   : > { %v784_v40 = vsub.f32 %v2219_v25, %v690_v38 }
 0x1a3   : > { %v820_v43 = vmul.f32 1.442695, %v786_v37 }
 0x1a4   : > { %v816_v45 = vmul.f32 1.442695, %v784_v40  ;;  %v699_v46 = vpop.xlane.xlu1 %698 }
 0x1a5   : > { %1934 = vpow2.f32 %v820_v43  ;;  %v787_v47 = vsub.f32 %v2223_v27, %v699_v46  ;;  %v693_v49 = vpop.xlane.xlu0 %692 }
 0x1a6   : > { %1936 = vpow2.f32 %v816_v45  ;;  %v785_v51 = vsub.f32 %v2227_v29, %v693_v49 }
 0x1a7   : > { %v822_v53 = vmul.f32 1.442695, %v787_v47 }
 0x1a8   : > { %v818_v55 = vmul.f32 1.442695, %v785_v51 }
 0x1a9   : > { %1938 = vpow2.f32 %v822_v53  ;;  %v702_v56 = vpop.xlane.xlu0 %701 }
 0x1aa   : > { %1940 = vpow2.f32 %v818_v55  ;;  %v788_v24 = vsub.f32 %v2235_v33, %v702_v56 }
 0x1ab   : > { %v705_v57 = vpop.xlane.xlu1 %704 }
 0x1ac   : > { %v824_v59 = vmul.f32 1.442695, %v788_v24  ;;  %v789_v25 = vsub.f32 %v2241_v36, %v705_v57 }
 0x1ad   : > { %v708_v61 = vpop.xlane.xlu0 %707 }
 0x1ae   : > { %v826_v63 = vmul.f32 1.442695, %v789_v25  ;;  %v790_v1 = vsub.f32 %v2233_v32, %v708_v61  ;;  %1942 = vpow2.f32 %v824_v59 }
 0x1af   : > { %v1935_v27 = vpop.eup %1934  ;;  %v711_v2 = vpop.xlane.xlu1 %710 }
 0x1b0   : > { %v1937_v4 = vpop.eup %1936  ;;  %1944 = vpow2.f32 %v826_v63  ;;  %v828_v29 = vmul.f32 1.442695, %v790_v1  ;;  %v791_v7 = vsub.f32 %v2237_v34, %v711_v2  ;;  %v886_v9 = vsel %vm687_vm1, %v1935_v27, 0.0 }
 0x1b1   : > { %v714_v10 = vpop.xlane.xlu0 %713  ;;  %887 = vadd.xlane.f32.xlu0 %v886_v9  ;;  %v880_v32 = vsel %vm687_vm1, %v1937_v4, 0.0 }
 0x1b2   : > { %1946 = vpow2.f32 %v828_v29  ;;  %v830_v33 = vmul.f32 1.442695, %v791_v7  ;;  %v792_v36 = vsub.f32 %v2252_v41, %v714_v10 }
 0x1b3   : > { %v1939_v12 = vpop.eup %1938  ;;  %v717_v15 = vpop.xlane.xlu1 %716 }
 0x1b4   : > { %v1941_v17 = vpop.eup %1940  ;;  %1948 = vpow2.f32 %v830_v33  ;;  %v832_v18 = vmul.f32 1.442695, %v792_v36  ;;  %v793_v20 = vsub.f32 %v2260_v44, %v717_v15  ;;  %v889_v23 = vsel %vm687_vm1, %v1939_v12, 0.0 }
 0x1b5   : > { %v720_v34 = vpop.xlane.xlu0 %719  ;;  %881 = vadd.xlane.f32.xlu0 %v880_v32  ;;  %890 = vadd.xlane.f32.xlu1 %v889_v23  ;;  %v1008_v28 = vpack.c.bf16 %v1941_v17, %v1937_v4  ;;  %v1009_v30 = vpack.c.bf16 %v1939_v12, %v1935_v27  ;;  %v883_v44 = vsel %vm687_vm1, %v1941_v17, 0.0 }
 0x1b6   : > { %v834_v31 = vmul.f32 1.442695, %v793_v20  ;;  %v794_v35 = vsub.f32 %v2248_v39, %v720_v34  ;;  %1950 = vpow2.f32 %v832_v18 }
 0x1b7   : > { %1834 = vmatprep.mubr.msk.bf16.mxu1 %vm687_vm1, %v1008_v28  ;;  %v723_v41 = vpop.xlane.xlu1 %722 }
 0x1b8   : > { %1952 = vpow2.f32 %v834_v31  ;;  %v836_v37 = vmul.f32 1.442695, %v794_v35  ;;  %v795_v38 = vsub.f32 %v2254_v42, %v723_v41  ;;  %1835 = vmatmul.mubr.msk.bf16.vlgmr.msra.gmra.mrb[0].mxu1 %vm687_vm1, %v1009_v30  ;;  %v1943_v40 = vpop.eup %1942 }
 0x1b9   : > { %v726_v43 = vpop.xlane.xlu0 %725  ;;  %884 = vadd.xlane.f32.xlu1 %v883_v44  ;;  %v892_v2 = vsel %vm687_vm1, %v1943_v40, 0.0 }
 0x1ba   : > { %v1945_v45 = vpop.eup %1944  ;;  %1954 = vpow2.f32 %v836_v37  ;;  %v838_v46 = vmul.f32 1.442695, %v795_v38  ;;  %v796_v39 = vsub.f32 %v2273_v50, %v726_v43 }
 0x1bb   : > { %v729_v47 = vpop.xlane.xlu1 %728  ;;  %v1010_v49 = vpack.c.bf16 %v1945_v45, %v1943_v40  ;;  %v895_v9 = vsel %vm687_vm1, %v1945_v45, 0.0 }
 0x1bc   : > { %v1947_v51 = vpop.eup %1946  ;;  %1956 = vpow2.f32 %v838_v46  ;;  %v840_v53 = vmul.f32 1.442695, %v796_v39  ;;  %v797_v55 = vsub.f32 %v2279_v54, %v729_v47 }
 0x1bd   : > { %1838 = vmatprep.mubr.msk.bf16.mxu1 %vm687_vm1, %v1010_v49  ;;  %v732_v42 = vpop.xlane.xlu0 %731  ;;  %v898_v56 = vsel %vm687_vm1, %v1947_v51, 0.0 }
 0x1be   : > { %v1949_v24 = vpop.eup %1948  ;;  %v842_v57 = vmul.f32 1.442695, %v797_v55  ;;  %v798_v59 = vsub.f32 %v2269_v48, %v732_v42  ;;  %899 = vadd.xlane.f32.xlu0 %v898_v56  ;;  %1958 = vpow2.f32 %v840_v53 }
 0x1bf   : > { %v735_v25 = vpop.xlane.xlu1 %734  ;;  %v901_v50 = vsel %vm687_vm1, %v1949_v24, 0.0  ;;  %v1011_v61 = vpack.c.bf16 %v1949_v24, %v1947_v51 }
 0x1c0   : > { %1960 = vpow2.f32 %v842_v57  ;;  %v844_v63 = vmul.f32 1.442695, %v798_v59  ;;  %v799_v1 = vsub.f32 %v2275_v52, %v735_v25  ;;  %902 = vadd.xlane.f32.xlu1 %v901_v50  ;;  %v1951_v54 = vpop.eup %1950 }
 0x1c1   : > { %1839 = vmatmul.mubr.msk.bf16.gmra.mrb[4].mxu1 %vm687_vm1, %v1011_v61  ;;  %v738_v27 = vpop.xlane.xlu0 %737  ;;  %v904_v31 = vsel %vm687_vm1, %v1951_v54, 0.0 }
 0x1c2   : > { %v1953_v4 = vpop.eup %1952  ;;  %1962 = vpow2.f32 %v844_v63  ;;  %v846_v48 = vmul.f32 1.442695, %v799_v1  ;;  %v800_v29 = vsub.f32 %v2289_v60, %v738_v27  ;;  %893 = vadd.xlane.f32.xlu0 %v892_v2 }
 0x1c3   : > { %v741_v7 = vpop.xlane.xlu1 %740  ;;  %v1012_v10 = vpack.c.bf16 %v1953_v4, %v1951_v54  ;;  %v907_v38 = vsel %vm687_vm1, %v1953_v4, 0.0 }
 0x1c4   : > { %v1955_v33 = vpop.eup %1954  ;;  %1964 = vpow2.f32 %v846_v48  ;;  %v848_v52 = vmul.f32 1.442695, %v800_v29  ;;  %v801_v36 = vsub.f32 %v2295_v0, %v741_v7  ;;  %896 = vadd.xlane.f32.xlu1 %v895_v9 }
 0x1c5   : > { %1842 = vmatprep.mubr.msk.bf16.mxu1 %vm687_vm1, %v1012_v10  ;;  %v744_v12 = vpop.xlane.xlu0 %743  ;;  %v910_v15 = vsel %vm687_vm1, %v1955_v33, 0.0 }
 0x1c6   : > { %v1957_v32 = vpop.eup %1956  ;;  %v850_v17 = vmul.f32 1.442695, %v801_v36  ;;  %v802_v60 = vsub.f32 %v2285_v58, %v744_v12  ;;  %911 = vadd.xlane.f32.xlu0 %v910_v15  ;;  %1966 = vpow2.f32 %v848_v52 }
 0x1c7   : > { %v747_v18 = vpop.xlane.xlu1 %746  ;;  %v913_v20 = vsel %vm687_vm1, %v1957_v32, 0.0  ;;  %v1013_v23 = vpack.c.bf16 %v1957_v32, %v1955_v33 }
 0x1c8   : > { %1968 = vpow2.f32 %v850_v17  ;;  %v852_v34 = vmul.f32 1.442695, %v802_v60  ;;  %v803_v0 = vsub.f32 %v2291_v62, %v747_v18  ;;  %914 = vadd.xlane.f32.xlu1 %v913_v20  ;;  %v1959_v28 = vpop.eup %1958 }
 0x1c9   : > { %1843 = vmatmul.mubr.msk.bf16.gmra.mrb[8].mxu1 %vm687_vm1, %v1013_v23  ;;  %v750_v30 = vpop.xlane.xlu0 %749  ;;  %v916_v24 = vsel %vm687_vm1, %v1959_v28, 0.0 }
 0x1ca   : > { %v1961_v35 = vpop.eup %1960  ;;  %1970 = vpow2.f32 %v852_v34  ;;  %v854_v58 = vmul.f32 1.442695, %v803_v0  ;;  %v804_v41 = vsub.f32 %v2305_v5, %v750_v30  ;;  %905 = vadd.xlane.f32.xlu0 %v904_v31 }
 0x1cb   : > { %v753_v37 = vpop.xlane.xlu1 %752  ;;  %v1014_v44 = vpack.c.bf16 %v1961_v35, %v1959_v28  ;;  %v919_v50 = vsel %vm687_vm1, %v1961_v35, 0.0 }
 0x1cc   : > { %v1963_v40 = vpop.eup %1962  ;;  %1972 = vpow2.f32 %v854_v58  ;;  %v856_v62 = vmul.f32 1.442695, %v804_v41  ;;  %v805_v43 = vsub.f32 %v2311_v8, %v753_v37  ;;  %908 = vadd.xlane.f32.xlu1 %v907_v38 }
 0x1cd   : > { %1846 = vmatprep.mubr.msk.bf16.mxu1 %vm687_vm1, %v1014_v44  ;;  %v756_v45 = vpop.xlane.xlu0 %755  ;;  %v922_v46 = vsel %vm687_vm1, %v1963_v40, 0.0 }
 0x1ce   : > { %v1965_v39 = vpop.eup %1964  ;;  %v858_v47 = vmul.f32 1.442695, %v805_v43  ;;  %v806_v5 = vsub.f32 %v2301_v3, %v756_v45  ;;  %923 = vadd.xlane.f32.xlu0 %v922_v46  ;;  %1974 = vpow2.f32 %v856_v62 }
 0x1cf   : > { %v759_v49 = vpop.xlane.xlu1 %758  ;;  %v925_v51 = vsel %vm687_vm1, %v1965_v39, 0.0  ;;  %v1015_v53 = vpack.c.bf16 %v1965_v39, %v1963_v40 }
 0x1d0   : > { %1976 = vpow2.f32 %v858_v47  ;;  %v860_v55 = vmul.f32 1.442695, %v806_v5  ;;  %v807_v8 = vsub.f32 %v2307_v6, %v759_v49  ;;  %926 = vadd.xlane.f32.xlu1 %v925_v51  ;;  %v1967_v42 = vpop.eup %1966 }
 0x1d1   : > { %1847 = vmatmul.mubr.msk.bf16.gmra.mrb[12].mxu1 %vm687_vm1, %v1015_v53  ;;  %v762_v56 = vpop.xlane.xlu0 %761  ;;  %v928_v52 = vsel %vm687_vm1, %v1967_v42, 0.0 }
 0x1d2   : > { %v1969_v57 = vpop.eup %1968  ;;  %1978 = vpow2.f32 %v860_v55  ;;  %v862_v3 = vmul.f32 1.442695, %v807_v8  ;;  %v808_v59 = vsub.f32 %v2321_v13, %v762_v56  ;;  %917 = vadd.xlane.f32.xlu0 %v916_v24 }
 0x1d3   : > { %v765_v25 = vpop.xlane.xlu1 %764  ;;  %v1016_v61 = vpack.c.bf16 %v1969_v57, %v1967_v42  ;;  %v931_v32 = vsel %vm687_vm1, %v1969_v57, 0.0 }
 0x1d4   : > { %v1971_v63 = vpop.eup %1970  ;;  %1980 = vpow2.f32 %v862_v3  ;;  %v864_v6 = vmul.f32 1.442695, %v808_v59  ;;  %v809_v1 = vsub.f32 %v2327_v16, %v765_v25  ;;  %920 = vadd.xlane.f32.xlu1 %v919_v50 }
 0x1d5   : > { %1850 = vmatprep.mubr.msk.bf16.mxu1 %vm687_vm1, %v1016_v61  ;;  %v768_v54 = vpop.xlane.xlu0 %767  ;;  %v934_v27 = vsel %vm687_vm1, %v1971_v63, 0.0 }
 0x1d6   : > { %v1973_v2 = vpop.eup %1972  ;;  %v866_v4 = vmul.f32 1.442695, %v809_v1  ;;  %v810_v13 = vsub.f32 %v2317_v11, %v768_v54  ;;  %935 = vadd.xlane.f32.xlu0 %v934_v27  ;;  %1982 = vpow2.f32 %v864_v6 }
 0x1d7   : > { %v771_v48 = vpop.xlane.xlu1 %770  ;;  %v937_v29 = vsel %vm687_vm1, %v1973_v2, 0.0  ;;  %v1017_v7 = vpack.c.bf16 %v1973_v2, %v1971_v63 }
 0x1d8   : > { %1984 = vpow2.f32 %v866_v4  ;;  %v868_v9 = vmul.f32 1.442695, %v810_v13  ;;  %v811_v16 = vsub.f32 %v2323_v14, %v771_v48  ;;  %938 = vadd.xlane.f32.xlu1 %v937_v29  ;;  %v1975_v10 = vpop.eup %1974 }
 0x1d9   : > { %1851 = vmatmul.mubr.msk.bf16.gmra.mrb[16].mxu1 %vm687_vm1, %v1017_v7  ;;  %v774_v33 = vpop.xlane.xlu0 %773  ;;  %v940_v41 = vsel %vm687_vm1, %v1975_v10, 0.0 }
 0x1da   : > { %v1977_v36 = vpop.eup %1976  ;;  %1986 = vpow2.f32 %v868_v9  ;;  %v870_v11 = vmul.f32 1.442695, %v811_v16  ;;  %v812_v12 = vsub.f32 %v2337_v21, %v774_v33  ;;  %929 = vadd.xlane.f32.xlu0 %v928_v52 }
 0x1db   : > { %v777_v15 = vpop.xlane.xlu1 %776  ;;  %v1018_v17 = vpack.c.bf16 %v1977_v36, %v1975_v10 }
 0x1dc   : > { %v1979_v60 = vpop.eup %1978  ;;  %1988 = vpow2.f32 %v870_v11  ;;  %v872_v14 = vmul.f32 1.442695, %v812_v12  ;;  %v813_v18 = vsub.f32 %v2343_v26, %v777_v15  ;;  %932 = vadd.xlane.f32.xlu1 %v931_v32 }
 0x1dd   : > { %1854 = vmatprep.mubr.msk.bf16.mxu1 %vm687_vm1, %v1018_v17  ;;  %v780_v20 = vpop.xlane.xlu0 %779  ;;  %v946_v23 = vsel %vm687_vm1, %v1979_v60, 0.0 }
 0x1de   : > { %v1981_v34 = vpop.eup %1980  ;;  %v874_v0 = vmul.f32 1.442695, %v813_v18  ;;  %v814_v21 = vsub.f32 %v2333_v19, %v780_v20  ;;  %947 = vadd.xlane.f32.xlu0 %v946_v23  ;;  %1990 = vpow2.f32 %v872_v14  ;;  %v943_v19 = vsel %vm687_vm1, %v1977_v36, 0.0 }
 0x1df   : > { %v783_v28 = vpop.xlane.xlu1 %782  ;;  %v949_v30 = vsel %vm687_vm1, %v1981_v34, 0.0  ;;  %v1019_v31 = vpack.c.bf16 %v1981_v34, %v1979_v60 }
 0x1e0   : > { %1992 = vpow2.f32 %v874_v0  ;;  %v876_v35 = vmul.f32 1.442695, %v814_v21  ;;  %v815_v26 = vsub.f32 %v2339_v22, %v783_v28  ;;  %950 = vadd.xlane.f32.xlu1 %v949_v30  ;;  %v1983_v58 = vpop.eup %1982 }
 0x1e1   : > { %1855 = vmatmul.mubr.msk.bf16.gmra.mrb[20].mxu1 %vm687_vm1, %v1019_v31  ;;  %v952_v39 = vsel %vm687_vm1, %v1983_v58, 0.0 }
 0x1e2   : > { %v1985_v37 = vpop.eup %1984  ;;  %v878_v38 = vmul.f32 1.442695, %v815_v26  ;;  %941 = vadd.xlane.f32.xlu0 %v940_v41  ;;  %1994 = vpow2.f32 %v876_v35 }
 0x1e3   : > { %v1020_v44 = vpack.c.bf16 %v1985_v37, %v1983_v58  ;;  %v955_v5 = vsel %vm687_vm1, %v1985_v37, 0.0 }
 0x1e4   : > { %v1987_v40 = vpop.eup %1986  ;;  %1996 = vpow2.f32 %v878_v38  ;;  %944 = vadd.xlane.f32.xlu1 %v943_v19 }
 0x1e5   : > { %1858 = vmatprep.mubr.msk.bf16.mxu1 %vm687_vm1, %v1020_v44  ;;  %v958_v22 = vsel %vm687_vm1, %v1987_v40, 0.0 }
 0x1e6   : > { %v1989_v62 = vpop.eup %1988  ;;  %959 = vadd.xlane.f32.xlu0 %v958_v22 }
 0x1e7   : > { %v961_v43 = vsel %vm687_vm1, %v1989_v62, 0.0  ;;  %v1021_v45 = vpack.c.bf16 %v1989_v62, %v1987_v40 }
 0x1e8   : > { %962 = vadd.xlane.f32.xlu1 %v961_v43  ;;  %v1991_v46 = vpop.eup %1990 }
 0x1e9   : > { %1859 = vmatmul.mubr.msk.bf16.gmra.mrb[24].mxu1 %vm687_vm1, %v1021_v45  ;;  %v964_v53 = vsel %vm687_vm1, %v1991_v46, 0.0 }
 0x1ea   : > { %v1993_v47 = vpop.eup %1992  ;;  %953 = vadd.xlane.f32.xlu0 %v952_v39 }
 0x1eb   : > { %v1022_v49 = vpack.c.bf16 %v1993_v47, %v1991_v46  ;;  %v967_v8 = vsel %vm687_vm1, %v1993_v47, 0.0 }
 0x1ec   : > { %956 = vadd.xlane.f32.xlu1 %v955_v5  ;;  %v1995_v51 = vpop.eup %1994 }
 0x1ed   : > { %1862 = vmatprep.mubr.msk.bf16.mxu1 %vm687_vm1, %v1022_v49  ;;  %v970_v56 = vsel %vm687_vm1, %v1995_v51, 0.0 }
 0x1ee   : > { %v1997_v55 = vpop.eup %1996  ;;  %965 = vadd.xlane.f32.xlu0 %v964_v53 }
 0x1ef   : > { %v1023_v42 = vpack.c.bf16 %v1997_v55, %v1995_v51  ;;  %v973_v24 = vsel %vm687_vm1, %v1997_v55, 0.0 }
 0x1f0   : > { %968 = vadd.xlane.f32.xlu1 %v967_v8 }
 0x1f1   : > { %1863 = vmatmul.mubr.msk.bf16.gmra.mrb[28].mxu1 %vm687_vm1, %v1023_v42 }
 0x1f2   : > { %971 = vadd.xlane.f32.xlu0 %v970_v56 }
 0x1f4   : > { %974 = vadd.xlane.f32.xlu1 %v973_v24 }
 0x23e   : > { %v888_v57 = vpop.xlane.xlu0 %887 }
 0x23f   : > { %1998 = vrcp.f32 %v888_v57 }
 0x242   : > { %v891_v3 = vpop.xlane.xlu1 %890  ;;  %v882_v59 = vpop.xlane.xlu0 %881 }
 0x243   : > { %2000 = vrcp.f32 %v882_v59 }
 0x244   : > { %2002 = vrcp.f32 %v891_v3 }
 0x246   : > { %v885_v25 = vpop.xlane.xlu1 %884 }
 0x247   : > { %2004 = vrcp.f32 %v885_v25 }
 0x249   : > { %v1999_v7 = vpop.eup %1998 }
 0x24b   : > { %v900_v50 = vpop.xlane.xlu0 %899 }
 0x24c   : > { %2006 = vrcp.f32 %v900_v50 }
 0x24d   : > { %v903_v61 = vpop.xlane.xlu1 %902  ;;  %v2001_v16 = vpop.eup %2000 }
 0x24e   : > { %v2003_v52 = vpop.eup %2002 }
 0x24f   : > { %v894_v63 = vpop.xlane.xlu0 %893 }
 0x250   : > { %2008 = vrcp.f32 %v894_v63 }
 0x251   : > { %v897_v6 = vpop.xlane.xlu1 %896  ;;  %2010 = vrcp.f32 %v903_v61  ;;  %v2005_v15 = vpop.eup %2004 }
 0x252   : > { %2012 = vrcp.f32 %v897_v6 }
 0x253   : > { %v912_v1 = vpop.xlane.xlu0 %911 }
 0x254   : > { %2014 = vrcp.f32 %v912_v1 }
 0x255   : > { %v915_v54 = vpop.xlane.xlu1 %914 }
 0x256   : > { %v2007_v21 = vpop.eup %2006 }
 0x257   : > { %v906_v27 = vpop.xlane.xlu0 %905 }
 0x258   : > { %2016 = vrcp.f32 %v906_v27 }
 0x259   : > { %v909_v2 = vpop.xlane.xlu1 %908  ;;  %2018 = vrcp.f32 %v915_v54 }
 0x25a   : > { %v2009_v30 = vpop.eup %2008  ;;  %2020 = vrcp.f32 %v909_v2 }
 0x25b   : > { %v924_v4 = vpop.xlane.xlu0 %923  ;;  %v2011_v58 = vpop.eup %2010 }
 0x25c   : > { %v2013_v38 = vpop.eup %2012  ;;  %2022 = vrcp.f32 %v924_v4 }
 0x25d   : > { %v927_v13 = vpop.xlane.xlu1 %926 }
 0x25e   : > { %v2015_v47 = vpop.eup %2014 }
 0x25f   : > { %v918_v48 = vpop.xlane.xlu0 %917 }
 0x260   : > { %2024 = vrcp.f32 %v918_v48 }
 0x261   : > { %v921_v29 = vpop.xlane.xlu1 %920  ;;  %2026 = vrcp.f32 %v927_v13 }
 0x262   : > { %v2017_v49 = vpop.eup %2016  ;;  %2028 = vrcp.f32 %v921_v29 }
 0x263   : > { %v2438_v36 = vpop.xlane.xlu0 %935  ;;  %v2019_v55 = vpop.eup %2018 }
 0x264   : > { %v2021_v56 = vpop.eup %2020  ;;  %2030 = vrcp.f32 %v2438_v36 }
 0x265   : > { %v2440_v14 = vpop.xlane.xlu1 %938 }
 0x266   : > { %v2023_v1 = vpop.eup %2022 }
 0x267   : > { %v930_v0 = vpop.xlane.xlu0 %929 }
 0x268   : > { %2032 = vrcp.f32 %v930_v0 }
 0x269   : > { %v933_v31 = vpop.xlane.xlu1 %932  ;;  %2034 = vrcp.f32 %v2440_v14 }
 0x26a   : > { %v2025_v27 = vpop.eup %2024  ;;  %2036 = vrcp.f32 %v933_v31 }
 0x26b   : > { %v948_v43 = vpop.xlane.xlu0 %947  ;;  %v2027_v48 = vpop.eup %2026 }
 0x26c   : > { %2038 = vrcp.f32 %v948_v43 }
 0x26d   : > { %v951_v39 = vpop.xlane.xlu1 %950 }
 0x26f   : > { %v942_v24 = vpop.xlane.xlu0 %941 }
 0x270   : > { %2040 = vrcp.f32 %v942_v24 }
 0x271   : > { %v945_v61 = vpop.xlane.xlu1 %944  ;;  %2042 = vrcp.f32 %v951_v39 }
 0x272   : > { %2044 = vrcp.f32 %v945_v61 }
 0x273   : > { %v960_v2 = vpop.xlane.xlu0 %959 }
 0x274   : > { %2046 = vrcp.f32 %v960_v2 }
 0x28b   : > { %v1836_v9 = vpop.f32.mrb[0].mxu1 }
 0x28c   : > { %v1259_v10 = vmul.f32 %v1999_v7, %v1836_v9  ;;  %v1130_v33 = vpop.f32.mrb[1].mxu1  ;;  %v2029_v9 = vpop.eup %2028 }
 0x28d   : > { %v1257_v11 = vmul.f32 %v2001_v16, %v1130_v33  ;;  %v1837_v12 = vpop.f32.mrb[2].mxu1  ;;  %v963_v16 = vpop.xlane.xlu1 %962 }
 0x28e   : > { %v1716_v32 = vpack.c.bf16 %v1259_v10, %v1259_v10  ;;  %v1260_v17 = vmul.f32 %v2003_v52, %v1837_v12  ;;  %v1133_v60 = vpop.f32.mrb[3].mxu1 }
 0x28f   : > { %v1714_v18 = vpack.c.bf16 %v1257_v11, %v1257_v11  ;;  %v1258_v20 = vmul.f32 %v2005_v15, %v1133_v60 }
 0x290   : > { %1420 = vst.msk [vmem:[%s2436_s24 + $0x8] sm:$0xf] %vm1417_vm2, %v1716_v32  ;;  %v1717_v23 = vpack.c.bf16 %v1260_v17, %v1260_v17  ;;  %v954_v32 = vpop.xlane.xlu0 %953  ;;  %v2031_v17 = vpop.eup %2030 }
 0x291   : > { %1418 = vst.msk [vmem:[%s2436_s24] sm:$0xf] %vm1417_vm2, %v1714_v18  ;;  %v1715_v34 = vpack.c.bf16 %v1258_v20, %v1258_v20  ;;  %v2033_v14 = vpop.eup %2032  ;;  %v957_v18 = vpop.xlane.xlu1 %956  ;;  %2048 = vrcp.f32 %v954_v32 }
 0x292   : > { %1421 = vst.msk [vmem:[%s2436_s24 + $0xc] sm:$0xf] %vm1417_vm2, %v1717_v23  ;;  %2050 = vrcp.f32 %v963_v16 }
 0x293   : > { %1419 = vst.msk [vmem:[%s2436_s24 + $0x4] sm:$0xf] %vm1417_vm2, %v1715_v34  ;;  %v2035_v34 = vpop.eup %2034  ;;  %2052 = vrcp.f32 %v957_v18 }
 0x294   : > { %v1840_v28 = vpop.f32.mrb[4].mxu1 }
 0x295   : > { %v1263_v35 = vmul.f32 %v2007_v21, %v1840_v28  ;;  %v1146_v26 = vpop.f32.mrb[5].mxu1  ;;  %v2037_v28 = vpop.eup %2036 }
 0x296   : > { %v1261_v41 = vmul.f32 %v2009_v30, %v1146_v26  ;;  %v1841_v37 = vpop.f32.mrb[6].mxu1 }
 0x297   : > { %v1720_v19 = vpack.c.bf16 %v1263_v35, %v1263_v35  ;;  %v1264_v44 = vmul.f32 %v2011_v58, %v1841_v37  ;;  %v1149_v40 = vpop.f32.mrb[7].mxu1 }
 0x298   : > { %v1718_v22 = vpack.c.bf16 %v1261_v41, %v1261_v41  ;;  %v1262_v62 = vmul.f32 %v2013_v38, %v1149_v40  ;;  %v966_v41 = vpop.xlane.xlu0 %965 }
 0x299   : > { %1424 = vst.msk [vmem:[%s2436_s24 + $0x18] sm:$0xf] %vm1417_vm2, %v1720_v19  ;;  %v1721_v45 = vpack.c.bf16 %v1264_v44, %v1264_v44  ;;  %v969_v19 = vpop.xlane.xlu1 %968  ;;  %v2039_v44 = vpop.eup %2038 }
 0x29a   : > { %1422 = vst.msk [vmem:[%s2436_s24 + $0x10] sm:$0xf] %vm1417_vm2, %v1718_v22  ;;  %v1719_v46 = vpack.c.bf16 %v1262_v62, %v1262_v62  ;;  %v2041_v22 = vpop.eup %2040 }
 0x29b   : > { %1425 = vst.msk [vmem:[%s2436_s24 + $0x1c] sm:$0xf] %vm1417_vm2, %v1721_v45  ;;  %v2043_v45 = vpop.eup %2042 }
 0x29c   : > { %1423 = vst.msk [vmem:[%s2436_s24 + $0x14] sm:$0xf] %vm1417_vm2, %v1719_v46  ;;  %v1844_v5 = vpop.f32.mrb[8].mxu1 }
 0x29d   : > { %v1267_v51 = vmul.f32 %v2015_v47, %v1844_v5  ;;  %v1162_v53 = vpop.f32.mrb[9].mxu1  ;;  %v2045_v47 = vpop.eup %2044 }
 0x29e   : > { %v1265_v8 = vmul.f32 %v2017_v49, %v1162_v53  ;;  %v1845_v42 = vpop.f32.mrb[10].mxu1  ;;  %v972_v5 = vpop.xlane.xlu0 %971 }
 0x29f   : > { %v1724_v57 = vpack.c.bf16 %v1267_v51, %v1267_v51  ;;  %v1268_v3 = vmul.f32 %v2019_v55, %v1845_v42  ;;  %v1165_v59 = vpop.f32.mrb[11].mxu1  ;;  %v975_v42 = vpop.xlane.xlu1 %974  ;;  %2054 = vrcp.f32 %v972_v5 }
 0x2a0   : > { %v1722_v25 = vpack.c.bf16 %v1265_v8, %v1265_v8  ;;  %v1266_v50 = vmul.f32 %v2021_v56, %v1165_v59  ;;  %2056 = vrcp.f32 %v966_v41 }
 0x2a1   : > { %1428 = vst.msk [vmem:[%s2436_s24 + $0x28] sm:$0xf] %vm1417_vm2, %v1724_v57  ;;  %v1725_v63 = vpack.c.bf16 %v1268_v3, %v1268_v3  ;;  %v2047_v57 = vpop.eup %2046  ;;  %2058 = vrcp.f32 %v975_v42 }
 0x2a2   : > { %1426 = vst.msk [vmem:[%s2436_s24 + $0x20] sm:$0xf] %vm1417_vm2, %v1722_v25  ;;  %v1723_v6 = vpack.c.bf16 %v1266_v50, %v1266_v50  ;;  %v2049_v59 = vpop.eup %2048  ;;  %2060 = vrcp.f32 %v969_v19 }
 0x2a3   : > { %1429 = vst.msk [vmem:[%s2436_s24 + $0x2c] sm:$0xf] %vm1417_vm2, %v1725_v63  ;;  %v2051_v61 = vpop.eup %2050 }
 0x2a4   : > { %1427 = vst.msk [vmem:[%s2436_s24 + $0x24] sm:$0xf] %vm1417_vm2, %v1723_v6  ;;  %v1848_v54 = vpop.f32.mrb[12].mxu1 }
 0x2a5   : > { %v1271_v4 = vmul.f32 %v2023_v1, %v1848_v54  ;;  %v1178_v13 = vpop.f32.mrb[13].mxu1  ;;  %v2053_v1 = vpop.eup %2052 }
 0x2a6   : > { %v1269_v29 = vmul.f32 %v2025_v27, %v1178_v13  ;;  %v1849_v7 = vpop.f32.mrb[14].mxu1 }
 0x2a7   : > { %v1728_v10 = vpack.c.bf16 %v1271_v4, %v1271_v4  ;;  %v1272_v33 = vmul.f32 %v2027_v48, %v1849_v7  ;;  %v1181_v52 = vpop.f32.mrb[15].mxu1 }
 0x2a8   : > { %v1726_v36 = vpack.c.bf16 %v1269_v29, %v1269_v29  ;;  %v1270_v11 = vmul.f32 %v2029_v9, %v1181_v52 }
 0x2a9   : > { %1432 = vst.msk [vmem:[%s2436_s24 + $0x38] sm:$0xf] %vm1417_vm2, %v1728_v10  ;;  %v1729_v12 = vpack.c.bf16 %v1272_v33, %v1272_v33  ;;  %v2055_v7 = vpop.eup %2054 }
 0x2aa   : > { %1430 = vst.msk [vmem:[%s2436_s24 + $0x30] sm:$0xf] %vm1417_vm2, %v1726_v36  ;;  %v1727_v15 = vpack.c.bf16 %v1270_v11, %v1270_v11  ;;  %v2057_v16 = vpop.eup %2056 }
 0x2ab   : > { %1433 = vst.msk [vmem:[%s2436_s24 + $0x3c] sm:$0xf] %vm1417_vm2, %v1729_v12  ;;  %v2059_v52 = vpop.eup %2058 }
 0x2ac   : > { %1431 = vst.msk [vmem:[%s2436_s24 + $0x34] sm:$0xf] %vm1417_vm2, %v1727_v15  ;;  %v1852_v60 = vpop.f32.mrb[16].mxu1  ;;  %v2061_v12 = vpop.eup %2060 }
 0x2ad   : > { %v1275_v20 = vmul.f32 %v2031_v17, %v1852_v60  ;;  %v1194_v23 = vpop.f32.mrb[17].mxu1 }
 0x2ae   : > { %v1273_v0 = vmul.f32 %v2033_v14, %v1194_v23  ;;  %v1853_v21 = vpop.f32.mrb[18].mxu1 }
 0x2af   : > { %v1732_v30 = vpack.c.bf16 %v1275_v20, %v1275_v20  ;;  %v1276_v31 = vmul.f32 %v2035_v34, %v1853_v21  ;;  %v1197_v35 = vpop.f32.mrb[19].mxu1 }
 0x2b0   : > { %v1730_v26 = vpack.c.bf16 %v1273_v0, %v1273_v0  ;;  %v1274_v58 = vmul.f32 %v2037_v28, %v1197_v35 }
 0x2b1   : > { %1436 = vst.msk [vmem:[%s2436_s24 + $0x48] sm:$0xf] %vm1417_vm2, %v1732_v30  ;;  %v1733_v37 = vpack.c.bf16 %v1276_v31, %v1276_v31 }
 0x2b2   : > { %1434 = vst.msk [vmem:[%s2436_s24 + $0x40] sm:$0xf] %vm1417_vm2, %v1730_v26  ;;  %v1731_v38 = vpack.c.bf16 %v1274_v58, %v1274_v58 }
 0x2b3   : > { %1437 = vst.msk [vmem:[%s2436_s24 + $0x4c] sm:$0xf] %vm1417_vm2, %v1733_v37 }
 0x2b4   : > { %1435 = vst.msk [vmem:[%s2436_s24 + $0x44] sm:$0xf] %vm1417_vm2, %v1731_v38  ;;  %v1856_v40 = vpop.f32.mrb[20].mxu1 }
 0x2b5   : > { %v1279_v62 = vmul.f32 %v2039_v44, %v1856_v40  ;;  %v1210_v43 = vpop.f32.mrb[21].mxu1 }
 0x2b6   : > { %v1277_v46 = vmul.f32 %v2041_v22, %v1210_v43  ;;  %v1857_v39 = vpop.f32.mrb[22].mxu1 }
 0x2b7   : > { %v1736_v49 = vpack.c.bf16 %v1279_v62, %v1279_v62  ;;  %v1280_v51 = vmul.f32 %v2043_v45, %v1857_v39  ;;  %v1213_v53 = vpop.f32.mrb[23].mxu1 }
 0x2b8   : > { %v1734_v55 = vpack.c.bf16 %v1277_v46, %v1277_v46  ;;  %v1278_v8 = vmul.f32 %v2045_v47, %v1213_v53 }
 0x2b9   : > { %1440 = vst.msk [vmem:[%s2436_s24 + $0x58] sm:$0xf] %vm1417_vm2, %v1736_v49  ;;  %v1737_v56 = vpack.c.bf16 %v1280_v51, %v1280_v51 }
 0x2ba   : > { %1438 = vst.msk [vmem:[%s2436_s24 + $0x50] sm:$0xf] %vm1417_vm2, %v1734_v55  ;;  %v1735_v24 = vpack.c.bf16 %v1278_v8, %v1278_v8 }
 0x2bb   : > { %1441 = vst.msk [vmem:[%s2436_s24 + $0x5c] sm:$0xf] %vm1417_vm2, %v1737_v56 }
 0x2bc   : > { %1439 = vst.msk [vmem:[%s2436_s24 + $0x54] sm:$0xf] %vm1417_vm2, %v1735_v24  ;;  %v1860_v3 = vpop.f32.mrb[24].mxu1 }
 0x2bd   : > { %v1283_v25 = vmul.f32 %v2047_v57, %v1860_v3  ;;  %v1226_v50 = vpop.f32.mrb[25].mxu1 }
 0x2be   : > { %v1281_v63 = vmul.f32 %v2049_v59, %v1226_v50  ;;  %v1861_v6 = vpop.f32.mrb[26].mxu1 }
 0x2bf   : > { %v1740_v54 = vpack.c.bf16 %v1283_v25, %v1283_v25  ;;  %v1284_v27 = vmul.f32 %v2051_v61, %v1861_v6  ;;  %v1229_v2 = vpop.f32.mrb[27].mxu1 }
 0x2c0   : > { %v1738_v4 = vpack.c.bf16 %v1281_v63, %v1281_v63  ;;  %v1282_v13 = vmul.f32 %v2053_v1, %v1229_v2 }
 0x2c1   : > { %1444 = vst.msk [vmem:[%s2436_s24 + $0x68] sm:$0xf] %vm1417_vm2, %v1740_v54  ;;  %v1741_v48 = vpack.c.bf16 %v1284_v27, %v1284_v27 }
 0x2c2   : > { %1442 = vst.msk [vmem:[%s2436_s24 + $0x60] sm:$0xf] %vm1417_vm2, %v1738_v4  ;;  %v1739_v29 = vpack.c.bf16 %v1282_v13, %v1282_v13 }
 0x2c3   : > { %1445 = vst.msk [vmem:[%s2436_s24 + $0x6c] sm:$0xf] %vm1417_vm2, %v1741_v48 }
 0x2c4   : > { %1443 = vst.msk [vmem:[%s2436_s24 + $0x64] sm:$0xf] %vm1417_vm2, %v1739_v29  ;;  %v1864_v9 = vpop.f32.mrb[28].mxu1 }
 0x2c5   : > { %v1287_v10 = vmul.f32 %v2055_v7, %v1864_v9  ;;  %v1242_v33 = vpop.f32.mrb[29].mxu1 }
 0x2c6   : > { %v1285_v36 = vmul.f32 %v2057_v16, %v1242_v33  ;;  %v1865_v11 = vpop.f32.mrb[30].mxu1 }
 0x2c7   : > { %v1744_v15 = vpack.c.bf16 %v1287_v10, %v1287_v10  ;;  %v1288_v32 = vmul.f32 %v2059_v52, %v1865_v11  ;;  %v1245_v17 = vpop.f32.mrb[31].mxu1 }
 0x2c8   : > { %v1742_v60 = vpack.c.bf16 %v1285_v36, %v1285_v36  ;;  %v1286_v14 = vmul.f32 %v2061_v12, %v1245_v17 }
 0x2c9   : > { %1448 = vst.msk [vmem:[%s2436_s24 + $0x78] sm:$0xf] %vm1417_vm2, %v1744_v15  ;;  %v1745_v18 = vpack.c.bf16 %v1288_v32, %v1288_v32 }
 0x2ca   : > { %1446 = vst.msk [vmem:[%s2436_s24 + $0x70] sm:$0xf] %vm1417_vm2, %v1742_v60  ;;  %v1743_v20 = vpack.c.bf16 %v1286_v14, %v1286_v14 }
 0x2cb   : > { %1449 = vst.msk [vmem:[%s2436_s24 + $0x7c] sm:$0xf] %vm1417_vm2, %v1745_v18 }
 0x2cc   : > { %1447 = vst.msk [vmem:[%s2436_s24 + $0x74] sm:$0xf] %vm1417_vm2, %v1743_v20 }
 0x2cd PF: > { %s13_s16 = sadd.s32 1, %s2100_s16   ;;  %s2527_s12 = smov %s2092_s14 }
 0x2ce   : > { %p10_p9 = scmp.ge.s32.totalorder %s13_s16, 10   ;;  %s2528_s13 = smov %s2096_s15 }
 0x2cf   : > { %s2529_s14 = smov %s2532_s17  ;;  %s2530_s15 = smov %s2536_s18 }
 0x2d0   :  { %12 = sbr.rel (!%p10_p9) target bundleno = 3 (0x3), region = 68 }

</bundles_post_ra>
